<compile_context>
chip_gen: v5e
topology: v5e:2x2
jax: 0.10.0
libtpu: 0.0.40
codegen_flags: <defaults>
</compile_context>

<pallas_src>
import functools

import jax
import jax.numpy as jnp
from jax.experimental import pallas as pl
from jax.experimental.pallas import tpu as pltpu


def _round_up(v, m):
    return (v + m - 1) // m * m


# ----------------------------------------------------------------------------
# Pallas kernel 1: tiled matmul (MXU) with fused activation epilogue
# ----------------------------------------------------------------------------
def _matmul_epilogue_kernel(x_ref, w_ref, o_ref, acc_ref, *, epilogue):
    @pl.when(pl.program_id(2) == 0)
    def _init():
        acc_ref[...] = jnp.zeros_like(acc_ref)

    acc_ref[...] += jnp.dot(x_ref[...], w_ref[...],
                            preferred_element_type=jnp.float32)

    @pl.when(pl.program_id(2) == pl.num_programs(2) - 1)
    def _finalize():
        y = acc_ref[...]
        if epilogue == "leaky_relu":
            y = jnp.where(y > 0.0, y, 0.2 * y)
        elif epilogue == "sigmoid":
            y = jax.nn.sigmoid(y)
        o_ref[...] = y


def pallas_conv_matmul(x, w, *, epilogue="none"):
    """x: (M, K), w: (K, N) -> (Mp, Np) f32 (zero-padded to tile-aligned shapes).

    Operands are cast to bf16 (MXU-native on v5e/v6e/v7x), accumulation is f32.
    Output lane dim is padded to a multiple of 128 (dense vst, no masked stores).
    Caller slices [:M, :N].
    """
    M, K = x.shape
    K2, N = w.shape
    assert K == K2

    Kp = _round_up(K, 128)
    Np = _round_up(N, 128)

    # M tiling: big layers get tm=512 pipelined tiles; small layers take one 8-aligned tile.
    if M > 1024:
        tm = 512
        Mp = _round_up(M, tm)
    else:
        tm = _round_up(M, 8)
        Mp = tm

    # N tiling: 256-wide when possible (v6e/v7x 256x256 MXU), else 128 (v5e-safe).
    tn = 256 if Np % 256 == 0 else 128

    # K tiling (reduction axis, innermost / "arbitrary").
    if Kp <= 512:
        tk = Kp
    elif Kp % 512 == 0:
        tk = 512
    else:
        tk = 128

    xp = jnp.zeros((Mp, Kp), jnp.bfloat16).at[:M, :K].set(x.astype(jnp.bfloat16))
    wp = jnp.zeros((Kp, Np), jnp.bfloat16).at[:K, :N].set(w.astype(jnp.bfloat16))

    grid = (Mp // tm, Np // tn, Kp // tk)
    kernel = functools.partial(_matmul_epilogue_kernel, epilogue=epilogue)

    flops = 2 * Mp * Np * Kp
    transcendentals = Mp * Np if epilogue == "sigmoid" else 0
    bytes_accessed = (Mp * Kp + Kp * Np) * 2 + Mp * Np * 4

    out = pl.pallas_call(
        kernel,
        out_shape=jax.ShapeDtypeStruct((Mp, Np), jnp.float32),
        grid_spec=pltpu.PrefetchScalarGridSpec(
            num_scalar_prefetch=0,
            grid=grid,
            in_specs=[
                pl.BlockSpec((tm, tk), lambda i, j, k: (i, k)),
                pl.BlockSpec((tk, tn), lambda i, j, k: (k, j)),
            ],
            out_specs=pl.BlockSpec((tm, tn), lambda i, j, k: (i, j)),
            scratch_shapes=[pltpu.VMEM((tm, tn), jnp.float32)],
        ),
        compiler_params=pltpu.CompilerParams(
            dimension_semantics=("parallel", "parallel", "arbitrary"),
            vmem_limit_bytes=64 * 1024 * 1024,
        ),
        cost_estimate=pl.CostEstimate(
            flops=flops,
            transcendentals=transcendentals,
            bytes_accessed=bytes_accessed,
        ),
    )(xp, wp)
    return out, M, Np


# ----------------------------------------------------------------------------
# Pallas kernel 2: fused BatchNorm2d (batch stats) + LeakyReLU(0.2)
# ----------------------------------------------------------------------------
def _bn_lrelu_kernel(x_ref, g_ref, b_ref, o_ref, *, slope, eps):
    x = x_ref[...]                                   # (M, 128) f32
    mean = jnp.mean(x, axis=0, keepdims=True)
    c = x - mean
    var = jnp.mean(c * c, axis=0, keepdims=True)     # biased var, as PyTorch BN (training)
    y = c * jax.lax.rsqrt(var + eps) * g_ref[...] + b_ref[...]
    o_ref[...] = jnp.where(y > 0.0, y, slope * y)


def pallas_batchnorm_leaky_relu(x2d, gamma_p, beta_p, *, slope=0.2, eps=1e-5):
    """x2d: (M, Cp) f32 with Cp a multiple of 128; per-channel stats over M=B*H*W."""
    M, Cp = x2d.shape
    assert Cp % 128 == 0
    tc = 128
    g2 = gamma_p.reshape(1, Cp).astype(jnp.float32)
    b2 = beta_p.reshape(1, Cp).astype(jnp.float32)
    kernel = functools.partial(_bn_lrelu_kernel, slope=slope, eps=eps)
    return pl.pallas_call(
        kernel,
        out_shape=jax.ShapeDtypeStruct((M, Cp), jnp.float32),
        grid_spec=pltpu.PrefetchScalarGridSpec(
            num_scalar_prefetch=0,
            grid=(Cp // tc,),
            in_specs=[
                pl.BlockSpec((M, tc), lambda j: (0, j)),
                pl.BlockSpec((1, tc), lambda j: (0, j)),
                pl.BlockSpec((1, tc), lambda j: (0, j)),
            ],
            out_specs=pl.BlockSpec((M, tc), lambda j: (0, j)),
        ),
        compiler_params=pltpu.CompilerParams(
            dimension_semantics=("parallel",),
            vmem_limit_bytes=64 * 1024 * 1024,
        ),
    )(x2d.astype(jnp.float32), g2, b2)


# ----------------------------------------------------------------------------
# Convolution glue (patch extraction is pure slicing; the matmul is Pallas)
# ----------------------------------------------------------------------------
def _im2col(x, kh, kw, stride, pad):
    """x: (B, H, W, C) -> (B*Ho*Wo, kh*kw*C), Ho, Wo. Done in bf16 to halve traffic."""
    if pad:
        x = jnp.pad(x, ((0, 0), (pad, pad), (pad, pad), (0, 0)))
    B, Hp, Wp, C = x.shape
    Ho = (Hp - kh) // stride + 1
    Wo = (Wp - kw) // stride + 1
    cols = []
    for dy in range(kh):
        for dx in range(kw):
            patch = x[:, dy:dy + stride * Ho:stride, dx:dx + stride * Wo:stride, :]
            cols.append(patch)
    patches = jnp.stack(cols, axis=3)                # (B, Ho, Wo, kh*kw, C)
    return patches.reshape(B * Ho * Wo, kh * kw * C), Ho, Wo


def patchgan_layer(x_nhwc, w_hwio, *, stride, pad, bn=None, epilogue="none"):
    """Conv2d(bias=False) [+ BatchNorm2d + LeakyReLU] or [+ fused epilogue]."""
    kh, kw, cin, cout = w_hwio.shape
    B = x_nhwc.shape[0]
    cols, Ho, Wo = _im2col(x_nhwc.astype(jnp.bfloat16), kh, kw, stride, pad)
    wmat = w_hwio.reshape(kh * kw * cin, cout)
    y_p, M, Np = pallas_conv_matmul(cols, wmat, epilogue=epilogue)
    y = y_p[:M]                                      # (M, Np): real rows, lane-padded chans
    if bn is not None:
        gamma, beta = bn
        gamma_p = jnp.ones((Np,), jnp.float32).at[:cout].set(gamma)
        beta_p = jnp.zeros((Np,), jnp.float32).at[:cout].set(beta)
        y = pallas_batchnorm_leaky_relu(y, gamma_p, beta_p)
    return y[:, :cout].reshape(B, Ho, Wo, cout)


# ----------------------------------------------------------------------------
# PatchGAN parameters + forward
# ----------------------------------------------------------------------------
def init_patchgan_params(key, image_channels=1, hidden_dim=128, scale=0.05):
    h = hidden_dim
    ks = jax.random.split(key, 5)

    def conv_w(k, cin, cout):
        return scale * jax.random.normal(k, (4, 4, cin, cout), jnp.float32)

    return {
        "l1_w": conv_w(ks[0], image_channels, h // 2),
        "l2_w": conv_w(ks[1], h // 2, h),
        "l2_gamma": jnp.ones((h,), jnp.float32),
        "l2_beta": jnp.zeros((h,), jnp.float32),
        "l3_w": conv_w(ks[2], h, 2 * h),
        "l3_gamma": jnp.ones((2 * h,), jnp.float32),
        "l3_beta": jnp.zeros((2 * h,), jnp.float32),
        "l4_w": conv_w(ks[3], 2 * h, 4 * h),
        "l4_gamma": jnp.ones((4 * h,), jnp.float32),
        "l4_beta": jnp.zeros((4 * h,), jnp.float32),
        "l5_w": conv_w(ks[4], 4 * h, 1),
    }


def patchgan_forward(params, x_nchw):
    """Matches PatchGAN.forward: NCHW float32 in, flat 1-D sigmoid scores out."""
    x = jnp.transpose(x_nchw, (0, 2, 3, 1)).astype(jnp.float32)   # NCHW -> NHWC
    # layer1: Conv(4, s=2, p=0, bias=False) -> LeakyReLU(0.2)   (activation fused in matmul)
    x = patchgan_layer(x, params["l1_w"], stride=2, pad=0, epilogue="leaky_relu")
    # layer2: Conv(4, s=2, p=1) -> BatchNorm2d -> LeakyReLU(0.2)
    x = patchgan_layer(x, params["l2_w"], stride=2, pad=1,
                       bn=(params["l2_gamma"], params["l2_beta"]))
    # layer3
    x = patchgan_layer(x, params["l3_w"], stride=2, pad=1,
                       bn=(params["l3_gamma"], params["l3_beta"]))
    # layer4
    x = patchgan_layer(x, params["l4_w"], stride=2, pad=1,
                       bn=(params["l4_gamma"], params["l4_beta"]))
    # layer5: Conv(4, s=1, p=0) -> Sigmoid   (sigmoid fused in matmul)
    x = patchgan_layer(x, params["l5_w"], stride=1, pad=0, epilogue="sigmoid")
    # x.view(-1, 1).squeeze(1): since Cout == 1, NHWC flatten == NCHW flatten.
    return x.reshape(-1)


# ----------------------------------------------------------------------------
if __name__ == "__main__":
    key = jax.random.PRNGKey(0)
    k_p, k_x = jax.random.split(key)

    # Small shapes consistent with the module: 4 stride-2 convs (first unpadded) followed
    # by a 4x4 valid conv require input spatial >= 66; use 70 -> final patch grid is 1x1.
    B, CH, H, W = 2, 1, 70, 70
    HIDDEN = 32            # small stand-in for hidden_dim=128

    params = init_patchgan_params(k_p, image_channels=CH, hidden_dim=HIDDEN)
    x = jax.random.normal(k_x, (B, CH, H, W), jnp.float32)

    fwd = jax.jit(patchgan_forward)
    out = jax.block_until_ready(fwd(params, x))

    assert out.ndim == 1 and out.shape == (B,), out.shape   # B * 1 * 1 patches
    assert bool(jnp.all(jnp.isfinite(out)))
    assert bool(jnp.all((out >= 0.0) & (out <= 1.0)))        # sigmoid output range

    print("KERNEL_OK")
</pallas_src>

<mosaic_0001>
module attributes {stable_mosaic.version = 11 : i64} {
  func.func @_matmul_epilogue_kernel(%arg0: i32, %arg1: i32, %arg2: i32, %arg3: memref<512x128xbf16, #tpu.memory_space<vmem>>, %arg4: memref<128x128xbf16, #tpu.memory_space<vmem>>, %arg5: memref<512x128xf32, #tpu.memory_space<vmem>>, %arg6: memref<512x128xf32, #tpu.memory_space<vmem>>) attributes {dimension_semantics = [#tpu.dimension_semantics<parallel>, #tpu.dimension_semantics<parallel>, #tpu.dimension_semantics<arbitrary>], iteration_bounds = array<i64: 5, 1, 1>, scalar_prefetch = 0 : i64, scratch_operands = 1 : i64, tpu.core_type = #tpu.core_type<tc>, window_params = [{transform_indices = @transform_0, window_bounds = array<i64: 512, 128>}, {transform_indices = @transform_1, window_bounds = array<i64: 128, 128>}, {transform_indices = @transform_2, window_bounds = array<i64: 512, 128>}]} {
    %c0_i32 = arith.constant 0 : i32
    %0 = arith.cmpi eq, %arg2, %c0_i32 : i32
    %1 = arith.extui %0 : i1 to i32
    %c0_i32_0 = arith.constant 0 : i32
    %2 = arith.cmpi ne, %1, %c0_i32_0 : i32
    scf.if %2 {
      %cst_10 = arith.constant 0.000000e+00 : f32
      %12 = vector.broadcast %cst_10 : f32 to vector<512x128xf32>
      %c0_11 = arith.constant 0 : index
      %c0_12 = arith.constant 0 : index
      %13 = vector.load %arg6[%c0_11, %c0_12] : memref<512x128xf32, #tpu.memory_space<vmem>>, vector<512x128xf32>
      tpu.vector_store %arg6[%c0_11, %c0_12], %12 {strides = array<i32>} : memref<512x128xf32, #tpu.memory_space<vmem>>, vector<512x128xf32>,
    } else {
    }
    %c0 = arith.constant 0 : index
    %c0_1 = arith.constant 0 : index
    %3 = vector.load %arg6[%c0, %c0_1] : memref<512x128xf32, #tpu.memory_space<vmem>>, vector<512x128xf32>
    %c0_2 = arith.constant 0 : index
    %c0_3 = arith.constant 0 : index
    %4 = vector.load %arg3[%c0_2, %c0_3] : memref<512x128xbf16, #tpu.memory_space<vmem>>, vector<512x128xbf16>
    %c0_4 = arith.constant 0 : index
    %c0_5 = arith.constant 0 : index
    %5 = vector.load %arg4[%c0_4, %c0_5] : memref<128x128xbf16, #tpu.memory_space<vmem>>, vector<128x128xbf16>
    %cst = arith.constant dense<0.000000e+00> : vector<512x128xf32>
    %6 = tpu.matmul %4, %5, %cst {dimension_numbers = #tpu.dot_dimension_numbers<[1], [0], [0], [1], [0, 0, 1, 1], [], []>} : vector<512x128xbf16>, vector<128x128xbf16>, vector<512x128xf32> -> vector<512x128xf32>
    %7 = arith.addf %3, %6 : vector<512x128xf32>
    %c0_6 = arith.constant 0 : index
    %c0_7 = arith.constant 0 : index
    %8 = vector.load %arg6[%c0_6, %c0_7] : memref<512x128xf32, #tpu.memory_space<vmem>>, vector<512x128xf32>
    tpu.vector_store %arg6[%c0_6, %c0_7], %7 {strides = array<i32>} : memref<512x128xf32, #tpu.memory_space<vmem>>, vector<512x128xf32>,
    %c0_i32_8 = arith.constant 0 : i32
    %9 = arith.cmpi eq, %arg2, %c0_i32_8 : i32
    %10 = arith.extui %9 : i1 to i32
    %c0_i32_9 = arith.constant 0 : i32
    %11 = arith.cmpi ne, %10, %c0_i32_9 : i32
    scf.if %11 {
      %c0_10 = arith.constant 0 : index
      %c0_11 = arith.constant 0 : index
      %12 = vector.load %arg6[%c0_10, %c0_11] : memref<512x128xf32, #tpu.memory_space<vmem>>, vector<512x128xf32>
      %cst_12 = arith.constant 0.000000e+00 : f32
      %13 = vector.broadcast %cst_12 : f32 to vector<512x128xf32>
      %14 = arith.cmpf ogt, %12, %13 : vector<512x128xf32>
      %cst_13 = arith.constant 2.000000e-01 : f32
      %15 = vector.broadcast %cst_13 : f32 to vector<512x128xf32>
      %16 = arith.mulf %15, %12 : vector<512x128xf32>
      %17 = arith.select %14, %12, %16 : vector<512x128xi1>, vector<512x128xf32>
      %c0_14 = arith.constant 0 : index
      %c0_15 = arith.constant 0 : index
      %18 = vector.load %arg5[%c0_14, %c0_15] : memref<512x128xf32, #tpu.memory_space<vmem>>, vector<512x128xf32>
      tpu.vector_store %arg5[%c0_14, %c0_15], %17 {strides = array<i32>} : memref<512x128xf32, #tpu.memory_space<vmem>>, vector<512x128xf32>,
    } else {
    }
    return
  }
  func.func @transform_0(%arg0: i32, %arg1: i32, %arg2: i32) -> (i32, i32) {
    %c0_i32 = arith.constant 0 : i32
    return %arg0, %arg2 : i32, i32
  }
  func.func @transform_1(%arg0: i32, %arg1: i32, %arg2: i32) -> (i32, i32) {
    %c0_i32 = arith.constant 0 : i32
    return %arg2, %arg1 : i32, i32
  }
  func.func @transform_2(%arg0: i32, %arg1: i32, %arg2: i32) -> (i32, i32) {
    %c0_i32 = arith.constant 0 : i32
    return %arg0, %arg1 : i32, i32
  }
}

module attributes {stable_mosaic.version = 11 : i64} {
  func.func @_matmul_epilogue_kernel(%arg0: i32, %arg1: i32, %arg2: i32, %arg3: memref<584x256xbf16, #tpu.memory_space<vmem>>, %arg4: memref<256x128xbf16, #tpu.memory_space<vmem>>, %arg5: memref<584x128xf32, #tpu.memory_space<vmem>>, %arg6: memref<584x128xf32, #tpu.memory_space<vmem>>) attributes {dimension_semantics = [#tpu.dimension_semantics<parallel>, #tpu.dimension_semantics<parallel>, #tpu.dimension_semantics<arbitrary>], iteration_bounds = array<i64: 1, 1, 1>, scalar_prefetch = 0 : i64, scratch_operands = 1 : i64, tpu.core_type = #tpu.core_type<tc>, window_params = [{transform_indices = @transform_0, window_bounds = array<i64: 584, 256>}, {transform_indices = @transform_1, window_bounds = array<i64: 256, 128>}, {transform_indices = @transform_2, window_bounds = array<i64: 584, 128>}]} {
    %c0_i32 = arith.constant 0 : i32
    %0 = arith.cmpi eq, %arg2, %c0_i32 : i32
    %1 = arith.extui %0 : i1 to i32
    %c0_i32_0 = arith.constant 0 : i32
    %2 = arith.cmpi ne, %1, %c0_i32_0 : i32
    scf.if %2 {
      %cst_10 = arith.constant 0.000000e+00 : f32
      %12 = vector.broadcast %cst_10 : f32 to vector<584x128xf32>
      %c0_11 = arith.constant 0 : index
      %c0_12 = arith.constant 0 : index
      %13 = vector.load %arg6[%c0_11, %c0_12] : memref<584x128xf32, #tpu.memory_space<vmem>>, vector<584x128xf32>
      tpu.vector_store %arg6[%c0_11, %c0_12], %12 {strides = array<i32>} : memref<584x128xf32, #tpu.memory_space<vmem>>, vector<584x128xf32>,
    } else {
    }
    %c0 = arith.constant 0 : index
    %c0_1 = arith.constant 0 : index
    %3 = vector.load %arg6[%c0, %c0_1] : memref<584x128xf32, #tpu.memory_space<vmem>>, vector<584x128xf32>
    %c0_2 = arith.constant 0 : index
    %c0_3 = arith.constant 0 : index
    %4 = vector.load %arg3[%c0_2, %c0_3] : memref<584x256xbf16, #tpu.memory_space<vmem>>, vector<584x256xbf16>
    %c0_4 = arith.constant 0 : index
    %c0_5 = arith.constant 0 : index
    %5 = vector.load %arg4[%c0_4, %c0_5] : memref<256x128xbf16, #tpu.memory_space<vmem>>, vector<256x128xbf16>
    %cst = arith.constant dense<0.000000e+00> : vector<584x128xf32>
    %6 = tpu.matmul %4, %5, %cst {dimension_numbers = #tpu.dot_dimension_numbers<[1], [0], [0], [1], [0, 0, 1, 1], [], []>} : vector<584x256xbf16>, vector<256x128xbf16>, vector<584x128xf32> -> vector<584x128xf32>
    %7 = arith.addf %3, %6 : vector<584x128xf32>
    %c0_6 = arith.constant 0 : index
    %c0_7 = arith.constant 0 : index
    %8 = vector.load %arg6[%c0_6, %c0_7] : memref<584x128xf32, #tpu.memory_space<vmem>>, vector<584x128xf32>
    tpu.vector_store %arg6[%c0_6, %c0_7], %7 {strides = array<i32>} : memref<584x128xf32, #tpu.memory_space<vmem>>, vector<584x128xf32>,
    %c0_i32_8 = arith.constant 0 : i32
    %9 = arith.cmpi eq, %arg2, %c0_i32_8 : i32
    %10 = arith.extui %9 : i1 to i32
    %c0_i32_9 = arith.constant 0 : i32
    %11 = arith.cmpi ne, %10, %c0_i32_9 : i32
    scf.if %11 {
      %c0_10 = arith.constant 0 : index
      %c0_11 = arith.constant 0 : index
      %12 = vector.load %arg6[%c0_10, %c0_11] : memref<584x128xf32, #tpu.memory_space<vmem>>, vector<584x128xf32>
      %c0_12 = arith.constant 0 : index
      %c0_13 = arith.constant 0 : index
      %13 = vector.load %arg5[%c0_12, %c0_13] : memref<584x128xf32, #tpu.memory_space<vmem>>, vector<584x128xf32>
      tpu.vector_store %arg5[%c0_12, %c0_13], %12 {strides = array<i32>} : memref<584x128xf32, #tpu.memory_space<vmem>>, vector<584x128xf32>,
    } else {
    }
    return
  }
  func.func @transform_0(%arg0: i32, %arg1: i32, %arg2: i32) -> (i32, i32) {
    %c0_i32 = arith.constant 0 : i32
    return %arg0, %arg2 : i32, i32
  }
  func.func @transform_1(%arg0: i32, %arg1: i32, %arg2: i32) -> (i32, i32) {
    %c0_i32 = arith.constant 0 : i32
    return %arg2, %arg1 : i32, i32
  }
  func.func @transform_2(%arg0: i32, %arg1: i32, %arg2: i32) -> (i32, i32) {
    %c0_i32 = arith.constant 0 : i32
    return %arg0, %arg1 : i32, i32
  }
}

module attributes {stable_mosaic.version = 11 : i64} {
  func.func @_bn_lrelu_kernel(%arg0: i32, %arg1: memref<578x128xf32, #tpu.memory_space<vmem>>, %arg2: memref<1x128xf32, #tpu.memory_space<vmem>>, %arg3: memref<1x128xf32, #tpu.memory_space<vmem>>, %arg4: memref<578x128xf32, #tpu.memory_space<vmem>>) attributes {dimension_semantics = [#tpu.dimension_semantics<parallel>], iteration_bounds = array<i64: 1>, scalar_prefetch = 0 : i64, scratch_operands = 0 : i64, tpu.core_type = #tpu.core_type<tc>, window_params = [{transform_indices = @transform_0, window_bounds = array<i64: 578, 128>}, {transform_indices = @transform_1, window_bounds = array<i64: 1, 128>}, {transform_indices = @transform_2, window_bounds = array<i64: 1, 128>}, {transform_indices = @transform_3, window_bounds = array<i64: 578, 128>}]} {
    %c0 = arith.constant 0 : index
    %c0_0 = arith.constant 0 : index
    %0 = vector.load %arg1[%c0, %c0_0] : memref<578x128xf32, #tpu.memory_space<vmem>>, vector<578x128xf32>
    %cst = arith.constant dense<0.000000e+00> : vector<128xf32>
    %1 = vector.multi_reduction <add>, %0, %cst [0] : vector<578x128xf32> to vector<128xf32>
    %2 = vector.shape_cast %1 : vector<128xf32> to vector<1x128xf32>
    %cst_1 = arith.constant 5.780000e+02 : f32
    %3 = vector.broadcast %cst_1 : f32 to vector<1x128xf32>
    %4 = arith.divf %2, %3 : vector<1x128xf32>
    %5 = vector.broadcast %4 : vector<1x128xf32> to vector<578x128xf32>
    %6 = arith.subf %0, %5 : vector<578x128xf32>
    %7 = arith.mulf %6, %6 : vector<578x128xf32>
    %cst_2 = arith.constant dense<0.000000e+00> : vector<128xf32>
    %8 = vector.multi_reduction <add>, %7, %cst_2 [0] : vector<578x128xf32> to vector<128xf32>
    %9 = vector.shape_cast %8 : vector<128xf32> to vector<1x128xf32>
    %cst_3 = arith.constant 5.780000e+02 : f32
    %10 = vector.broadcast %cst_3 : f32 to vector<1x128xf32>
    %11 = arith.divf %9, %10 : vector<1x128xf32>
    %cst_4 = arith.constant 9.99999974E-6 : f32
    %12 = vector.broadcast %cst_4 : f32 to vector<1x128xf32>
    %13 = arith.addf %11, %12 : vector<1x128xf32>
    %14 = math.rsqrt %13 : vector<1x128xf32>
    %15 = vector.broadcast %14 : vector<1x128xf32> to vector<578x128xf32>
    %16 = arith.mulf %6, %15 : vector<578x128xf32>
    %c0_5 = arith.constant 0 : index
    %c0_6 = arith.constant 0 : index
    %17 = vector.load %arg2[%c0_5, %c0_6] : memref<1x128xf32, #tpu.memory_space<vmem>>, vector<1x128xf32>
    %18 = vector.broadcast %17 : vector<1x128xf32> to vector<578x128xf32>
    %19 = arith.mulf %16, %18 : vector<578x128xf32>
    %c0_7 = arith.constant 0 : index
    %c0_8 = arith.constant 0 : index
    %20 = vector.load %arg3[%c0_7, %c0_8] : memref<1x128xf32, #tpu.memory_space<vmem>>, vector<1x128xf32>
    %21 = vector.broadcast %20 : vector<1x128xf32> to vector<578x128xf32>
    %22 = arith.addf %19, %21 : vector<578x128xf32>
    %cst_9 = arith.constant 0.000000e+00 : f32
    %23 = vector.broadcast %cst_9 : f32 to vector<578x128xf32>
    %24 = arith.cmpf ogt, %22, %23 : vector<578x128xf32>
    %cst_10 = arith.constant 2.000000e-01 : f32
    %25 = vector.broadcast %cst_10 : f32 to vector<578x128xf32>
    %26 = arith.mulf %25, %22 : vector<578x128xf32>
    %27 = arith.select %24, %22, %26 : vector<578x128xi1>, vector<578x128xf32>
    %c0_11 = arith.constant 0 : index
    %c0_12 = arith.constant 0 : index
    %28 = vector.load %arg4[%c0_11, %c0_12] : memref<578x128xf32, #tpu.memory_space<vmem>>, vector<578x128xf32>
    tpu.vector_store %arg4[%c0_11, %c0_12], %27 {strides = array<i32>} : memref<578x128xf32, #tpu.memory_space<vmem>>, vector<578x128xf32>,
    return
  }
  func.func @transform_0(%arg0: i32) -> (i32, i32) {
    %c0_i32 = arith.constant 0 : i32
    %c0_i32_0 = arith.constant 0 : i32
    return %c0_i32, %arg0 : i32, i32
  }
  func.func @transform_1(%arg0: i32) -> (i32, i32) {
    %c0_i32 = arith.constant 0 : i32
    %c0_i32_0 = arith.constant 0 : i32
    return %c0_i32, %arg0 : i32, i32
  }
  func.func @transform_2(%arg0: i32) -> (i32, i32) {
    %c0_i32 = arith.constant 0 : i32
    %c0_i32_0 = arith.constant 0 : i32
    return %c0_i32, %arg0 : i32, i32
  }
  func.func @transform_3(%arg0: i32) -> (i32, i32) {
    %c0_i32 = arith.constant 0 : i32
    %c0_i32_0 = arith.constant 0 : i32
    return %c0_i32, %arg0 : i32, i32
  }
}

module attributes {stable_mosaic.version = 11 : i64} {
  func.func @_matmul_epilogue_kernel(%arg0: i32, %arg1: i32, %arg2: i32, %arg3: memref<128x512xbf16, #tpu.memory_space<vmem>>, %arg4: memref<512x128xbf16, #tpu.memory_space<vmem>>, %arg5: memref<128x128xf32, #tpu.memory_space<vmem>>, %arg6: memref<128x128xf32, #tpu.memory_space<vmem>>) attributes {dimension_semantics = [#tpu.dimension_semantics<parallel>, #tpu.dimension_semantics<parallel>, #tpu.dimension_semantics<arbitrary>], iteration_bounds = array<i64: 1, 1, 1>, scalar_prefetch = 0 : i64, scratch_operands = 1 : i64, tpu.core_type = #tpu.core_type<tc>, window_params = [{transform_indices = @transform_0, window_bounds = array<i64: 128, 512>}, {transform_indices = @transform_1, window_bounds = array<i64: 512, 128>}, {transform_indices = @transform_2, window_bounds = array<i64: 128, 128>}]} {
    %c0_i32 = arith.constant 0 : i32
    %0 = arith.cmpi eq, %arg2, %c0_i32 : i32
    %1 = arith.extui %0 : i1 to i32
    %c0_i32_0 = arith.constant 0 : i32
    %2 = arith.cmpi ne, %1, %c0_i32_0 : i32
    scf.if %2 {
      %cst_10 = arith.constant 0.000000e+00 : f32
      %12 = vector.broadcast %cst_10 : f32 to vector<128x128xf32>
      %c0_11 = arith.constant 0 : index
      %c0_12 = arith.constant 0 : index
      %13 = vector.load %arg6[%c0_11, %c0_12] : memref<128x128xf32, #tpu.memory_space<vmem>>, vector<128x128xf32>
      tpu.vector_store %arg6[%c0_11, %c0_12], %12 {strides = array<i32>} : memref<128x128xf32, #tpu.memory_space<vmem>>, vector<128x128xf32>,
    } else {
    }
    %c0 = arith.constant 0 : index
    %c0_1 = arith.constant 0 : index
    %3 = vector.load %arg6[%c0, %c0_1] : memref<128x128xf32, #tpu.memory_space<vmem>>, vector<128x128xf32>
    %c0_2 = arith.constant 0 : index
    %c0_3 = arith.constant 0 : index
    %4 = vector.load %arg3[%c0_2, %c0_3] : memref<128x512xbf16, #tpu.memory_space<vmem>>, vector<128x512xbf16>
    %c0_4 = arith.constant 0 : index
    %c0_5 = arith.constant 0 : index
    %5 = vector.load %arg4[%c0_4, %c0_5] : memref<512x128xbf16, #tpu.memory_space<vmem>>, vector<512x128xbf16>
    %cst = arith.constant dense<0.000000e+00> : vector<128x128xf32>
    %6 = tpu.matmul %4, %5, %cst {dimension_numbers = #tpu.dot_dimension_numbers<[1], [0], [0], [1], [0, 0, 1, 1], [], []>} : vector<128x512xbf16>, vector<512x128xbf16>, vector<128x128xf32> -> vector<128x128xf32>
    %7 = arith.addf %3, %6 : vector<128x128xf32>
    %c0_6 = arith.constant 0 : index
    %c0_7 = arith.constant 0 : index
    %8 = vector.load %arg6[%c0_6, %c0_7] : memref<128x128xf32, #tpu.memory_space<vmem>>, vector<128x128xf32>
    tpu.vector_store %arg6[%c0_6, %c0_7], %7 {strides = array<i32>} : memref<128x128xf32, #tpu.memory_space<vmem>>, vector<128x128xf32>,
    %c0_i32_8 = arith.constant 0 : i32
    %9 = arith.cmpi eq, %arg2, %c0_i32_8 : i32
    %10 = arith.extui %9 : i1 to i32
    %c0_i32_9 = arith.constant 0 : i32
    %11 = arith.cmpi ne, %10, %c0_i32_9 : i32
    scf.if %11 {
      %c0_10 = arith.constant 0 : index
      %c0_11 = arith.constant 0 : index
      %12 = vector.load %arg6[%c0_10, %c0_11] : memref<128x128xf32, #tpu.memory_space<vmem>>, vector<128x128xf32>
      %c0_12 = arith.constant 0 : index
      %c0_13 = arith.constant 0 : index
      %13 = vector.load %arg5[%c0_12, %c0_13] : memref<128x128xf32, #tpu.memory_space<vmem>>, vector<128x128xf32>
      tpu.vector_store %arg5[%c0_12, %c0_13], %12 {strides = array<i32>} : memref<128x128xf32, #tpu.memory_space<vmem>>, vector<128x128xf32>,
    } else {
    }
    return
  }
  func.func @transform_0(%arg0: i32, %arg1: i32, %arg2: i32) -> (i32, i32) {
    %c0_i32 = arith.constant 0 : i32
    return %arg0, %arg2 : i32, i32
  }
  func.func @transform_1(%arg0: i32, %arg1: i32, %arg2: i32) -> (i32, i32) {
    %c0_i32 = arith.constant 0 : i32
    return %arg2, %arg1 : i32, i32
  }
  func.func @transform_2(%arg0: i32, %arg1: i32, %arg2: i32) -> (i32, i32) {
    %c0_i32 = arith.constant 0 : i32
    return %arg0, %arg1 : i32, i32
  }
}

module attributes {stable_mosaic.version = 11 : i64} {
  func.func @_bn_lrelu_kernel(%arg0: i32, %arg1: memref<128x128xf32, #tpu.memory_space<vmem>>, %arg2: memref<1x128xf32, #tpu.memory_space<vmem>>, %arg3: memref<1x128xf32, #tpu.memory_space<vmem>>, %arg4: memref<128x128xf32, #tpu.memory_space<vmem>>) attributes {dimension_semantics = [#tpu.dimension_semantics<parallel>], iteration_bounds = array<i64: 1>, scalar_prefetch = 0 : i64, scratch_operands = 0 : i64, tpu.core_type = #tpu.core_type<tc>, window_params = [{transform_indices = @transform_0, window_bounds = array<i64: 128, 128>}, {transform_indices = @transform_1, window_bounds = array<i64: 1, 128>}, {transform_indices = @transform_2, window_bounds = array<i64: 1, 128>}, {transform_indices = @transform_3, window_bounds = array<i64: 128, 128>}]} {
    %c0 = arith.constant 0 : index
    %c0_0 = arith.constant 0 : index
    %0 = vector.load %arg1[%c0, %c0_0] : memref<128x128xf32, #tpu.memory_space<vmem>>, vector<128x128xf32>
    %cst = arith.constant dense<0.000000e+00> : vector<128xf32>
    %1 = vector.multi_reduction <add>, %0, %cst [0] : vector<128x128xf32> to vector<128xf32>
    %2 = vector.shape_cast %1 : vector<128xf32> to vector<1x128xf32>
    %cst_1 = arith.constant 1.280000e+02 : f32
    %3 = vector.broadcast %cst_1 : f32 to vector<1x128xf32>
    %4 = arith.divf %2, %3 : vector<1x128xf32>
    %5 = vector.broadcast %4 : vector<1x128xf32> to vector<128x128xf32>
    %6 = arith.subf %0, %5 : vector<128x128xf32>
    %7 = arith.mulf %6, %6 : vector<128x128xf32>
    %cst_2 = arith.constant dense<0.000000e+00> : vector<128xf32>
    %8 = vector.multi_reduction <add>, %7, %cst_2 [0] : vector<128x128xf32> to vector<128xf32>
    %9 = vector.shape_cast %8 : vector<128xf32> to vector<1x128xf32>
    %cst_3 = arith.constant 1.280000e+02 : f32
    %10 = vector.broadcast %cst_3 : f32 to vector<1x128xf32>
    %11 = arith.divf %9, %10 : vector<1x128xf32>
    %cst_4 = arith.constant 9.99999974E-6 : f32
    %12 = vector.broadcast %cst_4 : f32 to vector<1x128xf32>
    %13 = arith.addf %11, %12 : vector<1x128xf32>
    %14 = math.rsqrt %13 : vector<1x128xf32>
    %15 = vector.broadcast %14 : vector<1x128xf32> to vector<128x128xf32>
    %16 = arith.mulf %6, %15 : vector<128x128xf32>
    %c0_5 = arith.constant 0 : index
    %c0_6 = arith.constant 0 : index
    %17 = vector.load %arg2[%c0_5, %c0_6] : memref<1x128xf32, #tpu.memory_space<vmem>>, vector<1x128xf32>
    %18 = vector.broadcast %17 : vector<1x128xf32> to vector<128x128xf32>
    %19 = arith.mulf %16, %18 : vector<128x128xf32>
    %c0_7 = arith.constant 0 : index
    %c0_8 = arith.constant 0 : index
    %20 = vector.load %arg3[%c0_7, %c0_8] : memref<1x128xf32, #tpu.memory_space<vmem>>, vector<1x128xf32>
    %21 = vector.broadcast %20 : vector<1x128xf32> to vector<128x128xf32>
    %22 = arith.addf %19, %21 : vector<128x128xf32>
    %cst_9 = arith.constant 0.000000e+00 : f32
    %23 = vector.broadcast %cst_9 : f32 to vector<128x128xf32>
    %24 = arith.cmpf ogt, %22, %23 : vector<128x128xf32>
    %cst_10 = arith.constant 2.000000e-01 : f32
    %25 = vector.broadcast %cst_10 : f32 to vector<128x128xf32>
    %26 = arith.mulf %25, %22 : vector<128x128xf32>
    %27 = arith.select %24, %22, %26 : vector<128x128xi1>, vector<128x128xf32>
    %c0_11 = arith.constant 0 : index
    %c0_12 = arith.constant 0 : index
    %28 = vector.load %arg4[%c0_11, %c0_12] : memref<128x128xf32, #tpu.memory_space<vmem>>, vector<128x128xf32>
    tpu.vector_store %arg4[%c0_11, %c0_12], %27 {strides = array<i32>} : memref<128x128xf32, #tpu.memory_space<vmem>>, vector<128x128xf32>,
    return
  }
  func.func @transform_0(%arg0: i32) -> (i32, i32) {
    %c0_i32 = arith.constant 0 : i32
    %c0_i32_0 = arith.constant 0 : i32
    return %c0_i32, %arg0 : i32, i32
  }
  func.func @transform_1(%arg0: i32) -> (i32, i32) {
    %c0_i32 = arith.constant 0 : i32
    %c0_i32_0 = arith.constant 0 : i32
    return %c0_i32, %arg0 : i32, i32
  }
  func.func @transform_2(%arg0: i32) -> (i32, i32) {
    %c0_i32 = arith.constant 0 : i32
    %c0_i32_0 = arith.constant 0 : i32
    return %c0_i32, %arg0 : i32, i32
  }
  func.func @transform_3(%arg0: i32) -> (i32, i32) {
    %c0_i32 = arith.constant 0 : i32
    %c0_i32_0 = arith.constant 0 : i32
    return %c0_i32, %arg0 : i32, i32
  }
}

module attributes {stable_mosaic.version = 11 : i64} {
  func.func @_matmul_epilogue_kernel(%arg0: i32, %arg1: i32, %arg2: i32, %arg3: memref<32x512xbf16, #tpu.memory_space<vmem>>, %arg4: memref<512x128xbf16, #tpu.memory_space<vmem>>, %arg5: memref<32x128xf32, #tpu.memory_space<vmem>>, %arg6: memref<32x128xf32, #tpu.memory_space<vmem>>) attributes {dimension_semantics = [#tpu.dimension_semantics<parallel>, #tpu.dimension_semantics<parallel>, #tpu.dimension_semantics<arbitrary>], iteration_bounds = array<i64: 1, 1, 2>, scalar_prefetch = 0 : i64, scratch_operands = 1 : i64, tpu.core_type = #tpu.core_type<tc>, window_params = [{transform_indices = @transform_0, window_bounds = array<i64: 32, 512>}, {transform_indices = @transform_1, window_bounds = array<i64: 512, 128>}, {transform_indices = @transform_2, window_bounds = array<i64: 32, 128>}]} {
    %c0_i32 = arith.constant 0 : i32
    %0 = arith.cmpi eq, %arg2, %c0_i32 : i32
    %1 = arith.extui %0 : i1 to i32
    %c0_i32_0 = arith.constant 0 : i32
    %2 = arith.cmpi ne, %1, %c0_i32_0 : i32
    scf.if %2 {
      %cst_9 = arith.constant 0.000000e+00 : f32
      %12 = vector.broadcast %cst_9 : f32 to vector<32x128xf32>
      %c0_10 = arith.constant 0 : index
      %c0_11 = arith.constant 0 : index
      %13 = vector.load %arg6[%c0_10, %c0_11] : memref<32x128xf32, #tpu.memory_space<vmem>>, vector<32x128xf32>
      tpu.vector_store %arg6[%c0_10, %c0_11], %12 {strides = array<i32>} : memref<32x128xf32, #tpu.memory_space<vmem>>, vector<32x128xf32>,
    } else {
    }
    %c0 = arith.constant 0 : index
    %c0_1 = arith.constant 0 : index
    %3 = vector.load %arg6[%c0, %c0_1] : memref<32x128xf32, #tpu.memory_space<vmem>>, vector<32x128xf32>
    %c0_2 = arith.constant 0 : index
    %c0_3 = arith.constant 0 : index
    %4 = vector.load %arg3[%c0_2, %c0_3] : memref<32x512xbf16, #tpu.memory_space<vmem>>, vector<32x512xbf16>
    %c0_4 = arith.constant 0 : index
    %c0_5 = arith.constant 0 : index
    %5 = vector.load %arg4[%c0_4, %c0_5] : memref<512x128xbf16, #tpu.memory_space<vmem>>, vector<512x128xbf16>
    %cst = arith.constant dense<0.000000e+00> : vector<32x128xf32>
    %6 = tpu.matmul %4, %5, %cst {dimension_numbers = #tpu.dot_dimension_numbers<[1], [0], [0], [1], [0, 0, 1, 1], [], []>} : vector<32x512xbf16>, vector<512x128xbf16>, vector<32x128xf32> -> vector<32x128xf32>
    %7 = arith.addf %3, %6 : vector<32x128xf32>
    %c0_6 = arith.constant 0 : index
    %c0_7 = arith.constant 0 : index
    %8 = vector.load %arg6[%c0_6, %c0_7] : memref<32x128xf32, #tpu.memory_space<vmem>>, vector<32x128xf32>
    tpu.vector_store %arg6[%c0_6, %c0_7], %7 {strides = array<i32>} : memref<32x128xf32, #tpu.memory_space<vmem>>, vector<32x128xf32>,
    %c1_i32 = arith.constant 1 : i32
    %9 = arith.cmpi eq, %arg2, %c1_i32 : i32
    %10 = arith.extui %9 : i1 to i32
    %c0_i32_8 = arith.constant 0 : i32
    %11 = arith.cmpi ne, %10, %c0_i32_8 : i32
    scf.if %11 {
      %c0_9 = arith.constant 0 : index
      %c0_10 = arith.constant 0 : index
      %12 = vector.load %arg6[%c0_9, %c0_10] : memref<32x128xf32, #tpu.memory_space<vmem>>, vector<32x128xf32>
      %c0_11 = arith.constant 0 : index
      %c0_12 = arith.constant 0 : index
      %13 = vector.load %arg5[%c0_11, %c0_12] : memref<32x128xf32, #tpu.memory_space<vmem>>, vector<32x128xf32>
      tpu.vector_store %arg5[%c0_11, %c0_12], %12 {strides = array<i32>} : memref<32x128xf32, #tpu.memory_space<vmem>>, vector<32x128xf32>,
    } else {
    }
    return
  }
  func.func @transform_0(%arg0: i32, %arg1: i32, %arg2: i32) -> (i32, i32) {
    %c0_i32 = arith.constant 0 : i32
    return %arg0, %arg2 : i32, i32
  }
  func.func @transform_1(%arg0: i32, %arg1: i32, %arg2: i32) -> (i32, i32) {
    %c0_i32 = arith.constant 0 : i32
    return %arg2, %arg1 : i32, i32
  }
  func.func @transform_2(%arg0: i32, %arg1: i32, %arg2: i32) -> (i32, i32) {
    %c0_i32 = arith.constant 0 : i32
    return %arg0, %arg1 : i32, i32
  }
}

module attributes {stable_mosaic.version = 11 : i64} {
  func.func @_bn_lrelu_kernel(%arg0: i32, %arg1: memref<32x128xf32, #tpu.memory_space<vmem>>, %arg2: memref<1x128xf32, #tpu.memory_space<vmem>>, %arg3: memref<1x128xf32, #tpu.memory_space<vmem>>, %arg4: memref<32x128xf32, #tpu.memory_space<vmem>>) attributes {dimension_semantics = [#tpu.dimension_semantics<parallel>], iteration_bounds = array<i64: 1>, scalar_prefetch = 0 : i64, scratch_operands = 0 : i64, tpu.core_type = #tpu.core_type<tc>, window_params = [{transform_indices = @transform_0, window_bounds = array<i64: 32, 128>}, {transform_indices = @transform_1, window_bounds = array<i64: 1, 128>}, {transform_indices = @transform_2, window_bounds = array<i64: 1, 128>}, {transform_indices = @transform_3, window_bounds = array<i64: 32, 128>}]} {
    %c0 = arith.constant 0 : index
    %c0_0 = arith.constant 0 : index
    %0 = vector.load %arg1[%c0, %c0_0] : memref<32x128xf32, #tpu.memory_space<vmem>>, vector<32x128xf32>
    %cst = arith.constant dense<0.000000e+00> : vector<128xf32>
    %1 = vector.multi_reduction <add>, %0, %cst [0] : vector<32x128xf32> to vector<128xf32>
    %2 = vector.shape_cast %1 : vector<128xf32> to vector<1x128xf32>
    %cst_1 = arith.constant 3.200000e+01 : f32
    %3 = vector.broadcast %cst_1 : f32 to vector<1x128xf32>
    %4 = arith.divf %2, %3 : vector<1x128xf32>
    %5 = vector.broadcast %4 : vector<1x128xf32> to vector<32x128xf32>
    %6 = arith.subf %0, %5 : vector<32x128xf32>
    %7 = arith.mulf %6, %6 : vector<32x128xf32>
    %cst_2 = arith.constant dense<0.000000e+00> : vector<128xf32>
    %8 = vector.multi_reduction <add>, %7, %cst_2 [0] : vector<32x128xf32> to vector<128xf32>
    %9 = vector.shape_cast %8 : vector<128xf32> to vector<1x128xf32>
    %cst_3 = arith.constant 3.200000e+01 : f32
    %10 = vector.broadcast %cst_3 : f32 to vector<1x128xf32>
    %11 = arith.divf %9, %10 : vector<1x128xf32>
    %cst_4 = arith.constant 9.99999974E-6 : f32
    %12 = vector.broadcast %cst_4 : f32 to vector<1x128xf32>
    %13 = arith.addf %11, %12 : vector<1x128xf32>
    %14 = math.rsqrt %13 : vector<1x128xf32>
    %15 = vector.broadcast %14 : vector<1x128xf32> to vector<32x128xf32>
    %16 = arith.mulf %6, %15 : vector<32x128xf32>
    %c0_5 = arith.constant 0 : index
    %c0_6 = arith.constant 0 : index
    %17 = vector.load %arg2[%c0_5, %c0_6] : memref<1x128xf32, #tpu.memory_space<vmem>>, vector<1x128xf32>
    %18 = vector.broadcast %17 : vector<1x128xf32> to vector<32x128xf32>
    %19 = arith.mulf %16, %18 : vector<32x128xf32>
    %c0_7 = arith.constant 0 : index
    %c0_8 = arith.constant 0 : index
    %20 = vector.load %arg3[%c0_7, %c0_8] : memref<1x128xf32, #tpu.memory_space<vmem>>, vector<1x128xf32>
    %21 = vector.broadcast %20 : vector<1x128xf32> to vector<32x128xf32>
    %22 = arith.addf %19, %21 : vector<32x128xf32>
    %cst_9 = arith.constant 0.000000e+00 : f32
    %23 = vector.broadcast %cst_9 : f32 to vector<32x128xf32>
    %24 = arith.cmpf ogt, %22, %23 : vector<32x128xf32>
    %cst_10 = arith.constant 2.000000e-01 : f32
    %25 = vector.broadcast %cst_10 : f32 to vector<32x128xf32>
    %26 = arith.mulf %25, %22 : vector<32x128xf32>
    %27 = arith.select %24, %22, %26 : vector<32x128xi1>, vector<32x128xf32>
    %c0_11 = arith.constant 0 : index
    %c0_12 = arith.constant 0 : index
    %28 = vector.load %arg4[%c0_11, %c0_12] : memref<32x128xf32, #tpu.memory_space<vmem>>, vector<32x128xf32>
    tpu.vector_store %arg4[%c0_11, %c0_12], %27 {strides = array<i32>} : memref<32x128xf32, #tpu.memory_space<vmem>>, vector<32x128xf32>,
    return
  }
  func.func @transform_0(%arg0: i32) -> (i32, i32) {
    %c0_i32 = arith.constant 0 : i32
    %c0_i32_0 = arith.constant 0 : i32
    return %c0_i32, %arg0 : i32, i32
  }
  func.func @transform_1(%arg0: i32) -> (i32, i32) {
    %c0_i32 = arith.constant 0 : i32
    %c0_i32_0 = arith.constant 0 : i32
    return %c0_i32, %arg0 : i32, i32
  }
  func.func @transform_2(%arg0: i32) -> (i32, i32) {
    %c0_i32 = arith.constant 0 : i32
    %c0_i32_0 = arith.constant 0 : i32
    return %c0_i32, %arg0 : i32, i32
  }
  func.func @transform_3(%arg0: i32) -> (i32, i32) {
    %c0_i32 = arith.constant 0 : i32
    %c0_i32_0 = arith.constant 0 : i32
    return %c0_i32, %arg0 : i32, i32
  }
}

module attributes {stable_mosaic.version = 11 : i64} {
  func.func @_matmul_epilogue_kernel(%arg0: i32, %arg1: i32, %arg2: i32, %arg3: memref<8x512xbf16, #tpu.memory_space<vmem>>, %arg4: memref<512x128xbf16, #tpu.memory_space<vmem>>, %arg5: memref<8x128xf32, #tpu.memory_space<vmem>>, %arg6: memref<8x128xf32, #tpu.memory_space<vmem>>) attributes {dimension_semantics = [#tpu.dimension_semantics<parallel>, #tpu.dimension_semantics<parallel>, #tpu.dimension_semantics<arbitrary>], iteration_bounds = array<i64: 1, 1, 4>, scalar_prefetch = 0 : i64, scratch_operands = 1 : i64, tpu.core_type = #tpu.core_type<tc>, window_params = [{transform_indices = @transform_0, window_bounds = array<i64: 8, 512>}, {transform_indices = @transform_1, window_bounds = array<i64: 512, 128>}, {transform_indices = @transform_2, window_bounds = array<i64: 8, 128>}]} {
    %c0_i32 = arith.constant 0 : i32
    %0 = arith.cmpi eq, %arg2, %c0_i32 : i32
    %1 = arith.extui %0 : i1 to i32
    %c0_i32_0 = arith.constant 0 : i32
    %2 = arith.cmpi ne, %1, %c0_i32_0 : i32
    scf.if %2 {
      %cst_9 = arith.constant 0.000000e+00 : f32
      %12 = vector.broadcast %cst_9 : f32 to vector<8x128xf32>
      %c0_10 = arith.constant 0 : index
      %c0_11 = arith.constant 0 : index
      %13 = vector.load %arg6[%c0_10, %c0_11] : memref<8x128xf32, #tpu.memory_space<vmem>>, vector<8x128xf32>
      tpu.vector_store %arg6[%c0_10, %c0_11], %12 {strides = array<i32>} : memref<8x128xf32, #tpu.memory_space<vmem>>, vector<8x128xf32>,
    } else {
    }
    %c0 = arith.constant 0 : index
    %c0_1 = arith.constant 0 : index
    %3 = vector.load %arg6[%c0, %c0_1] : memref<8x128xf32, #tpu.memory_space<vmem>>, vector<8x128xf32>
    %c0_2 = arith.constant 0 : index
    %c0_3 = arith.constant 0 : index
    %4 = vector.load %arg3[%c0_2, %c0_3] : memref<8x512xbf16, #tpu.memory_space<vmem>>, vector<8x512xbf16>
    %c0_4 = arith.constant 0 : index
    %c0_5 = arith.constant 0 : index
    %5 = vector.load %arg4[%c0_4, %c0_5] : memref<512x128xbf16, #tpu.memory_space<vmem>>, vector<512x128xbf16>
    %cst = arith.constant dense<0.000000e+00> : vector<8x128xf32>
    %6 = tpu.matmul %4, %5, %cst {dimension_numbers = #tpu.dot_dimension_numbers<[1], [0], [0], [1], [0, 0, 1, 1], [], []>} : vector<8x512xbf16>, vector<512x128xbf16>, vector<8x128xf32> -> vector<8x128xf32>
    %7 = arith.addf %3, %6 : vector<8x128xf32>
    %c0_6 = arith.constant 0 : index
    %c0_7 = arith.constant 0 : index
    %8 = vector.load %arg6[%c0_6, %c0_7] : memref<8x128xf32, #tpu.memory_space<vmem>>, vector<8x128xf32>
    tpu.vector_store %arg6[%c0_6, %c0_7], %7 {strides = array<i32>} : memref<8x128xf32, #tpu.memory_space<vmem>>, vector<8x128xf32>,
    %c3_i32 = arith.constant 3 : i32
    %9 = arith.cmpi eq, %arg2, %c3_i32 : i32
    %10 = arith.extui %9 : i1 to i32
    %c0_i32_8 = arith.constant 0 : i32
    %11 = arith.cmpi ne, %10, %c0_i32_8 : i32
    scf.if %11 {
      %c0_9 = arith.constant 0 : index
      %c0_10 = arith.constant 0 : index
      %12 = vector.load %arg6[%c0_9, %c0_10] : memref<8x128xf32, #tpu.memory_space<vmem>>, vector<8x128xf32>
      %13 = arith.negf %12 : vector<8x128xf32>
      %14 = math.exp %13 : vector<8x128xf32>
      %cst_11 = arith.constant 1.000000e+00 : f32
      %15 = vector.broadcast %cst_11 : f32 to vector<8x128xf32>
      %16 = arith.addf %15, %14 : vector<8x128xf32>
      %17 = arith.divf %15, %16 : vector<8x128xf32>
      %c0_12 = arith.constant 0 : index
      %c0_13 = arith.constant 0 : index
      %18 = vector.load %arg5[%c0_12, %c0_13] : memref<8x128xf32, #tpu.memory_space<vmem>>, vector<8x128xf32>
      tpu.vector_store %arg5[%c0_12, %c0_13], %17 {strides = array<i32>} : memref<8x128xf32, #tpu.memory_space<vmem>>, vector<8x128xf32>,
    } else {
    }
    return
  }
  func.func @transform_0(%arg0: i32, %arg1: i32, %arg2: i32) -> (i32, i32) {
    %c0_i32 = arith.constant 0 : i32
    return %arg0, %arg2 : i32, i32
  }
  func.func @transform_1(%arg0: i32, %arg1: i32, %arg2: i32) -> (i32, i32) {
    %c0_i32 = arith.constant 0 : i32
    return %arg2, %arg1 : i32, i32
  }
  func.func @transform_2(%arg0: i32, %arg1: i32, %arg2: i32) -> (i32, i32) {
    %c0_i32 = arith.constant 0 : i32
    return %arg0, %arg1 : i32, i32
  }
}

</mosaic_0001>

<bundles_post_ra>
// kernel: patchgan_forward.8
= control target key start
LH: loop header
LB: loop body
LE: loop exit
PB: predicated region body
PF: predicated region fallthrough
CT: control target
= control target key end

     0   :  { %s1688_s9 = smov 0   ;;  %s1690_s10 = smov 0   ;;  %s1852_s0 = inlined_call_operand.vmem [shape: bf16[2560,128], index: 0, kind: input, shape index: {}]   ;;  %s1853_s1 = inlined_call_operand.vmem [shape: bf16[128,128], index: 1, kind: input, shape index: {}]   ;;  %s1854_s2 = inlined_call_operand.vmem [shape: f32[2560,128], index: 2, kind: output, shape index: {}]  }
   0x1   :  { %s1692_s11 = smov 0  }
   0x2 LB: > { %s31_s12 = sadd.s32 1, %s1667_s10  ;;  %p1394_p0 = scmp.ge.s32.totalorder %s1671_s11, 1  ;;  %s1671_s11 = sphi %s1692_s11, %s12_s11   ;;  %s1667_s10 = sphi %s1690_s10, %s1856_s10   ;;  %s1663_s9 = sphi %s1688_s9, %s1855_s9  }
   0x3   : > { %p33_p1 = scmp.ge.s32.totalorder %s31_s12, 5  ;;  %p155_p2 = scmp.lt.s32.totalorder %s1671_s11, 6 }
   0x5   : > { %s1858_s12 = smov (%p33_p1, %s31_s12), 0  ;;  %p156_p3 = pnand %p1394_p0, %p155_p2 }
   0x6   : > { %s1395_s21 = sshll.u32 (!%p156_p3), %s1663_s9, 6 }
   0x7   : > { %159 = sbr.rel (%p156_p3) target bundleno = 302 (0x12e), region = 28  ;;  %p192_p4 = scmp.lt.s32.totalorder (!%p156_p3), %s1395_s21, 319 }
   0xc   : > { %v1600_v0 = vld [vmem:[%s1853_s1 + $0x38] sm:$0xff]  ;;  %v1599_v1 = vld [vmem:[%s1853_s1 + $0x30] sm:$0xff]  ;;  %v1598_v2 = vld [vmem:[%s1853_s1 + $0x28] sm:$0xff]  ;;  %s1860_s21 = smov (!%p192_p4, %s1395_s21), 319 }
   0xd   : > { %670 = vmatpush.bf16.msra.mxu0 %v1600_v0  ;;  %1601 = vmatpush.bf16.msra.mxu1 %v1600_v0  ;;  %v1597_v3 = vld [vmem:[%s1853_s1 + $0x20] sm:$0xff]  ;;  %v1596_v4 = vld [vmem:[%s1853_s1 + $0x18] sm:$0xff]  ;;  %v1595_v5 = vld [vmem:[%s1853_s1 + $0x10] sm:$0xff]  ;;  %s1396_s28 = sshll.u32 %s1860_s21, 2  ;;  %s1398_s6 = sshll.u32 %s1860_s21, 3 }
   0xe   : > { %1602 = vmatpush.bf16.msra.mxu2 %v1600_v0  ;;  %1603 = vmatpush.bf16.msra.mxu3 %v1600_v0  ;;  %v1594_v6 = vld [vmem:[%s1853_s1 + $0x8] sm:$0xff]  ;;  %v1593_v7 = vld [vmem:[%s1853_s1] sm:$0xff]  ;;  %s1739_s5 = scalar_lea.vmem %s1852_s0, %s1396_s28  ;;  %s1777_s9 = scalar_lea.vmem %s1854_s2, %s1398_s6 }
   0xf   : > { %v1561_v8 = vld [vmem:[%s1739_s5] sm:$0xff]  ;;  %v1562_v12 = vld [vmem:[%s1739_s5 + $0x8] sm:$0xff]  ;;  %v1563_v16 = vld [vmem:[%s1739_s5 + $0x10] sm:$0xff] }
  0x10   : > { %v1569_v9 = vld [vmem:[%s1739_s5 + $0x40] sm:$0xff]  ;;  %v1570_v13 = vld [vmem:[%s1739_s5 + $0x48] sm:$0xff]  ;;  %v1571_v17 = vld [vmem:[%s1739_s5 + $0x50] sm:$0xff] }
  0x11   : > { %671 = vmatpush.bf16.msra.mxu0 %v1599_v1  ;;  %1604 = vmatpush.bf16.msra.mxu1 %v1599_v1  ;;  %v1577_v10 = vld [vmem:[%s1739_s5 + $0x80] sm:$0xff]  ;;  %v1578_v14 = vld [vmem:[%s1739_s5 + $0x88] sm:$0xff]  ;;  %v1579_v18 = vld [vmem:[%s1739_s5 + $0x90] sm:$0xff] }
  0x12   : > { %1605 = vmatpush.bf16.msra.mxu2 %v1599_v1  ;;  %1606 = vmatpush.bf16.msra.mxu3 %v1599_v1  ;;  %v1585_v11 = vld [vmem:[%s1739_s5 + $0xc0] sm:$0xff]  ;;  %v1586_v15 = vld [vmem:[%s1739_s5 + $0xc8] sm:$0xff]  ;;  %v1587_v19 = vld [vmem:[%s1739_s5 + $0xd0] sm:$0xff] }
  0x13   : > { %v1564_v20 = vld [vmem:[%s1739_s5 + $0x18] sm:$0xff]  ;;  %v1565_v24 = vld [vmem:[%s1739_s5 + $0x20] sm:$0xff]  ;;  %v1566_v28 = vld [vmem:[%s1739_s5 + $0x28] sm:$0xff] }
  0x14   : > { %v1572_v21 = vld [vmem:[%s1739_s5 + $0x58] sm:$0xff]  ;;  %v1573_v25 = vld [vmem:[%s1739_s5 + $0x60] sm:$0xff]  ;;  %v1574_v29 = vld [vmem:[%s1739_s5 + $0x68] sm:$0xff] }
  0x15   : > { %672 = vmatpush.bf16.msra.mxu0 %v1598_v2  ;;  %1607 = vmatpush.bf16.msra.mxu1 %v1598_v2  ;;  %v1580_v22 = vld [vmem:[%s1739_s5 + $0x98] sm:$0xff]  ;;  %v1581_v26 = vld [vmem:[%s1739_s5 + $0xa0] sm:$0xff]  ;;  %v1582_v30 = vld [vmem:[%s1739_s5 + $0xa8] sm:$0xff] }
  0x16   : > { %1608 = vmatpush.bf16.msra.mxu2 %v1598_v2  ;;  %1609 = vmatpush.bf16.msra.mxu3 %v1598_v2  ;;  %v1588_v23 = vld [vmem:[%s1739_s5 + $0xd8] sm:$0xff]  ;;  %v1589_v27 = vld [vmem:[%s1739_s5 + $0xe0] sm:$0xff]  ;;  %v1590_v31 = vld [vmem:[%s1739_s5 + $0xe8] sm:$0xff] }
  0x17   : > { %v1567_v32 = vld [vmem:[%s1739_s5 + $0x30] sm:$0xff]  ;;  %v1568_v36 = vld [vmem:[%s1739_s5 + $0x38] sm:$0xff] }
  0x18   : > { %v1575_v33 = vld [vmem:[%s1739_s5 + $0x70] sm:$0xff]  ;;  %v1576_v37 = vld [vmem:[%s1739_s5 + $0x78] sm:$0xff] }
  0x19   : > { %673 = vmatpush.bf16.msra.mxu0 %v1597_v3  ;;  %1610 = vmatpush.bf16.msra.mxu1 %v1597_v3  ;;  %v1583_v34 = vld [vmem:[%s1739_s5 + $0xb0] sm:$0xff]  ;;  %v1584_v38 = vld [vmem:[%s1739_s5 + $0xb8] sm:$0xff] }
  0x1a   : > { %1611 = vmatpush.bf16.msra.mxu2 %v1597_v3  ;;  %1612 = vmatpush.bf16.msra.mxu3 %v1597_v3  ;;  %v1591_v35 = vld [vmem:[%s1739_s5 + $0xf0] sm:$0xff]  ;;  %v1592_v39 = vld [vmem:[%s1739_s5 + $0xf8] sm:$0xff] }
  0x1d   : > { %674 = vmatpush.bf16.msra.mxu0 %v1596_v4  ;;  %1613 = vmatpush.bf16.msra.mxu1 %v1596_v4 }
  0x1e   : > { %1614 = vmatpush.bf16.msra.mxu2 %v1596_v4  ;;  %1615 = vmatpush.bf16.msra.mxu3 %v1596_v4 }
  0x21   : > { %675 = vmatpush.bf16.msra.mxu0 %v1595_v5  ;;  %1616 = vmatpush.bf16.msra.mxu1 %v1595_v5 }
  0x22   : > { %1617 = vmatpush.bf16.msra.mxu2 %v1595_v5  ;;  %1618 = vmatpush.bf16.msra.mxu3 %v1595_v5 }
  0x25   : > { %676 = vmatpush.bf16.msra.mxu0 %v1594_v6  ;;  %1619 = vmatpush.bf16.msra.mxu1 %v1594_v6 }
  0x26   : > { %1620 = vmatpush.bf16.msra.mxu2 %v1594_v6  ;;  %1621 = vmatpush.bf16.msra.mxu3 %v1594_v6 }
  0x29   : > { %677 = vmatpush.bf16.msra.mxu0 %v1593_v7  ;;  %1622 = vmatpush.bf16.msra.mxu1 %v1593_v7 }
  0x2a   : > { %1623 = vmatpush.bf16.msra.mxu2 %v1593_v7  ;;  %1624 = vmatpush.bf16.msra.mxu3 %v1593_v7 }
  0x2c   : > { %678 = vmatmul.bf16.vlgmr.msra.gmra.mxu0 %v1561_v8  ;;  %718 = vmatmul.bf16.vlgmr.msra.gmra.mxu1 %v1569_v9 }
  0x2d   : > { %758 = vmatmul.bf16.vlgmr.msra.gmra.mxu2 %v1577_v10  ;;  %798 = vmatmul.bf16.vlgmr.msra.gmra.mxu3 %v1585_v11 }
  0x3c   : > { %683 = vmatmul.bf16.gmra.mxu0 %v1562_v12  ;;  %723 = vmatmul.bf16.gmra.mxu1 %v1570_v13 }
  0x3d   : > { %763 = vmatmul.bf16.gmra.mxu2 %v1578_v14  ;;  %803 = vmatmul.bf16.gmra.mxu3 %v1586_v15 }
  0x4c   : > { %688 = vmatmul.bf16.gmra.mxu0 %v1563_v16  ;;  %728 = vmatmul.bf16.gmra.mxu1 %v1571_v17 }
  0x4d   : > { %768 = vmatmul.bf16.gmra.mxu2 %v1579_v18  ;;  %808 = vmatmul.bf16.gmra.mxu3 %v1587_v19 }
  0x5c   : > { %693 = vmatmul.bf16.gmra.mxu0 %v1564_v20  ;;  %733 = vmatmul.bf16.gmra.mxu1 %v1572_v21 }
  0x5d   : > { %773 = vmatmul.bf16.gmra.mxu2 %v1580_v22  ;;  %813 = vmatmul.bf16.gmra.mxu3 %v1588_v23 }
  0x6c   : > { %698 = vmatmul.bf16.gmra.mxu0 %v1565_v24  ;;  %738 = vmatmul.bf16.gmra.mxu1 %v1573_v25 }
  0x6d   : > { %778 = vmatmul.bf16.gmra.mxu2 %v1581_v26  ;;  %818 = vmatmul.bf16.gmra.mxu3 %v1589_v27 }
  0x7c   : > { %703 = vmatmul.bf16.gmra.mxu0 %v1566_v28  ;;  %743 = vmatmul.bf16.gmra.mxu1 %v1574_v29 }
  0x7d   : > { %783 = vmatmul.bf16.gmra.mxu2 %v1582_v30  ;;  %823 = vmatmul.bf16.gmra.mxu3 %v1590_v31 }
  0x8c   : > { %708 = vmatmul.bf16.gmra.mxu0 %v1567_v32  ;;  %748 = vmatmul.bf16.gmra.mxu1 %v1575_v33 }
  0x8d   : > { %788 = vmatmul.bf16.gmra.mxu2 %v1583_v34  ;;  %828 = vmatmul.bf16.gmra.mxu3 %v1591_v35 }
  0x9c   : > { %713 = vmatmul.bf16.gmra.mxu0 %v1568_v36  ;;  %753 = vmatmul.bf16.gmra.mxu1 %v1576_v37 }
  0x9d   : > { %793 = vmatmul.bf16.gmra.mxu2 %v1584_v38  ;;  %833 = vmatmul.bf16.gmra.mxu3 %v1592_v39 }
  0xa9   : > { %v679_v40 = vpop.f32.mrf.mxu0  ;;  %v719_v41 = vpop.f32.mrf.mxu1 }
  0xaa   : > { %vm1034_vm0 = vcmp.gt.f32.partialorder %v679_v40, 0.0  ;;  %v1098_v42 = vmul.f32 0.2, %v679_v40  ;;  %vm1050_vm1 = vcmp.gt.f32.partialorder %v719_v41, 0.0  ;;  %v1114_v43 = vmul.f32 0.2, %v719_v41 }
  0xac   : > { %v1162_v44 = vsel %vm1034_vm0, %v679_v40, %v1098_v42  ;;  %v1178_v45 = vsel %vm1050_vm1, %v719_v41, %v1114_v43 }
  0xad   : > { %1226 = vst [vmem:[%s1777_s9] sm:$0xff] %v1162_v44 }
  0xae   : > { %1242 = vst [vmem:[%s1777_s9 + $0x80] sm:$0xff] %v1178_v45 }
  0xb0   : > { %v759_v46 = vpop.f32.mrf.mxu2  ;;  %v799_v47 = vpop.f32.mrf.mxu3 }
  0xb1   : > { %vm1066_vm2 = vcmp.gt.f32.partialorder %v759_v46, 0.0  ;;  %v1130_v48 = vmul.f32 0.2, %v759_v46  ;;  %vm1082_vm3 = vcmp.gt.f32.partialorder %v799_v47, 0.0  ;;  %v1146_v49 = vmul.f32 0.2, %v799_v47  ;;  %v681_v50 = vpop.f32.mrf.mxu0  ;;  %v721_v51 = vpop.f32.mrf.mxu1 }
  0xb2   : > { %vm1035_vm4 = vcmp.gt.f32.partialorder %v681_v50, 0.0  ;;  %v1099_v52 = vmul.f32 0.2, %v681_v50  ;;  %vm1051_vm5 = vcmp.gt.f32.partialorder %v721_v51, 0.0  ;;  %v1115_v53 = vmul.f32 0.2, %v721_v51 }
  0xb3   : > { %v1194_v54 = vsel %vm1066_vm2, %v759_v46, %v1130_v48  ;;  %v1210_v55 = vsel %vm1082_vm3, %v799_v47, %v1146_v49 }
  0xb4   : > { %1258 = vst [vmem:[%s1777_s9 + $0x100] sm:$0xff] %v1194_v54  ;;  %v1163_v56 = vsel %vm1035_vm4, %v681_v50, %v1099_v52  ;;  %v1179_v57 = vsel %vm1051_vm5, %v721_v51, %v1115_v53 }
  0xb5   : > { %1274 = vst [vmem:[%s1777_s9 + $0x180] sm:$0xff] %v1210_v55 }
  0xb6   : > { %1227 = vst [vmem:[%s1777_s9 + $0x8] sm:$0xff] %v1163_v56 }
  0xb7   : > { %1243 = vst [vmem:[%s1777_s9 + $0x88] sm:$0xff] %v1179_v57 }
  0xb8   : > { %v761_v58 = vpop.f32.mrf.mxu2  ;;  %v801_v59 = vpop.f32.mrf.mxu3 }
  0xb9   : > { %vm1067_vm6 = vcmp.gt.f32.partialorder %v761_v58, 0.0  ;;  %v1131_v60 = vmul.f32 0.2, %v761_v58  ;;  %vm1083_vm7 = vcmp.gt.f32.partialorder %v801_v59, 0.0  ;;  %v1147_v61 = vmul.f32 0.2, %v801_v59  ;;  %v684_v62 = vpop.f32.mrf.mxu0  ;;  %v724_v63 = vpop.f32.mrf.mxu1 }
  0xba   : > { %vm1036_vm8 = vcmp.gt.f32.partialorder %v684_v62, 0.0  ;;  %v1100_v0 = vmul.f32 0.2, %v684_v62  ;;  %vm1052_vm9 = vcmp.gt.f32.partialorder %v724_v63, 0.0  ;;  %v1116_v1 = vmul.f32 0.2, %v724_v63 }
  0xbb   : > { %v1195_v2 = vsel %vm1067_vm6, %v761_v58, %v1131_v60  ;;  %v1211_v3 = vsel %vm1083_vm7, %v801_v59, %v1147_v61 }
  0xbc   : > { %1259 = vst [vmem:[%s1777_s9 + $0x108] sm:$0xff] %v1195_v2  ;;  %v1164_v4 = vsel %vm1036_vm8, %v684_v62, %v1100_v0  ;;  %v1180_v5 = vsel %vm1052_vm9, %v724_v63, %v1116_v1 }
  0xbd   : > { %1275 = vst [vmem:[%s1777_s9 + $0x188] sm:$0xff] %v1211_v3 }
  0xbe   : > { %1228 = vst [vmem:[%s1777_s9 + $0x10] sm:$0xff] %v1164_v4 }
  0xbf   : > { %1244 = vst [vmem:[%s1777_s9 + $0x90] sm:$0xff] %v1180_v5 }
  0xc0   : > { %v764_v6 = vpop.f32.mrf.mxu2  ;;  %v804_v7 = vpop.f32.mrf.mxu3 }
  0xc1   : > { %vm1068_vm10 = vcmp.gt.f32.partialorder %v764_v6, 0.0  ;;  %v1132_v8 = vmul.f32 0.2, %v764_v6  ;;  %vm1084_vm11 = vcmp.gt.f32.partialorder %v804_v7, 0.0  ;;  %v1148_v9 = vmul.f32 0.2, %v804_v7  ;;  %v686_v10 = vpop.f32.mrf.mxu0  ;;  %v726_v11 = vpop.f32.mrf.mxu1 }
  0xc2   : > { %vm1037_vm12 = vcmp.gt.f32.partialorder %v686_v10, 0.0  ;;  %v1101_v12 = vmul.f32 0.2, %v686_v10  ;;  %vm1053_vm13 = vcmp.gt.f32.partialorder %v726_v11, 0.0  ;;  %v1117_v13 = vmul.f32 0.2, %v726_v11 }
  0xc3   : > { %v1196_v14 = vsel %vm1068_vm10, %v764_v6, %v1132_v8  ;;  %v1212_v15 = vsel %vm1084_vm11, %v804_v7, %v1148_v9 }
  0xc4   : > { %1260 = vst [vmem:[%s1777_s9 + $0x110] sm:$0xff] %v1196_v14  ;;  %v1165_v16 = vsel %vm1037_vm12, %v686_v10, %v1101_v12  ;;  %v1181_v17 = vsel %vm1053_vm13, %v726_v11, %v1117_v13 }
  0xc5   : > { %1276 = vst [vmem:[%s1777_s9 + $0x190] sm:$0xff] %v1212_v15 }
  0xc6   : > { %1229 = vst [vmem:[%s1777_s9 + $0x18] sm:$0xff] %v1165_v16 }
  0xc7   : > { %1245 = vst [vmem:[%s1777_s9 + $0x98] sm:$0xff] %v1181_v17 }
  0xc8   : > { %v766_v18 = vpop.f32.mrf.mxu2  ;;  %v806_v19 = vpop.f32.mrf.mxu3 }
  0xc9   : > { %vm1069_vm14 = vcmp.gt.f32.partialorder %v766_v18, 0.0  ;;  %v1133_v20 = vmul.f32 0.2, %v766_v18  ;;  %vm1085_vm15 = vcmp.gt.f32.partialorder %v806_v19, 0.0  ;;  %v1149_v21 = vmul.f32 0.2, %v806_v19  ;;  %v689_v22 = vpop.f32.mrf.mxu0  ;;  %v729_v23 = vpop.f32.mrf.mxu1 }
  0xca   : > { %vm1038_vm0 = vcmp.gt.f32.partialorder %v689_v22, 0.0  ;;  %v1102_v24 = vmul.f32 0.2, %v689_v22  ;;  %vm1054_vm1 = vcmp.gt.f32.partialorder %v729_v23, 0.0  ;;  %v1118_v25 = vmul.f32 0.2, %v729_v23 }
  0xcb   : > { %v1197_v26 = vsel %vm1069_vm14, %v766_v18, %v1133_v20  ;;  %v1213_v27 = vsel %vm1085_vm15, %v806_v19, %v1149_v21 }
  0xcc   : > { %1261 = vst [vmem:[%s1777_s9 + $0x118] sm:$0xff] %v1197_v26  ;;  %v1166_v28 = vsel %vm1038_vm0, %v689_v22, %v1102_v24  ;;  %v1182_v29 = vsel %vm1054_vm1, %v729_v23, %v1118_v25 }
  0xcd   : > { %1277 = vst [vmem:[%s1777_s9 + $0x198] sm:$0xff] %v1213_v27 }
  0xce   : > { %1230 = vst [vmem:[%s1777_s9 + $0x20] sm:$0xff] %v1166_v28 }
  0xcf   : > { %1246 = vst [vmem:[%s1777_s9 + $0xa0] sm:$0xff] %v1182_v29 }
  0xd0   : > { %v769_v30 = vpop.f32.mrf.mxu2  ;;  %v809_v31 = vpop.f32.mrf.mxu3 }
  0xd1   : > { %vm1070_vm2 = vcmp.gt.f32.partialorder %v769_v30, 0.0  ;;  %v1134_v32 = vmul.f32 0.2, %v769_v30  ;;  %vm1086_vm3 = vcmp.gt.f32.partialorder %v809_v31, 0.0  ;;  %v1150_v33 = vmul.f32 0.2, %v809_v31  ;;  %v691_v34 = vpop.f32.mrf.mxu0  ;;  %v731_v35 = vpop.f32.mrf.mxu1 }
  0xd2   : > { %vm1039_vm4 = vcmp.gt.f32.partialorder %v691_v34, 0.0  ;;  %v1103_v36 = vmul.f32 0.2, %v691_v34  ;;  %vm1055_vm5 = vcmp.gt.f32.partialorder %v731_v35, 0.0  ;;  %v1119_v37 = vmul.f32 0.2, %v731_v35 }
  0xd3   : > { %v1198_v38 = vsel %vm1070_vm2, %v769_v30, %v1134_v32  ;;  %v1214_v39 = vsel %vm1086_vm3, %v809_v31, %v1150_v33 }
  0xd4   : > { %1262 = vst [vmem:[%s1777_s9 + $0x120] sm:$0xff] %v1198_v38  ;;  %v1167_v40 = vsel %vm1039_vm4, %v691_v34, %v1103_v36  ;;  %v1183_v41 = vsel %vm1055_vm5, %v731_v35, %v1119_v37 }
  0xd5   : > { %1278 = vst [vmem:[%s1777_s9 + $0x1a0] sm:$0xff] %v1214_v39 }
  0xd6   : > { %1231 = vst [vmem:[%s1777_s9 + $0x28] sm:$0xff] %v1167_v40 }
  0xd7   : > { %1247 = vst [vmem:[%s1777_s9 + $0xa8] sm:$0xff] %v1183_v41 }
  0xd8   : > { %v771_v42 = vpop.f32.mrf.mxu2  ;;  %v811_v43 = vpop.f32.mrf.mxu3 }
  0xd9   : > { %vm1071_vm6 = vcmp.gt.f32.partialorder %v771_v42, 0.0  ;;  %v1135_v44 = vmul.f32 0.2, %v771_v42  ;;  %vm1087_vm7 = vcmp.gt.f32.partialorder %v811_v43, 0.0  ;;  %v1151_v45 = vmul.f32 0.2, %v811_v43  ;;  %v694_v46 = vpop.f32.mrf.mxu0  ;;  %v734_v47 = vpop.f32.mrf.mxu1 }
  0xda   : > { %vm1040_vm8 = vcmp.gt.f32.partialorder %v694_v46, 0.0  ;;  %v1104_v48 = vmul.f32 0.2, %v694_v46  ;;  %vm1056_vm9 = vcmp.gt.f32.partialorder %v734_v47, 0.0  ;;  %v1120_v49 = vmul.f32 0.2, %v734_v47 }
  0xdb   : > { %v1199_v50 = vsel %vm1071_vm6, %v771_v42, %v1135_v44  ;;  %v1215_v51 = vsel %vm1087_vm7, %v811_v43, %v1151_v45 }
  0xdc   : > { %1263 = vst [vmem:[%s1777_s9 + $0x128] sm:$0xff] %v1199_v50  ;;  %v1168_v52 = vsel %vm1040_vm8, %v694_v46, %v1104_v48  ;;  %v1184_v53 = vsel %vm1056_vm9, %v734_v47, %v1120_v49 }
  0xdd   : > { %1279 = vst [vmem:[%s1777_s9 + $0x1a8] sm:$0xff] %v1215_v51 }
  0xde   : > { %1232 = vst [vmem:[%s1777_s9 + $0x30] sm:$0xff] %v1168_v52 }
  0xdf   : > { %1248 = vst [vmem:[%s1777_s9 + $0xb0] sm:$0xff] %v1184_v53 }
  0xe0   : > { %v774_v54 = vpop.f32.mrf.mxu2  ;;  %v814_v55 = vpop.f32.mrf.mxu3 }
  0xe1   : > { %vm1072_vm10 = vcmp.gt.f32.partialorder %v774_v54, 0.0  ;;  %v1136_v56 = vmul.f32 0.2, %v774_v54  ;;  %vm1088_vm11 = vcmp.gt.f32.partialorder %v814_v55, 0.0  ;;  %v1152_v57 = vmul.f32 0.2, %v814_v55  ;;  %v696_v58 = vpop.f32.mrf.mxu0  ;;  %v736_v59 = vpop.f32.mrf.mxu1 }
  0xe2   : > { %vm1041_vm12 = vcmp.gt.f32.partialorder %v696_v58, 0.0  ;;  %v1105_v60 = vmul.f32 0.2, %v696_v58  ;;  %vm1057_vm13 = vcmp.gt.f32.partialorder %v736_v59, 0.0  ;;  %v1121_v61 = vmul.f32 0.2, %v736_v59 }
  0xe3   : > { %v1200_v62 = vsel %vm1072_vm10, %v774_v54, %v1136_v56  ;;  %v1216_v63 = vsel %vm1088_vm11, %v814_v55, %v1152_v57 }
  0xe4   : > { %1264 = vst [vmem:[%s1777_s9 + $0x130] sm:$0xff] %v1200_v62  ;;  %v1169_v0 = vsel %vm1041_vm12, %v696_v58, %v1105_v60  ;;  %v1185_v1 = vsel %vm1057_vm13, %v736_v59, %v1121_v61 }
  0xe5   : > { %1280 = vst [vmem:[%s1777_s9 + $0x1b0] sm:$0xff] %v1216_v63 }
  0xe6   : > { %1233 = vst [vmem:[%s1777_s9 + $0x38] sm:$0xff] %v1169_v0 }
  0xe7   : > { %1249 = vst [vmem:[%s1777_s9 + $0xb8] sm:$0xff] %v1185_v1 }
  0xe8   : > { %v776_v2 = vpop.f32.mrf.mxu2  ;;  %v816_v3 = vpop.f32.mrf.mxu3 }
  0xe9   : > { %vm1073_vm14 = vcmp.gt.f32.partialorder %v776_v2, 0.0  ;;  %v1137_v4 = vmul.f32 0.2, %v776_v2  ;;  %vm1089_vm15 = vcmp.gt.f32.partialorder %v816_v3, 0.0  ;;  %v1153_v5 = vmul.f32 0.2, %v816_v3  ;;  %v699_v6 = vpop.f32.mrf.mxu0  ;;  %v739_v7 = vpop.f32.mrf.mxu1 }
  0xea   : > { %vm1042_vm0 = vcmp.gt.f32.partialorder %v699_v6, 0.0  ;;  %v1106_v8 = vmul.f32 0.2, %v699_v6  ;;  %vm1058_vm1 = vcmp.gt.f32.partialorder %v739_v7, 0.0  ;;  %v1122_v9 = vmul.f32 0.2, %v739_v7 }
  0xeb   : > { %v1201_v10 = vsel %vm1073_vm14, %v776_v2, %v1137_v4  ;;  %v1217_v11 = vsel %vm1089_vm15, %v816_v3, %v1153_v5 }
  0xec   : > { %1265 = vst [vmem:[%s1777_s9 + $0x138] sm:$0xff] %v1201_v10  ;;  %v1170_v12 = vsel %vm1042_vm0, %v699_v6, %v1106_v8  ;;  %v1186_v13 = vsel %vm1058_vm1, %v739_v7, %v1122_v9 }
  0xed   : > { %1281 = vst [vmem:[%s1777_s9 + $0x1b8] sm:$0xff] %v1217_v11 }
  0xee   : > { %1234 = vst [vmem:[%s1777_s9 + $0x40] sm:$0xff] %v1170_v12 }
  0xef   : > { %1250 = vst [vmem:[%s1777_s9 + $0xc0] sm:$0xff] %v1186_v13 }
  0xf0   : > { %v779_v14 = vpop.f32.mrf.mxu2  ;;  %v819_v15 = vpop.f32.mrf.mxu3 }
  0xf1   : > { %vm1074_vm2 = vcmp.gt.f32.partialorder %v779_v14, 0.0  ;;  %v1138_v16 = vmul.f32 0.2, %v779_v14  ;;  %vm1090_vm3 = vcmp.gt.f32.partialorder %v819_v15, 0.0  ;;  %v1154_v17 = vmul.f32 0.2, %v819_v15  ;;  %v701_v18 = vpop.f32.mrf.mxu0  ;;  %v741_v19 = vpop.f32.mrf.mxu1 }
  0xf2   : > { %vm1043_vm4 = vcmp.gt.f32.partialorder %v701_v18, 0.0  ;;  %v1107_v20 = vmul.f32 0.2, %v701_v18  ;;  %vm1059_vm5 = vcmp.gt.f32.partialorder %v741_v19, 0.0  ;;  %v1123_v21 = vmul.f32 0.2, %v741_v19 }
  0xf3   : > { %v1202_v22 = vsel %vm1074_vm2, %v779_v14, %v1138_v16  ;;  %v1218_v23 = vsel %vm1090_vm3, %v819_v15, %v1154_v17 }
  0xf4   : > { %1266 = vst [vmem:[%s1777_s9 + $0x140] sm:$0xff] %v1202_v22  ;;  %v1171_v24 = vsel %vm1043_vm4, %v701_v18, %v1107_v20  ;;  %v1187_v25 = vsel %vm1059_vm5, %v741_v19, %v1123_v21 }
  0xf5   : > { %1282 = vst [vmem:[%s1777_s9 + $0x1c0] sm:$0xff] %v1218_v23 }
  0xf6   : > { %1235 = vst [vmem:[%s1777_s9 + $0x48] sm:$0xff] %v1171_v24 }
  0xf7   : > { %1251 = vst [vmem:[%s1777_s9 + $0xc8] sm:$0xff] %v1187_v25 }
  0xf8   : > { %v781_v26 = vpop.f32.mrf.mxu2  ;;  %v821_v27 = vpop.f32.mrf.mxu3 }
  0xf9   : > { %vm1075_vm6 = vcmp.gt.f32.partialorder %v781_v26, 0.0  ;;  %v1139_v28 = vmul.f32 0.2, %v781_v26  ;;  %vm1091_vm7 = vcmp.gt.f32.partialorder %v821_v27, 0.0  ;;  %v1155_v29 = vmul.f32 0.2, %v821_v27  ;;  %v704_v30 = vpop.f32.mrf.mxu0  ;;  %v744_v31 = vpop.f32.mrf.mxu1 }
  0xfa   : > { %vm1044_vm8 = vcmp.gt.f32.partialorder %v704_v30, 0.0  ;;  %v1108_v32 = vmul.f32 0.2, %v704_v30  ;;  %vm1060_vm9 = vcmp.gt.f32.partialorder %v744_v31, 0.0  ;;  %v1124_v33 = vmul.f32 0.2, %v744_v31 }
  0xfb   : > { %v1203_v34 = vsel %vm1075_vm6, %v781_v26, %v1139_v28  ;;  %v1219_v35 = vsel %vm1091_vm7, %v821_v27, %v1155_v29 }
  0xfc   : > { %1267 = vst [vmem:[%s1777_s9 + $0x148] sm:$0xff] %v1203_v34  ;;  %v1172_v36 = vsel %vm1044_vm8, %v704_v30, %v1108_v32  ;;  %v1188_v37 = vsel %vm1060_vm9, %v744_v31, %v1124_v33 }
  0xfd   : > { %1283 = vst [vmem:[%s1777_s9 + $0x1c8] sm:$0xff] %v1219_v35 }
  0xfe   : > { %1236 = vst [vmem:[%s1777_s9 + $0x50] sm:$0xff] %v1172_v36 }
  0xff   : > { %1252 = vst [vmem:[%s1777_s9 + $0xd0] sm:$0xff] %v1188_v37 }
 0x100   : > { %v784_v38 = vpop.f32.mrf.mxu2  ;;  %v824_v39 = vpop.f32.mrf.mxu3 }
 0x101   : > { %vm1076_vm10 = vcmp.gt.f32.partialorder %v784_v38, 0.0  ;;  %v1140_v40 = vmul.f32 0.2, %v784_v38  ;;  %vm1092_vm11 = vcmp.gt.f32.partialorder %v824_v39, 0.0  ;;  %v1156_v41 = vmul.f32 0.2, %v824_v39  ;;  %v706_v42 = vpop.f32.mrf.mxu0  ;;  %v746_v43 = vpop.f32.mrf.mxu1 }
 0x102   : > { %vm1045_vm12 = vcmp.gt.f32.partialorder %v706_v42, 0.0  ;;  %v1109_v44 = vmul.f32 0.2, %v706_v42  ;;  %vm1061_vm13 = vcmp.gt.f32.partialorder %v746_v43, 0.0  ;;  %v1125_v45 = vmul.f32 0.2, %v746_v43 }
 0x103   : > { %v1204_v46 = vsel %vm1076_vm10, %v784_v38, %v1140_v40  ;;  %v1220_v47 = vsel %vm1092_vm11, %v824_v39, %v1156_v41 }
 0x104   : > { %1268 = vst [vmem:[%s1777_s9 + $0x150] sm:$0xff] %v1204_v46  ;;  %v1173_v48 = vsel %vm1045_vm12, %v706_v42, %v1109_v44  ;;  %v1189_v49 = vsel %vm1061_vm13, %v746_v43, %v1125_v45 }
 0x105   : > { %1284 = vst [vmem:[%s1777_s9 + $0x1d0] sm:$0xff] %v1220_v47 }
 0x106   : > { %1237 = vst [vmem:[%s1777_s9 + $0x58] sm:$0xff] %v1173_v48 }
 0x107   : > { %1253 = vst [vmem:[%s1777_s9 + $0xd8] sm:$0xff] %v1189_v49 }
 0x108   : > { %v786_v50 = vpop.f32.mrf.mxu2  ;;  %v826_v51 = vpop.f32.mrf.mxu3 }
 0x109   : > { %vm1077_vm14 = vcmp.gt.f32.partialorder %v786_v50, 0.0  ;;  %v1141_v52 = vmul.f32 0.2, %v786_v50  ;;  %vm1093_vm15 = vcmp.gt.f32.partialorder %v826_v51, 0.0  ;;  %v1157_v53 = vmul.f32 0.2, %v826_v51  ;;  %v709_v54 = vpop.f32.mrf.mxu0  ;;  %v749_v55 = vpop.f32.mrf.mxu1 }
 0x10a   : > { %vm1046_vm0 = vcmp.gt.f32.partialorder %v709_v54, 0.0  ;;  %v1110_v56 = vmul.f32 0.2, %v709_v54  ;;  %vm1062_vm1 = vcmp.gt.f32.partialorder %v749_v55, 0.0  ;;  %v1126_v57 = vmul.f32 0.2, %v749_v55 }
 0x10b   : > { %v1205_v58 = vsel %vm1077_vm14, %v786_v50, %v1141_v52  ;;  %v1221_v59 = vsel %vm1093_vm15, %v826_v51, %v1157_v53 }
 0x10c   : > { %1269 = vst [vmem:[%s1777_s9 + $0x158] sm:$0xff] %v1205_v58  ;;  %v1174_v60 = vsel %vm1046_vm0, %v709_v54, %v1110_v56  ;;  %v1190_v61 = vsel %vm1062_vm1, %v749_v55, %v1126_v57 }
 0x10d   : > { %1285 = vst [vmem:[%s1777_s9 + $0x1d8] sm:$0xff] %v1221_v59 }
 0x10e   : > { %1238 = vst [vmem:[%s1777_s9 + $0x60] sm:$0xff] %v1174_v60 }
 0x10f   : > { %1254 = vst [vmem:[%s1777_s9 + $0xe0] sm:$0xff] %v1190_v61 }
 0x110   : > { %v789_v62 = vpop.f32.mrf.mxu2  ;;  %v829_v63 = vpop.f32.mrf.mxu3 }
 0x111   : > { %vm1078_vm2 = vcmp.gt.f32.partialorder %v789_v62, 0.0  ;;  %v1142_v0 = vmul.f32 0.2, %v789_v62  ;;  %vm1094_vm3 = vcmp.gt.f32.partialorder %v829_v63, 0.0  ;;  %v1158_v1 = vmul.f32 0.2, %v829_v63  ;;  %v711_v2 = vpop.f32.mrf.mxu0  ;;  %v751_v3 = vpop.f32.mrf.mxu1 }
 0x112   : > { %vm1047_vm4 = vcmp.gt.f32.partialorder %v711_v2, 0.0  ;;  %v1111_v4 = vmul.f32 0.2, %v711_v2  ;;  %vm1063_vm5 = vcmp.gt.f32.partialorder %v751_v3, 0.0  ;;  %v1127_v5 = vmul.f32 0.2, %v751_v3 }
 0x113   : > { %v1206_v6 = vsel %vm1078_vm2, %v789_v62, %v1142_v0  ;;  %v1222_v7 = vsel %vm1094_vm3, %v829_v63, %v1158_v1 }
 0x114   : > { %1270 = vst [vmem:[%s1777_s9 + $0x160] sm:$0xff] %v1206_v6  ;;  %v1175_v8 = vsel %vm1047_vm4, %v711_v2, %v1111_v4  ;;  %v1191_v9 = vsel %vm1063_vm5, %v751_v3, %v1127_v5 }
 0x115   : > { %1286 = vst [vmem:[%s1777_s9 + $0x1e0] sm:$0xff] %v1222_v7 }
 0x116   : > { %1239 = vst [vmem:[%s1777_s9 + $0x68] sm:$0xff] %v1175_v8 }
 0x117   : > { %1255 = vst [vmem:[%s1777_s9 + $0xe8] sm:$0xff] %v1191_v9 }
 0x118   : > { %v791_v10 = vpop.f32.mrf.mxu2  ;;  %v831_v11 = vpop.f32.mrf.mxu3 }
 0x119   : > { %vm1079_vm6 = vcmp.gt.f32.partialorder %v791_v10, 0.0  ;;  %v1143_v12 = vmul.f32 0.2, %v791_v10  ;;  %vm1095_vm7 = vcmp.gt.f32.partialorder %v831_v11, 0.0  ;;  %v1159_v13 = vmul.f32 0.2, %v831_v11  ;;  %v714_v14 = vpop.f32.mrf.mxu0  ;;  %v754_v15 = vpop.f32.mrf.mxu1 }
 0x11a   : > { %vm1048_vm8 = vcmp.gt.f32.partialorder %v714_v14, 0.0  ;;  %v1112_v16 = vmul.f32 0.2, %v714_v14  ;;  %vm1064_vm9 = vcmp.gt.f32.partialorder %v754_v15, 0.0  ;;  %v1128_v17 = vmul.f32 0.2, %v754_v15 }
 0x11b   : > { %v1207_v18 = vsel %vm1079_vm6, %v791_v10, %v1143_v12  ;;  %v1223_v19 = vsel %vm1095_vm7, %v831_v11, %v1159_v13 }
 0x11c   : > { %1271 = vst [vmem:[%s1777_s9 + $0x168] sm:$0xff] %v1207_v18  ;;  %v1176_v20 = vsel %vm1048_vm8, %v714_v14, %v1112_v16  ;;  %v1192_v21 = vsel %vm1064_vm9, %v754_v15, %v1128_v17 }
 0x11d   : > { %1287 = vst [vmem:[%s1777_s9 + $0x1e8] sm:$0xff] %v1223_v19 }
 0x11e   : > { %1240 = vst [vmem:[%s1777_s9 + $0x70] sm:$0xff] %v1176_v20 }
 0x11f   : > { %1256 = vst [vmem:[%s1777_s9 + $0xf0] sm:$0xff] %v1192_v21 }
 0x120   : > { %v794_v22 = vpop.f32.mrf.mxu2  ;;  %v834_v23 = vpop.f32.mrf.mxu3 }
 0x121   : > { %vm1080_vm10 = vcmp.gt.f32.partialorder %v794_v22, 0.0  ;;  %v1144_v24 = vmul.f32 0.2, %v794_v22  ;;  %vm1096_vm11 = vcmp.gt.f32.partialorder %v834_v23, 0.0  ;;  %v1160_v25 = vmul.f32 0.2, %v834_v23  ;;  %v716_v26 = vpop.f32.mrf.mxu0  ;;  %v756_v27 = vpop.f32.mrf.mxu1 }
 0x122   : > { %vm1049_vm12 = vcmp.gt.f32.partialorder %v716_v26, 0.0  ;;  %v1113_v28 = vmul.f32 0.2, %v716_v26  ;;  %vm1065_vm13 = vcmp.gt.f32.partialorder %v756_v27, 0.0  ;;  %v1129_v29 = vmul.f32 0.2, %v756_v27 }
 0x123   : > { %v1208_v30 = vsel %vm1080_vm10, %v794_v22, %v1144_v24  ;;  %v1224_v31 = vsel %vm1096_vm11, %v834_v23, %v1160_v25 }
 0x124   : > { %1272 = vst [vmem:[%s1777_s9 + $0x170] sm:$0xff] %v1208_v30  ;;  %v1177_v32 = vsel %vm1049_vm12, %v716_v26, %v1113_v28  ;;  %v1193_v33 = vsel %vm1065_vm13, %v756_v27, %v1129_v29 }
 0x125   : > { %1288 = vst [vmem:[%s1777_s9 + $0x1f0] sm:$0xff] %v1224_v31 }
 0x126   : > { %1241 = vst [vmem:[%s1777_s9 + $0x78] sm:$0xff] %v1177_v32 }
 0x127   : > { %1257 = vst [vmem:[%s1777_s9 + $0xf8] sm:$0xff] %v1193_v33 }
 0x128   : > { %v796_v34 = vpop.f32.mrf.mxu2  ;;  %v836_v35 = vpop.f32.mrf.mxu3 }
 0x129   : > { %vm1081_vm14 = vcmp.gt.f32.partialorder %v796_v34, 0.0  ;;  %v1145_v36 = vmul.f32 0.2, %v796_v34  ;;  %vm1097_vm15 = vcmp.gt.f32.partialorder %v836_v35, 0.0  ;;  %v1161_v37 = vmul.f32 0.2, %v836_v35 }
 0x12b   : > { %v1209_v38 = vsel %vm1081_vm14, %v796_v34, %v1145_v36  ;;  %v1225_v39 = vsel %vm1097_vm15, %v836_v35, %v1161_v37 }
 0x12c   : > { %1273 = vst [vmem:[%s1777_s9 + $0x178] sm:$0xff] %v1209_v38 }
 0x12d   : > { %1289 = vst [vmem:[%s1777_s9 + $0x1f8] sm:$0xff] %v1225_v39 }
 0x12e PF: > { %s12_s11 = sadd.s32 1, %s1671_s11   ;;  %s1855_s9 = smov %s1667_s10 }
 0x12f   : > { %p9_p5 = scmp.ge.s32.totalorder %s12_s11, 7   ;;  %s1856_s10 = smov %s1858_s12 }
 0x131   :  { %11 = sbr.rel (!%p9_p5) target bundleno = 2 (0x2), region = 69 }

// kernel: patchgan_forward.10
= control target key start
LH: loop header
LB: loop body
LE: loop exit
PB: predicated region body
PF: predicated region fallthrough
CT: control target
= control target key end

     0   :  { %vm158_vm0 = vcmask 1041408   ;;  %s2302_s0 = inlined_call_operand.vmem [shape: f32[578,128], index: 0, kind: input, shape index: {}]   ;;  %s2303_s1 = inlined_call_operand.vmem [shape: f32[1,128], index: 1, kind: input, shape index: {}]   ;;  %s2304_s2 = inlined_call_operand.vmem [shape: f32[1,128], index: 2, kind: input, shape index: {}]   ;;  %s2305_s3 = inlined_call_operand.vmem [shape: f32[578,128], index: 3, kind: output, shape index: {}]  }
   0x1   :  { %v966_v0 = vld [vmem:[%s2302_s0] sm:$0xff]  ;;  %v971_v1 = vld [vmem:[%s2302_s0 + $0x8] sm:$0xff]  ;;  %v976_v2 = vld [vmem:[%s2302_s0 + $0x10] sm:$0xff] }
   0x2   :  { %v87_v3 = vadd.f32 %v971_v1, %v966_v0  ;;  %v983_v4 = vld [vmem:[%s2302_s0 + $0x18] sm:$0xff]  ;;  %v989_v6 = vld [vmem:[%s2302_s0 + $0x20] sm:$0xff]  ;;  %v995_v8 = vld [vmem:[%s2302_s0 + $0x28] sm:$0xff] }
   0x3   :  { %v1001_v10 = vld [vmem:[%s2302_s0 + $0x30] sm:$0xff]  ;;  %v1007_v12 = vld [vmem:[%s2302_s0 + $0x38] sm:$0xff]  ;;  %v1013_v14 = vld [vmem:[%s2302_s0 + $0x40] sm:$0xff] }
   0x4   :  { %v88_v5 = vadd.f32 %v87_v3, %v976_v2  ;;  %v1019_v16 = vld [vmem:[%s2302_s0 + $0x48] sm:$0xff]  ;;  %v1025_v18 = vld [vmem:[%s2302_s0 + $0x50] sm:$0xff]  ;;  %v1031_v20 = vld [vmem:[%s2302_s0 + $0x58] sm:$0xff] }
   0x5   :  { %v1037_v22 = vld [vmem:[%s2302_s0 + $0x60] sm:$0xff]  ;;  %v1043_v24 = vld [vmem:[%s2302_s0 + $0x68] sm:$0xff]  ;;  %v1049_v26 = vld [vmem:[%s2302_s0 + $0x70] sm:$0xff] }
   0x6   :  { %v89_v7 = vadd.f32 %v88_v5, %v983_v4  ;;  %v1055_v28 = vld [vmem:[%s2302_s0 + $0x78] sm:$0xff]  ;;  %v1061_v30 = vld [vmem:[%s2302_s0 + $0x80] sm:$0xff]  ;;  %v1067_v32 = vld [vmem:[%s2302_s0 + $0x88] sm:$0xff] }
   0x7   :  { %v1073_v34 = vld [vmem:[%s2302_s0 + $0x90] sm:$0xff]  ;;  %v1079_v36 = vld [vmem:[%s2302_s0 + $0x98] sm:$0xff]  ;;  %v1085_v38 = vld [vmem:[%s2302_s0 + $0xa0] sm:$0xff] }
   0x8   :  { %v90_v9 = vadd.f32 %v89_v7, %v989_v6  ;;  %v1091_v40 = vld [vmem:[%s2302_s0 + $0xa8] sm:$0xff]  ;;  %v1097_v42 = vld [vmem:[%s2302_s0 + $0xb0] sm:$0xff]  ;;  %v1103_v44 = vld [vmem:[%s2302_s0 + $0xb8] sm:$0xff] }
   0x9   :  { %v1109_v46 = vld [vmem:[%s2302_s0 + $0xc0] sm:$0xff]  ;;  %v1115_v48 = vld [vmem:[%s2302_s0 + $0xc8] sm:$0xff]  ;;  %v1121_v50 = vld [vmem:[%s2302_s0 + $0xd0] sm:$0xff] }
   0xa   :  { %v91_v11 = vadd.f32 %v90_v9, %v995_v8  ;;  %v1127_v52 = vld [vmem:[%s2302_s0 + $0xd8] sm:$0xff]  ;;  %v1133_v54 = vld [vmem:[%s2302_s0 + $0xe0] sm:$0xff]  ;;  %v1139_v56 = vld [vmem:[%s2302_s0 + $0xe8] sm:$0xff] }
   0xb   :  { %2365 = vst [vmem:[#allocation2_spill] sm:$0xff] %v1139_v56  ;;  %v1145_v58 = vld [vmem:[%s2302_s0 + $0xf0] sm:$0xff]  ;;  %v1151_v60 = vld [vmem:[%s2302_s0 + $0xf8] sm:$0xff]  ;;  %v1157_v62 = vld [vmem:[%s2302_s0 + $0x100] sm:$0xff] }
   0xc   :  { %v92_v13 = vadd.f32 %v91_v11, %v1001_v10  ;;  %2366 = vst [vmem:[#allocation3_spill] sm:$0xff] %v1145_v58  ;;  %v1163_v3 = vld [vmem:[%s2302_s0 + $0x108] sm:$0xff]  ;;  %v1169_v7 = vld [vmem:[%s2302_s0 + $0x110] sm:$0xff]  ;;  %v1175_v11 = vld [vmem:[%s2302_s0 + $0x118] sm:$0xff] }
   0xd   :  { %2367 = vst [vmem:[#allocation4_spill] sm:$0xff] %v1151_v60 }
   0xe   :  { %v93_v15 = vadd.f32 %v92_v13, %v1007_v12  ;;  %2368 = vst [vmem:[#allocation5_spill] sm:$0xff] %v1157_v62 }
   0xf   :  { %2369 = vst [vmem:[#allocation6_spill] sm:$0xff] %v1163_v3 }
  0x10   :  { %v94_v17 = vadd.f32 %v93_v15, %v1013_v14  ;;  %2370 = vst [vmem:[#allocation7_spill] sm:$0xff] %v1169_v7  ;;  %v1181_v15 = vld [vmem:[%s2302_s0 + $0x120] sm:$0xff] }
  0x11   :  { %2371 = vst [vmem:[#allocation8_spill] sm:$0xff] %v1175_v11 }
  0x12   :  { %v95_v19 = vadd.f32 %v94_v17, %v1019_v16  ;;  %2372 = vst [vmem:[#allocation9_spill] sm:$0xff] %v1181_v15 }
  0x14   :  { %v96_v21 = vadd.f32 %v95_v19, %v1025_v18  ;;  %v1187_v19 = vld [vmem:[%s2302_s0 + $0x128] sm:$0xff] }
  0x15   :  { %2373 = vst [vmem:[#allocation10_spill] sm:$0xff] %v1187_v19 }
  0x16   :  { %v97_v23 = vadd.f32 %v96_v21, %v1031_v20 }
  0x18   :  { %v98_v25 = vadd.f32 %v97_v23, %v1037_v22  ;;  %v1193_v23 = vld [vmem:[%s2302_s0 + $0x130] sm:$0xff] }
  0x19   :  { %2374 = vst [vmem:[#allocation11_spill] sm:$0xff] %v1193_v23 }
  0x1a   :  { %v99_v27 = vadd.f32 %v98_v25, %v1043_v24 }
  0x1c   :  { %v100_v29 = vadd.f32 %v99_v27, %v1049_v26  ;;  %v1199_v27 = vld [vmem:[%s2302_s0 + $0x138] sm:$0xff] }
  0x1d   :  { %2375 = vst [vmem:[#allocation12_spill] sm:$0xff] %v1199_v27 }
  0x1e   :  { %v101_v31 = vadd.f32 %v100_v29, %v1055_v28 }
  0x20   :  { %v102_v33 = vadd.f32 %v101_v31, %v1061_v30  ;;  %v1205_v31 = vld [vmem:[%s2302_s0 + $0x140] sm:$0xff] }
  0x21   :  { %2376 = vst [vmem:[#allocation13_spill] sm:$0xff] %v1205_v31 }
  0x22   :  { %v103_v35 = vadd.f32 %v102_v33, %v1067_v32 }
  0x24   :  { %v104_v37 = vadd.f32 %v103_v35, %v1073_v34  ;;  %v1211_v35 = vld [vmem:[%s2302_s0 + $0x148] sm:$0xff] }
  0x25   :  { %2377 = vst [vmem:[#allocation14_spill] sm:$0xff] %v1211_v35 }
  0x26   :  { %v105_v39 = vadd.f32 %v104_v37, %v1079_v36 }
  0x28   :  { %v106_v41 = vadd.f32 %v105_v39, %v1085_v38  ;;  %v1217_v39 = vld [vmem:[%s2302_s0 + $0x150] sm:$0xff] }
  0x29   :  { %2378 = vst [vmem:[#allocation15_spill] sm:$0xff] %v1217_v39 }
  0x2a   :  { %v107_v43 = vadd.f32 %v106_v41, %v1091_v40 }
  0x2c   :  { %v108_v45 = vadd.f32 %v107_v43, %v1097_v42  ;;  %v1223_v43 = vld [vmem:[%s2302_s0 + $0x158] sm:$0xff] }
  0x2d   :  { %2379 = vst [vmem:[#allocation16_spill] sm:$0xff] %v1223_v43 }
  0x2e   :  { %v109_v47 = vadd.f32 %v108_v45, %v1103_v44 }
  0x30   :  { %v110_v49 = vadd.f32 %v109_v47, %v1109_v46  ;;  %v1229_v47 = vld [vmem:[%s2302_s0 + $0x160] sm:$0xff] }
  0x31   :  { %2380 = vst [vmem:[#allocation17_spill] sm:$0xff] %v1229_v47 }
  0x32   :  { %v111_v51 = vadd.f32 %v110_v49, %v1115_v48 }
  0x34   :  { %v112_v53 = vadd.f32 %v111_v51, %v1121_v50  ;;  %v1235_v51 = vld [vmem:[%s2302_s0 + $0x168] sm:$0xff] }
  0x35   :  { %2381 = vst [vmem:[#allocation18_spill] sm:$0xff] %v1235_v51 }
  0x36   :  { %v113_v55 = vadd.f32 %v112_v53, %v1127_v52 }
  0x38   :  { %v114_v57 = vadd.f32 %v113_v55, %v1133_v54  ;;  %v1241_v55 = vld [vmem:[%s2302_s0 + $0x170] sm:$0xff] }
  0x39   :  { %2382 = vst [vmem:[#allocation19_spill] sm:$0xff] %v1241_v55 }
  0x3a   :  { %v115_v59 = vadd.f32 %v114_v57, %v1139_v56 }
  0x3c   :  { %v116_v61 = vadd.f32 %v115_v59, %v1145_v58  ;;  %v1247_v59 = vld [vmem:[%s2302_s0 + $0x178] sm:$0xff] }
  0x3d   :  { %2383 = vst [vmem:[#allocation20_spill] sm:$0xff] %v1247_v59 }
  0x3e   :  { %v117_v63 = vadd.f32 %v116_v61, %v1151_v60 }
  0x40   :  { %v118_v5 = vadd.f32 %v117_v63, %v1157_v62  ;;  %v1253_v63 = vld [vmem:[%s2302_s0 + $0x180] sm:$0xff] }
  0x41   :  { %2384 = vst [vmem:[#allocation21_spill] sm:$0xff] %v1253_v63 }
  0x42   :  { %v119_v9 = vadd.f32 %v118_v5, %v1163_v3 }
  0x44   :  { %v120_v13 = vadd.f32 %v119_v9, %v1169_v7  ;;  %v1259_v9 = vld [vmem:[%s2302_s0 + $0x188] sm:$0xff] }
  0x45   :  { %2385 = vst [vmem:[#allocation22_spill] sm:$0xff] %v1259_v9 }
  0x46   :  { %v121_v17 = vadd.f32 %v120_v13, %v1175_v11 }
  0x48   :  { %v122_v21 = vadd.f32 %v121_v17, %v1181_v15  ;;  %v1265_v17 = vld [vmem:[%s2302_s0 + $0x190] sm:$0xff] }
  0x49   :  { %2386 = vst [vmem:[#allocation23_spill] sm:$0xff] %v1265_v17 }
  0x4a   :  { %v123_v25 = vadd.f32 %v122_v21, %v1187_v19 }
  0x4c   :  { %v124_v29 = vadd.f32 %v123_v25, %v1193_v23  ;;  %v1271_v25 = vld [vmem:[%s2302_s0 + $0x198] sm:$0xff] }
  0x4d   :  { %2387 = vst [vmem:[#allocation24_spill] sm:$0xff] %v1271_v25 }
  0x4e   :  { %v125_v33 = vadd.f32 %v124_v29, %v1199_v27 }
  0x50   :  { %v126_v37 = vadd.f32 %v125_v33, %v1205_v31  ;;  %v1277_v33 = vld [vmem:[%s2302_s0 + $0x1a0] sm:$0xff]  ;;  %v942_v31 = vmov 578.0  }
  0x51   :  { %2388 = vst [vmem:[#allocation25_spill] sm:$0xff] %v1277_v33  ;;  %938 = vrcp.f32 %v942_v31 }
  0x52   :  { %v127_v41 = vadd.f32 %v126_v37, %v1211_v35 }
  0x54   :  { %v128_v45 = vadd.f32 %v127_v41, %v1217_v39  ;;  %v1283_v41 = vld [vmem:[%s2302_s0 + $0x1a8] sm:$0xff] }
  0x55   :  { %2389 = vst [vmem:[#allocation26_spill] sm:$0xff] %v1283_v41 }
  0x56   :  { %v129_v49 = vadd.f32 %v128_v45, %v1223_v43  ;;  %v84_v43 = vld [vmem:[%s2302_s0 + $0x230] sm:$0xff] }
  0x57   :  { %v939_v19 = vpop.eup %938 }
  0x58   :  { %v130_v53 = vadd.f32 %v129_v49, %v1229_v47  ;;  %v1289_v49 = vld [vmem:[%s2302_s0 + $0x1b0] sm:$0xff]  ;;  %v83_v47 = vld [vmem:[%s2302_s0 + $0x228] sm:$0xff]  ;;  %v168_v11 = vmul.f32 578.0, %v939_v19  ;;  %vm172_vm1 = vweird.f32 %v939_v19 }
  0x59   :  { %2390 = vst [vmem:[#allocation27_spill] sm:$0xff] %v1289_v49 }
  0x5a   :  { %v131_v57 = vadd.f32 %v130_v53, %v1235_v51  ;;  %v82_v51 = vld [vmem:[%s2302_s0 + $0x220] sm:$0xff]  ;;  %v169_v3 = vsub.f32 1.0, %v168_v11 }
  0x5c   :  { %v132_v61 = vadd.f32 %v131_v57, %v1241_v55  ;;  %v69_v57 = vld [vmem:[%s2302_s0 + $0x1b8] sm:$0xff]  ;;  %v170_v62 = vmul.f32 %v939_v19, %v169_v3 }
  0x5d   :  { %v81_v55 = vld [vmem:[%s2302_s0 + $0x218] sm:$0xff] }
  0x5e   :  { %v133_v5 = vadd.f32 %v132_v61, %v1247_v59  ;;  %v80_v59 = vld [vmem:[%s2302_s0 + $0x210] sm:$0xff]  ;;  %v171_v58 = vadd.f32 %v939_v19, %v170_v62 }
  0x60   :  { %v134_v13 = vadd.f32 %v133_v5, %v1253_v63  ;;  %v70_v5 = vld [vmem:[%s2302_s0 + $0x1c0] sm:$0xff]  ;;  %v79_v63 = vld [vmem:[%s2302_s0 + $0x208] sm:$0xff] }
  0x62   :  { %v135_v21 = vadd.f32 %v134_v13, %v1259_v9  ;;  %v78_v9 = vld [vmem:[%s2302_s0 + $0x200] sm:$0xff] }
  0x64   :  { %v136_v29 = vadd.f32 %v135_v21, %v1265_v17  ;;  %v71_v21 = vld [vmem:[%s2302_s0 + $0x1c8] sm:$0xff]  ;;  %v77_v17 = vld [vmem:[%s2302_s0 + $0x1f8] sm:$0xff] }
  0x66   :  { %v137_v37 = vadd.f32 %v136_v29, %v1271_v25  ;;  %v76_v25 = vld [vmem:[%s2302_s0 + $0x1f0] sm:$0xff] }
  0x68   :  { %v138_v45 = vadd.f32 %v137_v37, %v1277_v33  ;;  %v72_v37 = vld [vmem:[%s2302_s0 + $0x1d0] sm:$0xff]  ;;  %v75_v33 = vld [vmem:[%s2302_s0 + $0x1e8] sm:$0xff] }
  0x6a   :  { %v139_v53 = vadd.f32 %v138_v45, %v1283_v41  ;;  %v73_v41 = vld [vmem:[%s2302_s0 + $0x1d8] sm:$0xff] }
  0x6c   :  { %v140_v61 = vadd.f32 %v139_v53, %v1289_v49  ;;  %v74_v49 = vld [vmem:[%s2302_s0 + $0x1e0] sm:$0xff] }
  0x6e   :  { %v141_v13 = vadd.f32 %v140_v61, %v69_v57 }
  0x70   :  { %v142_v29 = vadd.f32 %v141_v13, %v70_v5 }
  0x72   :  { %v143_v45 = vadd.f32 %v142_v29, %v71_v21 }
  0x74   :  { %v144_v53 = vadd.f32 %v143_v45, %v72_v37 }
  0x76   :  { %v145_v61 = vadd.f32 %v144_v53, %v73_v41 }
  0x78   :  { %v146_v13 = vadd.f32 %v145_v61, %v74_v49 }
  0x7a   :  { %v147_v29 = vadd.f32 %v146_v13, %v75_v33 }
  0x7c   :  { %v148_v45 = vadd.f32 %v147_v29, %v76_v25 }
  0x7e   :  { %v149_v53 = vadd.f32 %v148_v45, %v77_v17 }
  0x80   :  { %v150_v61 = vadd.f32 %v149_v53, %v78_v9 }
  0x82   :  { %v151_v13 = vadd.f32 %v150_v61, %v79_v63  ;;  %v1344_v61 = vld [vmem:[%s2302_s0 + $0x240] sm:$0x3] }
  0x83   :  { %2391 = vst [vmem:[#allocation28_spill] sm:$0xff] %v1344_v61  ;;  %v159_v35 = vsel %vm158_vm0, %v1344_v61, 0.0 }
  0x84   :  { %v152_v29 = vadd.f32 %v151_v13, %v80_v59 }
  0x86   :  { %v153_v45 = vadd.f32 %v152_v29, %v81_v55  ;;  %v85_v29 = vld [vmem:[%s2302_s0 + $0x238] sm:$0xff] }
  0x88   :  { %v154_v53 = vadd.f32 %v153_v45, %v82_v51 }
  0x8a   :  { %v155_v13 = vadd.f32 %v154_v53, %v83_v47 }
  0x8c   :  { %v156_v39 = vadd.f32 %v155_v13, %v84_v43  ;;  %v1351_v13 = vsel %vm172_vm1, %v939_v19, %v171_v58 }
  0x8e   :  { %v157_v45 = vadd.f32 %v156_v39, %v85_v29 }
  0x90   :  { %v160_v27 = vadd.f32 %v159_v35, %v157_v45 }
  0x92   :  { %v161_v23 = vrot.slane %v160_v27, 4 }
  0x94   :  { %v162_v15 = vadd.f32 %v161_v23, %v160_v27 }
  0x96   :  { %v163_v7 = vrot.slane %v162_v15, 2 }
  0x98   :  { %v164_v53 = vadd.f32 %v163_v7, %v162_v15 }
  0x9a   :  { %v165_v60 = vrot.slane %v164_v53, 1 }
  0x9c   :  { %v166_v56 = vadd.f32 %v165_v60, %v164_v53 }
  0x9e   :  { %v1354_v61 = vmul.f32 %v1351_v13, %v166_v56 }
  0xa0   :  { %v1357_v31 = vsub.f32 %v69_v57, %v1354_v61  ;;  %v1360_v35 = vsub.f32 %v70_v5, %v1354_v61  ;;  %v1363_v23 = vsub.f32 %v71_v21, %v1354_v61  ;;  %v1366_v3 = vsub.f32 %v72_v37, %v1354_v61 }
  0xa1   :  { %v1369_v62 = vsub.f32 %v73_v41, %v1354_v61  ;;  %v1372_v58 = vsub.f32 %v74_v49, %v1354_v61  ;;  %v1375_v56 = vsub.f32 %v75_v33, %v1354_v61  ;;  %v1378_v60 = vsub.f32 %v76_v25, %v1354_v61 }
  0xa2   :  { %v1381_v7 = vsub.f32 %v77_v17, %v1354_v61  ;;  %v1384_v11 = vsub.f32 %v78_v9, %v1354_v61  ;;  %v1387_v15 = vsub.f32 %v79_v63, %v1354_v61  ;;  %v1390_v19 = vsub.f32 %v80_v59, %v1354_v61 }
  0xa3   :  { %v1393_v27 = vsub.f32 %v81_v55, %v1354_v61  ;;  %v1396_v39 = vsub.f32 %v82_v51, %v1354_v61  ;;  %v1399_v25 = vsub.f32 %v83_v47, %v1354_v61  ;;  %v1402_v17 = vsub.f32 %v84_v43, %v1354_v61 }
  0xa4   :  { %2392 = vst [vmem:[#allocation29_spill] sm:$0xff] %v1384_v11  ;;  %v1405_v9 = vsub.f32 %v85_v29, %v1354_v61  ;;  %v1409_v63 = vsub.f32 %v966_v0, %v1354_v61  ;;  %v1413_v55 = vsub.f32 %v971_v1, %v1354_v61  ;;  %v1417_v51 = vsub.f32 %v976_v2, %v1354_v61 }
  0xa5   :  { %2393 = vst [vmem:[#allocation30_spill] sm:$0xff] %v1390_v19  ;;  %v1421_v47 = vsub.f32 %v983_v4, %v1354_v61  ;;  %v1429_v0 = vsub.f32 %v989_v6, %v1354_v61  ;;  %v1435_v2 = vsub.f32 %v995_v8, %v1354_v61  ;;  %v1441_v41 = vsub.f32 %v1001_v10, %v1354_v61 }
  0xa6   :  { %2394 = vst [vmem:[#allocation31_spill] sm:$0xff] %v1393_v27  ;;  %v248_v43 = vmul.f32 %v1409_v63, %v1409_v63  ;;  %v249_v59 = vmul.f32 %v1413_v55, %v1413_v55  ;;  %v250_v1 = vmul.f32 %v1417_v51, %v1417_v51  ;;  %v1447_v57 = vsub.f32 %v1007_v12, %v1354_v61 }
  0xa7   :  { %2395 = vst [vmem:[#allocation32_spill] sm:$0xff] %v1396_v39  ;;  %v251_v4 = vmul.f32 %v1421_v47, %v1421_v47  ;;  %v252_v49 = vmul.f32 %v1429_v0, %v1429_v0  ;;  %v253_v8 = vmul.f32 %v1435_v2, %v1435_v2  ;;  %v1453_v21 = vsub.f32 %v1013_v14, %v1354_v61 }
  0xa8   :  { %2396 = vst [vmem:[#allocation33_spill] sm:$0xff] %v1399_v25  ;;  %v321_v33 = vadd.f32 %v249_v59, %v248_v43  ;;  %v254_v10 = vmul.f32 %v1441_v41, %v1441_v41  ;;  %v1459_v29 = vsub.f32 %v1019_v16, %v1354_v61  ;;  %v255_v12 = vmul.f32 %v1447_v57, %v1447_v57 }
  0xa9   :  { %2397 = vst [vmem:[#allocation34_spill] sm:$0xff] %v1402_v17  ;;  %v1465_v53 = vsub.f32 %v1025_v18, %v1354_v61  ;;  %v256_v14 = vmul.f32 %v1453_v21, %v1453_v21  ;;  %v1471_v59 = vsub.f32 %v1031_v20, %v1354_v61 }
  0xaa   :  { %2398 = vst [vmem:[#allocation35_spill] sm:$0xff] %v1405_v9  ;;  %v322_v6 = vadd.f32 %v321_v33, %v250_v1  ;;  %v257_v16 = vmul.f32 %v1459_v29, %v1459_v29 }
  0xab   :  { %v258_v18 = vmul.f32 %v1465_v53, %v1465_v53  ;;  %v259_v20 = vmul.f32 %v1471_v59, %v1471_v59 }
  0xac   :  { %v323_v5 = vadd.f32 %v322_v6, %v251_v4  ;;  %v1477_v4 = vsub.f32 %v1037_v22, %v1354_v61 }
  0xae   :  { %v324_v37 = vadd.f32 %v323_v5, %v252_v49  ;;  %v1483_v49 = vsub.f32 %v1043_v24, %v1354_v61  ;;  %v260_v22 = vmul.f32 %v1477_v4, %v1477_v4 }
  0xb0   :  { %v325_v45 = vadd.f32 %v324_v37, %v253_v8  ;;  %v1489_v8 = vsub.f32 %v1049_v26, %v1354_v61  ;;  %v261_v24 = vmul.f32 %v1483_v49, %v1483_v49 }
  0xb2   :  { %v326_v43 = vadd.f32 %v325_v45, %v254_v10  ;;  %v1495_v10 = vsub.f32 %v1055_v28, %v1354_v61  ;;  %v262_v26 = vmul.f32 %v1489_v8, %v1489_v8 }
  0xb4   :  { %v327_v1 = vadd.f32 %v326_v43, %v255_v12  ;;  %v1501_v12 = vsub.f32 %v1061_v30, %v1354_v61  ;;  %v263_v28 = vmul.f32 %v1495_v10, %v1495_v10 }
  0xb6   :  { %v328_v33 = vadd.f32 %v327_v1, %v256_v14  ;;  %v1507_v14 = vsub.f32 %v1067_v32, %v1354_v61  ;;  %v264_v30 = vmul.f32 %v1501_v12, %v1501_v12 }
  0xb8   :  { %v329_v6 = vadd.f32 %v328_v33, %v257_v16  ;;  %v1513_v16 = vsub.f32 %v1073_v34, %v1354_v61  ;;  %v265_v32 = vmul.f32 %v1507_v14, %v1507_v14 }
  0xba   :  { %v330_v5 = vadd.f32 %v329_v6, %v258_v18  ;;  %v1519_v18 = vsub.f32 %v1079_v36, %v1354_v61  ;;  %v266_v34 = vmul.f32 %v1513_v16, %v1513_v16 }
  0xbc   :  { %v331_v37 = vadd.f32 %v330_v5, %v259_v20  ;;  %v1525_v20 = vsub.f32 %v1085_v38, %v1354_v61  ;;  %v267_v36 = vmul.f32 %v1519_v18, %v1519_v18 }
  0xbe   :  { %v332_v45 = vadd.f32 %v331_v37, %v260_v22  ;;  %v1531_v22 = vsub.f32 %v1091_v40, %v1354_v61  ;;  %v268_v38 = vmul.f32 %v1525_v20, %v1525_v20 }
  0xc0   :  { %v333_v43 = vadd.f32 %v332_v45, %v261_v24  ;;  %v1537_v24 = vsub.f32 %v1097_v42, %v1354_v61  ;;  %v269_v40 = vmul.f32 %v1531_v22, %v1531_v22 }
  0xc2   :  { %v334_v1 = vadd.f32 %v333_v43, %v262_v26  ;;  %v1543_v26 = vsub.f32 %v1103_v44, %v1354_v61  ;;  %v270_v42 = vmul.f32 %v1537_v24, %v1537_v24 }
  0xc4   :  { %v335_v33 = vadd.f32 %v334_v1, %v263_v28  ;;  %v1549_v28 = vsub.f32 %v1109_v46, %v1354_v61  ;;  %v271_v44 = vmul.f32 %v1543_v26, %v1543_v26 }
  0xc6   :  { %v336_v6 = vadd.f32 %v335_v33, %v264_v30  ;;  %v1555_v30 = vsub.f32 %v1115_v48, %v1354_v61  ;;  %v272_v46 = vmul.f32 %v1549_v28, %v1549_v28 }
  0xc8   :  { %v337_v5 = vadd.f32 %v336_v6, %v265_v32  ;;  %v1561_v32 = vsub.f32 %v1121_v50, %v1354_v61  ;;  %v273_v48 = vmul.f32 %v1555_v30, %v1555_v30 }
  0xca   :  { %v338_v37 = vadd.f32 %v337_v5, %v266_v34  ;;  %v1567_v34 = vsub.f32 %v1127_v52, %v1354_v61  ;;  %v274_v50 = vmul.f32 %v1561_v32, %v1561_v32 }
  0xcc   :  { %v339_v45 = vadd.f32 %v338_v37, %v267_v36  ;;  %v1573_v36 = vsub.f32 %v1133_v54, %v1354_v61  ;;  %v275_v52 = vmul.f32 %v1567_v34, %v1567_v34 }
  0xce   :  { %v340_v43 = vadd.f32 %v339_v45, %v268_v38  ;;  %2399 = vst [vmem:[#allocation36_spill] sm:$0xff] %v1573_v36  ;;  %v2400_v38 = vld [vmem:[#allocation2_spill] sm:$0xff]  ;;  %v2402_v45 = vld [vmem:[#allocation3_spill] sm:$0xff]  ;;  %v276_v54 = vmul.f32 %v1573_v36, %v1573_v36 }
  0xcf   :  { %v1579_v37 = vsub.f32 %v2400_v38, %v1354_v61 }
  0xd0   :  { %v341_v1 = vadd.f32 %v340_v43, %v269_v40 }
  0xd1   :  { %2401 = vst [vmem:[#allocation2_spill] sm:$0xff] %v1579_v37 }
  0xd2   :  { %v342_v33 = vadd.f32 %v341_v1, %v270_v42  ;;  %v1585_v42 = vsub.f32 %v2402_v45, %v1354_v61  ;;  %v2408_v45 = vld [vmem:[#allocation6_spill] sm:$0xff] }
  0xd3   :  { %v1603_v36 = vsub.f32 %v2408_v45, %v1354_v61  ;;  %v2414_v45 = vld [vmem:[#allocation9_spill] sm:$0xff] }
  0xd4   :  { %v343_v6 = vadd.f32 %v342_v33, %v271_v44  ;;  %2403 = vst [vmem:[#allocation3_spill] sm:$0xff] %v1585_v42  ;;  %v2404_v44 = vld [vmem:[#allocation4_spill] sm:$0xff] }
  0xd5   :  { %v1591_v1 = vsub.f32 %v2404_v44, %v1354_v61  ;;  %2409 = vst [vmem:[#allocation6_spill] sm:$0xff] %v1603_v36  ;;  %v2410_v44 = vld [vmem:[#allocation7_spill] sm:$0xff] }
  0xd6   :  { %v344_v5 = vadd.f32 %v343_v6, %v272_v46  ;;  %v277_v46 = vmul.f32 %v1579_v37, %v1579_v37  ;;  %v2406_v6 = vld [vmem:[#allocation5_spill] sm:$0xff]  ;;  %v1609_v37 = vsub.f32 %v2410_v44, %v1354_v61  ;;  %v2416_v44 = vld [vmem:[#allocation10_spill] sm:$0xff] }
  0xd7   :  { %2405 = vst [vmem:[#allocation4_spill] sm:$0xff] %v1591_v1  ;;  %v1597_v38 = vsub.f32 %v2406_v6, %v1354_v61  ;;  %v2412_v6 = vld [vmem:[#allocation8_spill] sm:$0xff] }
  0xd8   :  { %v345_v40 = vadd.f32 %v344_v5, %v273_v48  ;;  %v278_v48 = vmul.f32 %v1585_v42, %v1585_v42  ;;  %2411 = vst [vmem:[#allocation7_spill] sm:$0xff] %v1609_v37  ;;  %v1615_v42 = vsub.f32 %v2412_v6, %v1354_v61  ;;  %v2418_v6 = vld [vmem:[#allocation11_spill] sm:$0xff] }
  0xd9   :  { %2407 = vst [vmem:[#allocation5_spill] sm:$0xff] %v1597_v38 }
  0xda   :  { %v346_v43 = vadd.f32 %v345_v40, %v274_v50  ;;  %v279_v50 = vmul.f32 %v1591_v1, %v1591_v1  ;;  %2413 = vst [vmem:[#allocation8_spill] sm:$0xff] %v1615_v42  ;;  %v1621_v1 = vsub.f32 %v2414_v45, %v1354_v61  ;;  %v2420_v45 = vld [vmem:[#allocation12_spill] sm:$0xff] }
  0xdc   :  { %v347_v33 = vadd.f32 %v346_v43, %v275_v52  ;;  %v280_v52 = vmul.f32 %v1597_v38, %v1597_v38  ;;  %2415 = vst [vmem:[#allocation9_spill] sm:$0xff] %v1621_v1  ;;  %v1627_v38 = vsub.f32 %v2416_v44, %v1354_v61  ;;  %v2422_v44 = vld [vmem:[#allocation13_spill] sm:$0xff] }
  0xde   :  { %v348_v5 = vadd.f32 %v347_v33, %v276_v54  ;;  %v281_v54 = vmul.f32 %v1603_v36, %v1603_v36  ;;  %2417 = vst [vmem:[#allocation10_spill] sm:$0xff] %v1627_v38  ;;  %v1633_v36 = vsub.f32 %v2418_v6, %v1354_v61  ;;  %v2424_v6 = vld [vmem:[#allocation14_spill] sm:$0xff] }
  0xe0   :  { %v349_v40 = vadd.f32 %v348_v5, %v277_v46  ;;  %v282_v46 = vmul.f32 %v1609_v37, %v1609_v37  ;;  %2419 = vst [vmem:[#allocation11_spill] sm:$0xff] %v1633_v36  ;;  %v1639_v37 = vsub.f32 %v2420_v45, %v1354_v61  ;;  %v2426_v45 = vld [vmem:[#allocation15_spill] sm:$0xff] }
  0xe2   :  { %v350_v43 = vadd.f32 %v349_v40, %v278_v48  ;;  %v283_v48 = vmul.f32 %v1615_v42, %v1615_v42  ;;  %2421 = vst [vmem:[#allocation12_spill] sm:$0xff] %v1639_v37  ;;  %v1645_v42 = vsub.f32 %v2422_v44, %v1354_v61  ;;  %v2428_v44 = vld [vmem:[#allocation16_spill] sm:$0xff] }
  0xe4   :  { %v351_v33 = vadd.f32 %v350_v43, %v279_v50  ;;  %v284_v50 = vmul.f32 %v1621_v1, %v1621_v1  ;;  %2423 = vst [vmem:[#allocation13_spill] sm:$0xff] %v1645_v42  ;;  %v1651_v1 = vsub.f32 %v2424_v6, %v1354_v61  ;;  %v2430_v6 = vld [vmem:[#allocation17_spill] sm:$0xff] }
  0xe6   :  { %v352_v5 = vadd.f32 %v351_v33, %v280_v52  ;;  %v285_v52 = vmul.f32 %v1627_v38, %v1627_v38  ;;  %2425 = vst [vmem:[#allocation14_spill] sm:$0xff] %v1651_v1  ;;  %v1657_v38 = vsub.f32 %v2426_v45, %v1354_v61  ;;  %v2432_v45 = vld [vmem:[#allocation18_spill] sm:$0xff] }
  0xe8   :  { %v353_v40 = vadd.f32 %v352_v5, %v281_v54  ;;  %v286_v54 = vmul.f32 %v1633_v36, %v1633_v36  ;;  %2427 = vst [vmem:[#allocation15_spill] sm:$0xff] %v1657_v38  ;;  %v1663_v36 = vsub.f32 %v2428_v44, %v1354_v61  ;;  %v2434_v44 = vld [vmem:[#allocation19_spill] sm:$0xff] }
  0xea   :  { %v354_v43 = vadd.f32 %v353_v40, %v282_v46  ;;  %v287_v46 = vmul.f32 %v1639_v37, %v1639_v37  ;;  %2429 = vst [vmem:[#allocation16_spill] sm:$0xff] %v1663_v36  ;;  %v1669_v37 = vsub.f32 %v2430_v6, %v1354_v61  ;;  %v2436_v6 = vld [vmem:[#allocation20_spill] sm:$0xff] }
  0xec   :  { %v355_v33 = vadd.f32 %v354_v43, %v283_v48  ;;  %v288_v48 = vmul.f32 %v1645_v42, %v1645_v42  ;;  %2431 = vst [vmem:[#allocation17_spill] sm:$0xff] %v1669_v37  ;;  %v1675_v42 = vsub.f32 %v2432_v45, %v1354_v61  ;;  %v2438_v45 = vld [vmem:[#allocation21_spill] sm:$0xff] }
  0xee   :  { %v356_v5 = vadd.f32 %v355_v33, %v284_v50  ;;  %v289_v50 = vmul.f32 %v1651_v1, %v1651_v1  ;;  %2433 = vst [vmem:[#allocation18_spill] sm:$0xff] %v1675_v42  ;;  %v1681_v1 = vsub.f32 %v2434_v44, %v1354_v61  ;;  %v2440_v44 = vld [vmem:[#allocation22_spill] sm:$0xff] }
  0xf0   :  { %v357_v40 = vadd.f32 %v356_v5, %v285_v52  ;;  %v290_v52 = vmul.f32 %v1657_v38, %v1657_v38  ;;  %2435 = vst [vmem:[#allocation19_spill] sm:$0xff] %v1681_v1  ;;  %v1687_v38 = vsub.f32 %v2436_v6, %v1354_v61  ;;  %v2442_v6 = vld [vmem:[#allocation23_spill] sm:$0xff] }
  0xf2   :  { %v358_v43 = vadd.f32 %v357_v40, %v286_v54  ;;  %v291_v54 = vmul.f32 %v1663_v36, %v1663_v36  ;;  %2437 = vst [vmem:[#allocation20_spill] sm:$0xff] %v1687_v38  ;;  %v1693_v36 = vsub.f32 %v2438_v45, %v1354_v61  ;;  %v2443_v45 = vld [vmem:[#allocation24_spill] sm:$0xff] }
  0xf4   :  { %v359_v33 = vadd.f32 %v358_v43, %v287_v46  ;;  %v292_v46 = vmul.f32 %v1669_v37, %v1669_v37  ;;  %2439 = vst [vmem:[#allocation21_spill] sm:$0xff] %v1693_v36  ;;  %v1699_v37 = vsub.f32 %v2440_v44, %v1354_v61  ;;  %v2445_v44 = vld [vmem:[#allocation25_spill] sm:$0xff] }
  0xf6   :  { %v360_v5 = vadd.f32 %v359_v33, %v288_v48  ;;  %v293_v48 = vmul.f32 %v1675_v42, %v1675_v42  ;;  %2441 = vst [vmem:[#allocation22_spill] sm:$0xff] %v1699_v37  ;;  %v1705_v42 = vsub.f32 %v2442_v6, %v1354_v61  ;;  %v2447_v6 = vld [vmem:[#allocation26_spill] sm:$0xff] }
  0xf8   :  { %v361_v40 = vadd.f32 %v360_v5, %v289_v50  ;;  %v294_v50 = vmul.f32 %v1681_v1, %v1681_v1  ;;  %v1711_v1 = vsub.f32 %v2443_v45, %v1354_v61  ;;  %v2448_v45 = vld [vmem:[#allocation27_spill] sm:$0xff] }
  0xfa   :  { %v362_v43 = vadd.f32 %v361_v40, %v290_v52  ;;  %v295_v52 = vmul.f32 %v1687_v38, %v1687_v38  ;;  %2444 = vst [vmem:[#allocation23_spill] sm:$0xff] %v1711_v1  ;;  %v1717_v38 = vsub.f32 %v2445_v44, %v1354_v61 }
  0xfc   :  { %v363_v33 = vadd.f32 %v362_v43, %v291_v54  ;;  %v296_v54 = vmul.f32 %v1693_v36, %v1693_v36  ;;  %2446 = vst [vmem:[#allocation24_spill] sm:$0xff] %v1717_v38  ;;  %v1723_v36 = vsub.f32 %v2447_v6, %v1354_v61 }
  0xfe   :  { %v364_v5 = vadd.f32 %v363_v33, %v292_v46  ;;  %v297_v46 = vmul.f32 %v1699_v37, %v1699_v37  ;;  %v1729_v37 = vsub.f32 %v2448_v45, %v1354_v61  ;;  %v301_v44 = vmul.f32 %v1723_v36, %v1723_v36 }
 0x100   :  { %v365_v40 = vadd.f32 %v364_v5, %v293_v48  ;;  %v298_v48 = vmul.f32 %v1705_v42, %v1705_v42 }
 0x102   :  { %v366_v43 = vadd.f32 %v365_v40, %v294_v50  ;;  %v299_v50 = vmul.f32 %v1711_v1, %v1711_v1  ;;  %v303_v1 = vmul.f32 %v1357_v31, %v1357_v31 }
 0x104   :  { %v367_v33 = vadd.f32 %v366_v43, %v295_v52  ;;  %v300_v52 = vmul.f32 %v1717_v38, %v1717_v38  ;;  %v305_v38 = vmul.f32 %v1363_v23, %v1363_v23 }
 0x106   :  { %v368_v5 = vadd.f32 %v367_v33, %v296_v54  ;;  %v302_v33 = vmul.f32 %v1729_v37, %v1729_v37 }
 0x108   :  { %v369_v40 = vadd.f32 %v368_v5, %v297_v46  ;;  %v304_v5 = vmul.f32 %v1360_v35, %v1360_v35 }
 0x10a   :  { %v370_v43 = vadd.f32 %v369_v40, %v298_v48  ;;  %v306_v40 = vmul.f32 %v1366_v3, %v1366_v3 }
 0x10c   :  { %v371_v54 = vadd.f32 %v370_v43, %v299_v50  ;;  %v307_v43 = vmul.f32 %v1369_v62, %v1369_v62 }
 0x10e   :  { %v372_v6 = vadd.f32 %v371_v54, %v300_v52  ;;  %v308_v54 = vmul.f32 %v1372_v58, %v1372_v58 }
 0x110   :  { %v373_v46 = vadd.f32 %v372_v6, %v301_v44  ;;  %v309_v6 = vmul.f32 %v1375_v56, %v1375_v56 }
 0x112   :  { %v374_v45 = vadd.f32 %v373_v46, %v302_v33  ;;  %v310_v46 = vmul.f32 %v1378_v60, %v1378_v60 }
 0x114   :  { %v375_v48 = vadd.f32 %v374_v45, %v303_v1  ;;  %v311_v45 = vmul.f32 %v1381_v7, %v1381_v7 }
 0x116   :  { %v376_v50 = vadd.f32 %v375_v48, %v304_v5  ;;  %v312_v48 = vmul.f32 %v1384_v11, %v1384_v11 }
 0x118   :  { %v377_v52 = vadd.f32 %v376_v50, %v305_v38  ;;  %v313_v50 = vmul.f32 %v1387_v15, %v1387_v15 }
 0x11a   :  { %v378_v44 = vadd.f32 %v377_v52, %v306_v40  ;;  %v314_v52 = vmul.f32 %v1390_v19, %v1390_v19 }
 0x11c   :  { %v379_v33 = vadd.f32 %v378_v44, %v307_v43  ;;  %v315_v44 = vmul.f32 %v1393_v27, %v1393_v27 }
 0x11e   :  { %v380_v1 = vadd.f32 %v379_v33, %v308_v54  ;;  %v316_v33 = vmul.f32 %v1396_v39, %v1396_v39 }
 0x120   :  { %v381_v5 = vadd.f32 %v380_v1, %v309_v6  ;;  %v2449_v1 = vld [vmem:[#allocation28_spill] sm:$0xff] }
 0x121   :  { %v1767_v11 = vsub.f32 %v2449_v1, %v1354_v61 }
 0x122   :  { %v382_v38 = vadd.f32 %v381_v5, %v310_v46  ;;  %v317_v46 = vmul.f32 %v1399_v25, %v1399_v25  ;;  %v318_v5 = vmul.f32 %v1402_v17, %v1402_v17 }
 0x123   :  { %2450 = vst [vmem:[#allocation25_spill] sm:$0xff] %v1767_v11 }
 0x124   :  { %v383_v40 = vadd.f32 %v382_v38, %v311_v45  ;;  %v320_v38 = vmul.f32 %v1767_v11, %v1767_v11 }
 0x126   :  { %v384_v43 = vadd.f32 %v383_v40, %v312_v48 }
 0x128   :  { %v385_v54 = vadd.f32 %v384_v43, %v313_v50  ;;  %v319_v50 = vmul.f32 %v1405_v9, %v1405_v9  ;;  %v392_v43 = vsel %vm158_vm0, %v320_v38, 0.0 }
 0x12a   :  { %v386_v6 = vadd.f32 %v385_v54, %v314_v52 }
 0x12c   :  { %v387_v45 = vadd.f32 %v386_v6, %v315_v44 }
 0x12e   :  { %v388_v48 = vadd.f32 %v387_v45, %v316_v33 }
 0x130   :  { %v389_v40 = vadd.f32 %v388_v48, %v317_v46  ;;  %v1782_v48 = vld [vmem:[%s2303_s1] ss:$0 sm:$0xff] }
 0x132   :  { %v390_v52 = vadd.f32 %v389_v40, %v318_v5 }
 0x134   :  { %v391_v61 = vadd.f32 %v390_v52, %v319_v50 }
 0x136   :  { %v393_v54 = vadd.f32 %v392_v43, %v391_v61 }
 0x138   :  { %v394_v1 = vrot.slane %v393_v54, 4 }
 0x13a   :  { %v395_v39 = vadd.f32 %v394_v1, %v393_v54 }
 0x13c   :  { %v396_v25 = vrot.slane %v395_v39, 2 }
 0x13e   :  { %v397_v44 = vadd.f32 %v396_v25, %v395_v39 }
 0x140   :  { %v398_v6 = vrot.slane %v397_v44, 1 }
 0x142   :  { %v399_v27 = vadd.f32 %v398_v6, %v397_v44 }
 0x144   :  { %v400_v33 = vmul.f32 %v399_v27, %v1351_v13  ;;  %v1791_v27 = vld [vmem:[%s2304_s2] ss:$0 sm:$0xff] }
 0x146   :  { %v401_v45 = vadd.f32 1e-05, %v400_v33 }
 0x148   :  { %940 = vrsqrt.f32 %v401_v45  ;;  %vm408_vm2 = vweird.f32 %v401_v45 }
 0x14e   :  { %v941_v11 = vpop.eup %940 }
 0x14f   :  { %v403_v17 = vmul.f32 %v941_v11, %v401_v45  ;;  %vm409_vm3 = vweird.f32 %v941_v11 }
 0x150   :  { %vm410_vm4 = vmor %vm408_vm2, %vm409_vm3 }
 0x151   :  { %v404_v19 = vmul.f32 %v941_v11, %v403_v17 }
 0x153   :  { %v405_v9 = vmul.f32 0.5, %v404_v19 }
 0x155   :  { %v406_v46 = vsub.f32 1.5, %v405_v9 }
 0x157   :  { %v407_v5 = vmul.f32 %v941_v11, %v406_v46 }
 0x159   :  { %v1784_v39 = vsel %vm410_vm4, %v941_v11, %v407_v5 }
 0x15a   :  { %v412_v13 = vmul.f32 %v1784_v39, %v1409_v63  ;;  %v413_v19 = vmul.f32 %v1784_v39, %v1413_v55  ;;  %v414_v25 = vmul.f32 %v1784_v39, %v1417_v51  ;;  %v415_v17 = vmul.f32 %v1784_v39, %v1421_v47 }
 0x15b   :  { %v416_v11 = vmul.f32 %v1784_v39, %v1429_v0  ;;  %v417_v9 = vmul.f32 %v1784_v39, %v1435_v2  ;;  %v418_v63 = vmul.f32 %v1784_v39, %v1441_v41  ;;  %v419_v38 = vmul.f32 %v1784_v39, %v1447_v57 }
 0x15c   :  { %v489_v55 = vmul.f32 %v1782_v48, %v412_v13  ;;  %v490_v50 = vmul.f32 %v1782_v48, %v413_v19  ;;  %v491_v51 = vmul.f32 %v1782_v48, %v414_v25  ;;  %v492_v47 = vmul.f32 %v1782_v48, %v415_v17 }
 0x15d   :  { %v493_v40 = vmul.f32 %v1782_v48, %v416_v11  ;;  %v494_v0 = vmul.f32 %v1782_v48, %v417_v9  ;;  %v495_v2 = vmul.f32 %v1782_v48, %v418_v63  ;;  %v496_v52 = vmul.f32 %v1782_v48, %v419_v38 }
 0x15e   :  { %v566_v41 = vadd.f32 %v1791_v27, %v489_v55  ;;  %v567_v57 = vadd.f32 %v1791_v27, %v490_v50  ;;  %v568_v43 = vadd.f32 %v1791_v27, %v491_v51  ;;  %v569_v61 = vadd.f32 %v1791_v27, %v492_v47 }
 0x15f   :  { %v570_v54 = vadd.f32 %v1791_v27, %v493_v40  ;;  %v571_v1 = vadd.f32 %v1791_v27, %v494_v0  ;;  %v572_v44 = vadd.f32 %v1791_v27, %v495_v2  ;;  %v573_v6 = vadd.f32 %v1791_v27, %v496_v52 }
 0x160   :  { %vm639_vm5 = vcmp.gt.f32.partialorder %v566_v41, 0.0  ;;  %v712_v33 = vmul.f32 0.2, %v566_v41  ;;  %vm640_vm6 = vcmp.gt.f32.partialorder %v567_v57, 0.0  ;;  %v713_v45 = vmul.f32 0.2, %v567_v57 }
 0x161   :  { %vm641_vm7 = vcmp.gt.f32.partialorder %v568_v43, 0.0  ;;  %v714_v46 = vmul.f32 0.2, %v568_v43  ;;  %vm642_vm8 = vcmp.gt.f32.partialorder %v569_v61, 0.0  ;;  %v715_v5 = vmul.f32 0.2, %v569_v61 }
 0x162   :  { %v785_v13 = vsel %vm639_vm5, %v566_v41, %v712_v33  ;;  %v786_v19 = vsel %vm640_vm6, %v567_v57, %v713_v45  ;;  %vm643_vm9 = vcmp.gt.f32.partialorder %v570_v54, 0.0  ;;  %v716_v25 = vmul.f32 0.2, %v570_v54 }
 0x163   :  { %858 = vst [vmem:[%s2305_s3] sm:$0xff] %v785_v13  ;;  %v787_v17 = vsel %vm641_vm7, %v568_v43, %v714_v46  ;;  %v788_v11 = vsel %vm642_vm8, %v569_v61, %v715_v5  ;;  %vm644_vm10 = vcmp.gt.f32.partialorder %v571_v1, 0.0  ;;  %v717_v9 = vmul.f32 0.2, %v571_v1 }
 0x164   :  { %859 = vst [vmem:[%s2305_s3 + $0x8] sm:$0xff] %v786_v19  ;;  %v789_v63 = vsel %vm643_vm9, %v570_v54, %v716_v25  ;;  %vm645_vm11 = vcmp.gt.f32.partialorder %v572_v44, 0.0  ;;  %v718_v38 = vmul.f32 0.2, %v572_v44  ;;  %vm646_vm12 = vcmp.gt.f32.partialorder %v573_v6, 0.0 }
 0x165   :  { %860 = vst [vmem:[%s2305_s3 + $0x10] sm:$0xff] %v787_v17  ;;  %v790_v55 = vsel %vm644_vm10, %v571_v1, %v717_v9  ;;  %v719_v50 = vmul.f32 0.2, %v573_v6  ;;  %v420_v51 = vmul.f32 %v1784_v39, %v1453_v21  ;;  %v421_v47 = vmul.f32 %v1784_v39, %v1459_v29 }
 0x166   :  { %861 = vst [vmem:[%s2305_s3 + $0x18] sm:$0xff] %v788_v11  ;;  %v791_v40 = vsel %vm645_vm11, %v572_v44, %v718_v38  ;;  %v422_v0 = vmul.f32 %v1784_v39, %v1465_v53  ;;  %v423_v2 = vmul.f32 %v1784_v39, %v1471_v59  ;;  %v424_v52 = vmul.f32 %v1784_v39, %v1477_v4 }
 0x167   :  { %862 = vst [vmem:[%s2305_s3 + $0x20] sm:$0xff] %v789_v63  ;;  %v792_v21 = vsel %vm646_vm12, %v573_v6, %v719_v50  ;;  %v497_v29 = vmul.f32 %v1782_v48, %v420_v51  ;;  %v498_v41 = vmul.f32 %v1782_v48, %v421_v47  ;;  %v425_v57 = vmul.f32 %v1784_v39, %v1483_v49 }
 0x168   :  { %863 = vst [vmem:[%s2305_s3 + $0x28] sm:$0xff] %v790_v55  ;;  %v499_v53 = vmul.f32 %v1782_v48, %v422_v0  ;;  %v500_v59 = vmul.f32 %v1782_v48, %v423_v2  ;;  %v501_v4 = vmul.f32 %v1782_v48, %v424_v52  ;;  %v426_v43 = vmul.f32 %v1784_v39, %v1489_v8 }
 0x169   :  { %864 = vst [vmem:[%s2305_s3 + $0x30] sm:$0xff] %v791_v40  ;;  %v574_v61 = vadd.f32 %v1791_v27, %v497_v29  ;;  %v575_v49 = vadd.f32 %v1791_v27, %v498_v41  ;;  %v502_v54 = vmul.f32 %v1782_v48, %v425_v57  ;;  %v427_v1 = vmul.f32 %v1784_v39, %v1495_v10 }
 0x16a   :  { %865 = vst [vmem:[%s2305_s3 + $0x38] sm:$0xff] %v792_v21  ;;  %v576_v44 = vadd.f32 %v1791_v27, %v499_v53  ;;  %v577_v8 = vadd.f32 %v1791_v27, %v500_v59  ;;  %v578_v6 = vadd.f32 %v1791_v27, %v501_v4  ;;  %v503_v33 = vmul.f32 %v1782_v48, %v426_v43 }
 0x16b   :  { %vm647_vm13 = vcmp.gt.f32.partialorder %v574_v61, 0.0  ;;  %v720_v45 = vmul.f32 0.2, %v574_v61  ;;  %vm648_vm14 = vcmp.gt.f32.partialorder %v575_v49, 0.0  ;;  %v721_v46 = vmul.f32 0.2, %v575_v49 }
 0x16c   :  { %vm649_vm15 = vcmp.gt.f32.partialorder %v576_v44, 0.0  ;;  %v722_v5 = vmul.f32 0.2, %v576_v44  ;;  %vm650_vm0 = vcmp.gt.f32.partialorder %v577_v8, 0.0  ;;  %v723_v10 = vmul.f32 0.2, %v577_v8 }
 0x16d   :  { %v793_v13 = vsel %vm647_vm13, %v574_v61, %v720_v45  ;;  %v794_v19 = vsel %vm648_vm14, %v575_v49, %v721_v46  ;;  %vm651_vm1 = vcmp.gt.f32.partialorder %v578_v6, 0.0  ;;  %v724_v25 = vmul.f32 0.2, %v578_v6 }
 0x16e   :  { %866 = vst [vmem:[%s2305_s3 + $0x40] sm:$0xff] %v793_v13  ;;  %v795_v17 = vsel %vm649_vm15, %v576_v44, %v722_v5  ;;  %v796_v11 = vsel %vm650_vm0, %v577_v8, %v723_v10  ;;  %v579_v9 = vadd.f32 %v1791_v27, %v502_v54  ;;  %v580_v63 = vadd.f32 %v1791_v27, %v503_v33 }
 0x16f   :  { %867 = vst [vmem:[%s2305_s3 + $0x48] sm:$0xff] %v794_v19  ;;  %v797_v38 = vsel %vm651_vm1, %v578_v6, %v724_v25  ;;  %v504_v55 = vmul.f32 %v1782_v48, %v427_v1  ;;  %v428_v50 = vmul.f32 %v1784_v39, %v1501_v12  ;;  %v429_v51 = vmul.f32 %v1784_v39, %v1507_v14 }
 0x170   :  { %868 = vst [vmem:[%s2305_s3 + $0x50] sm:$0xff] %v795_v17  ;;  %vm652_vm2 = vcmp.gt.f32.partialorder %v579_v9, 0.0  ;;  %v725_v47 = vmul.f32 0.2, %v579_v9  ;;  %vm653_vm3 = vcmp.gt.f32.partialorder %v580_v63, 0.0  ;;  %v430_v40 = vmul.f32 %v1784_v39, %v1513_v16 }
 0x171   :  { %869 = vst [vmem:[%s2305_s3 + $0x58] sm:$0xff] %v796_v11  ;;  %v726_v0 = vmul.f32 0.2, %v580_v63  ;;  %v581_v12 = vadd.f32 %v1791_v27, %v504_v55  ;;  %v505_v2 = vmul.f32 %v1782_v48, %v428_v50  ;;  %v506_v14 = vmul.f32 %v1782_v48, %v429_v51 }
 0x172   :  { %870 = vst [vmem:[%s2305_s3 + $0x60] sm:$0xff] %v797_v38  ;;  %v798_v52 = vsel %vm652_vm2, %v579_v9, %v725_v47  ;;  %v507_v21 = vmul.f32 %v1782_v48, %v430_v40  ;;  %v431_v16 = vmul.f32 %v1784_v39, %v1519_v18  ;;  %v432_v29 = vmul.f32 %v1784_v39, %v1525_v20 }
 0x173   :  { %871 = vst [vmem:[%s2305_s3 + $0x68] sm:$0xff] %v798_v52  ;;  %v799_v41 = vsel %vm653_vm3, %v580_v63, %v726_v0  ;;  %vm654_vm4 = vcmp.gt.f32.partialorder %v581_v12, 0.0  ;;  %v727_v57 = vmul.f32 0.2, %v581_v12  ;;  %v582_v53 = vadd.f32 %v1791_v27, %v505_v2 }
 0x174   :  { %872 = vst [vmem:[%s2305_s3 + $0x70] sm:$0xff] %v799_v41  ;;  %v583_v59 = vadd.f32 %v1791_v27, %v506_v14  ;;  %v584_v18 = vadd.f32 %v1791_v27, %v507_v21  ;;  %v508_v4 = vmul.f32 %v1782_v48, %v431_v16  ;;  %v509_v20 = vmul.f32 %v1782_v48, %v432_v29 }
 0x175   :  { %v800_v43 = vsel %vm654_vm4, %v581_v12, %v727_v57  ;;  %vm655_vm5 = vcmp.gt.f32.partialorder %v582_v53, 0.0  ;;  %v728_v61 = vmul.f32 0.2, %v582_v53  ;;  %v433_v49 = vmul.f32 %v1784_v39, %v1531_v22 }
 0x176   :  { %873 = vst [vmem:[%s2305_s3 + $0x78] sm:$0xff] %v800_v43  ;;  %vm656_vm6 = vcmp.gt.f32.partialorder %v583_v59, 0.0  ;;  %v729_v54 = vmul.f32 0.2, %v583_v59  ;;  %vm657_vm7 = vcmp.gt.f32.partialorder %v584_v18, 0.0  ;;  %v585_v1 = vadd.f32 %v1791_v27, %v508_v4  ;;  %v2452_v4 = vld [vmem:[#allocation2_spill] sm:$0xff] }
 0x177   :  { %v801_v44 = vsel %vm655_vm5, %v582_v53, %v728_v61  ;;  %v730_v8 = vmul.f32 0.2, %v584_v18  ;;  %v586_v6 = vadd.f32 %v1791_v27, %v509_v20  ;;  %v510_v33 = vmul.f32 %v1782_v48, %v433_v49 }
 0x178   :  { %874 = vst [vmem:[%s2305_s3 + $0x80] sm:$0xff] %v801_v44  ;;  %v802_v22 = vsel %vm656_vm6, %v583_v59, %v729_v54  ;;  %vm658_vm8 = vcmp.gt.f32.partialorder %v585_v1, 0.0  ;;  %v731_v45 = vmul.f32 0.2, %v585_v1  ;;  %v434_v46 = vmul.f32 %v1784_v39, %v1537_v24 }
 0x179   :  { %875 = vst [vmem:[%s2305_s3 + $0x88] sm:$0xff] %v802_v22  ;;  %v803_v5 = vsel %vm657_vm7, %v584_v18, %v730_v8  ;;  %vm659_vm9 = vcmp.gt.f32.partialorder %v586_v6, 0.0  ;;  %v732_v10 = vmul.f32 0.2, %v586_v6  ;;  %v587_v13 = vadd.f32 %v1791_v27, %v510_v33  ;;  %v2454_v22 = vld [vmem:[#allocation4_spill] sm:$0xff] }
 0x17a   :  { %876 = vst [vmem:[%s2305_s3 + $0x90] sm:$0xff] %v803_v5  ;;  %v804_v19 = vsel %vm658_vm8, %v585_v1, %v731_v45  ;;  %v511_v25 = vmul.f32 %v1782_v48, %v434_v46  ;;  %v435_v17 = vmul.f32 %v1784_v39, %v1543_v26  ;;  %v436_v24 = vmul.f32 %v1784_v39, %v1549_v28 }
 0x17b   :  { %877 = vst [vmem:[%s2305_s3 + $0x98] sm:$0xff] %v804_v19  ;;  %v805_v11 = vsel %vm659_vm9, %v586_v6, %v732_v10  ;;  %vm660_vm10 = vcmp.gt.f32.partialorder %v587_v13, 0.0  ;;  %v733_v9 = vmul.f32 0.2, %v587_v13  ;;  %v437_v63 = vmul.f32 %v1784_v39, %v1555_v30  ;;  %v2451_v30 = vld [vmem:[#allocation36_spill] sm:$0xff]  ;;  %v2453_v6 = vld [vmem:[#allocation3_spill] sm:$0xff] }
 0x17c   :  { %878 = vst [vmem:[%s2305_s3 + $0xa0] sm:$0xff] %v805_v11  ;;  %v588_v38 = vadd.f32 %v1791_v27, %v511_v25  ;;  %v512_v26 = vmul.f32 %v1782_v48, %v435_v17  ;;  %v513_v28 = vmul.f32 %v1782_v48, %v436_v24  ;;  %v438_v55 = vmul.f32 %v1784_v39, %v1561_v32  ;;  %v2455_v10 = vld [vmem:[#allocation5_spill] sm:$0xff]  ;;  %v2456_v19 = vld [vmem:[#allocation6_spill] sm:$0xff] }
 0x17d   :  { %v806_v50 = vsel %vm660_vm10, %v587_v13, %v733_v9  ;;  %v514_v51 = vmul.f32 %v1782_v48, %v437_v63  ;;  %v439_v47 = vmul.f32 %v1784_v39, %v1567_v34  ;;  %v440_v40 = vmul.f32 %v1784_v39, %v2451_v30  ;;  %v2457_v9 = vld [vmem:[#allocation7_spill] sm:$0xff] }
 0x17e   :  { %879 = vst [vmem:[%s2305_s3 + $0xa8] sm:$0xff] %v806_v50  ;;  %vm661_vm11 = vcmp.gt.f32.partialorder %v588_v38, 0.0  ;;  %v734_v0 = vmul.f32 0.2, %v588_v38  ;;  %v589_v12 = vadd.f32 %v1791_v27, %v512_v26  ;;  %v590_v2 = vadd.f32 %v1791_v27, %v513_v28 }
 0x17f   :  { %v591_v32 = vadd.f32 %v1791_v27, %v514_v51  ;;  %v515_v14 = vmul.f32 %v1782_v48, %v438_v55  ;;  %v516_v52 = vmul.f32 %v1782_v48, %v439_v47  ;;  %v517_v34 = vmul.f32 %v1782_v48, %v440_v40  ;;  %v2458_v47 = vld [vmem:[#allocation8_spill] sm:$0xff] }
 0x180   :  { %v807_v21 = vsel %vm661_vm11, %v588_v38, %v734_v0  ;;  %vm662_vm12 = vcmp.gt.f32.partialorder %v589_v12, 0.0  ;;  %v735_v16 = vmul.f32 0.2, %v589_v12  ;;  %vm663_vm13 = vcmp.gt.f32.partialorder %v590_v2, 0.0 }
 0x181   :  { %880 = vst [vmem:[%s2305_s3 + $0xb0] sm:$0xff] %v807_v21  ;;  %v736_v29 = vmul.f32 0.2, %v590_v2  ;;  %vm664_vm14 = vcmp.gt.f32.partialorder %v591_v32, 0.0  ;;  %v737_v41 = vmul.f32 0.2, %v591_v32  ;;  %v592_v57 = vadd.f32 %v1791_v27, %v515_v14 }
 0x182   :  { %v808_v53 = vsel %vm662_vm12, %v589_v12, %v735_v16  ;;  %v593_v59 = vadd.f32 %v1791_v27, %v516_v52  ;;  %v594_v18 = vadd.f32 %v1791_v27, %v517_v34  ;;  %v441_v20 = vmul.f32 %v1784_v39, %v2452_v4 }
 0x183   :  { %881 = vst [vmem:[%s2305_s3 + $0xb8] sm:$0xff] %v808_v53  ;;  %v809_v43 = vsel %vm663_vm13, %v590_v2, %v736_v29  ;;  %v810_v61 = vsel %vm664_vm14, %v591_v32, %v737_v41  ;;  %vm665_vm15 = vcmp.gt.f32.partialorder %v592_v57, 0.0  ;;  %v738_v49 = vmul.f32 0.2, %v592_v57  ;;  %v2459_v2 = vld [vmem:[#allocation9_spill] sm:$0xff] }
 0x184   :  { %882 = vst [vmem:[%s2305_s3 + $0xc0] sm:$0xff] %v809_v43  ;;  %vm666_vm0 = vcmp.gt.f32.partialorder %v593_v59, 0.0  ;;  %v739_v54 = vmul.f32 0.2, %v593_v59  ;;  %vm667_vm1 = vcmp.gt.f32.partialorder %v594_v18, 0.0  ;;  %v518_v1 = vmul.f32 %v1782_v48, %v441_v20  ;;  %v2460_v43 = vld [vmem:[#allocation10_spill] sm:$0xff] }
 0x185   :  { %883 = vst [vmem:[%s2305_s3 + $0xc8] sm:$0xff] %v810_v61  ;;  %v811_v44 = vsel %vm665_vm15, %v592_v57, %v738_v49  ;;  %v740_v8 = vmul.f32 0.2, %v594_v18  ;;  %v442_v33 = vmul.f32 %v1784_v39, %v2453_v6  ;;  %v443_v45 = vmul.f32 %v1784_v39, %v2454_v22  ;;  %v2461_v49 = vld [vmem:[#allocation11_spill] sm:$0xff] }
 0x186   :  { %884 = vst [vmem:[%s2305_s3 + $0xd0] sm:$0xff] %v811_v44  ;;  %v812_v46 = vsel %vm666_vm0, %v593_v59, %v739_v54  ;;  %v595_v5 = vadd.f32 %v1791_v27, %v518_v1  ;;  %v444_v13 = vmul.f32 %v1784_v39, %v2455_v10  ;;  %v445_v25 = vmul.f32 %v1784_v39, %v2456_v19 }
 0x187   :  { %885 = vst [vmem:[%s2305_s3 + $0xd8] sm:$0xff] %v812_v46  ;;  %v813_v17 = vsel %vm667_vm1, %v594_v18, %v740_v8  ;;  %v519_v24 = vmul.f32 %v1782_v48, %v442_v33  ;;  %v520_v11 = vmul.f32 %v1782_v48, %v443_v45  ;;  %v446_v63 = vmul.f32 %v1784_v39, %v2457_v9  ;;  %v2462_v8 = vld [vmem:[#allocation12_spill] sm:$0xff]  ;;  %v2463_v33 = vld [vmem:[#allocation13_spill] sm:$0xff] }
 0x188   :  { %886 = vst [vmem:[%s2305_s3 + $0xe0] sm:$0xff] %v813_v17  ;;  %vm668_vm2 = vcmp.gt.f32.partialorder %v595_v5, 0.0  ;;  %v741_v38 = vmul.f32 0.2, %v595_v5  ;;  %v521_v26 = vmul.f32 %v1782_v48, %v444_v13  ;;  %v522_v28 = vmul.f32 %v1782_v48, %v445_v25  ;;  %v2465_v13 = vld [vmem:[#allocation15_spill] sm:$0xff] }
 0x189   :  { %v596_v55 = vadd.f32 %v1791_v27, %v519_v24  ;;  %v597_v50 = vadd.f32 %v1791_v27, %v520_v11  ;;  %v523_v51 = vmul.f32 %v1782_v48, %v446_v63  ;;  %v447_v30 = vmul.f32 %v1784_v39, %v2458_v47 }
 0x18a   :  { %v814_v40 = vsel %vm668_vm2, %v595_v5, %v741_v38  ;;  %v598_v0 = vadd.f32 %v1791_v27, %v521_v26  ;;  %v599_v12 = vadd.f32 %v1791_v27, %v522_v28  ;;  %v448_v32 = vmul.f32 %v1784_v39, %v2459_v2  ;;  %v2464_v5 = vld [vmem:[#allocation14_spill] sm:$0xff] }
 0x18b   :  { %887 = vst [vmem:[%s2305_s3 + $0xe8] sm:$0xff] %v814_v40  ;;  %vm669_vm3 = vcmp.gt.f32.partialorder %v596_v55, 0.0  ;;  %v742_v14 = vmul.f32 0.2, %v596_v55  ;;  %vm670_vm4 = vcmp.gt.f32.partialorder %v597_v50, 0.0  ;;  %v600_v52 = vadd.f32 %v1791_v27, %v523_v51 }
 0x18c   :  { %v743_v34 = vmul.f32 0.2, %v597_v50  ;;  %vm671_vm5 = vcmp.gt.f32.partialorder %v598_v0, 0.0  ;;  %v744_v21 = vmul.f32 0.2, %v598_v0  ;;  %vm672_vm6 = vcmp.gt.f32.partialorder %v599_v12, 0.0 }
 0x18d   :  { %v815_v16 = vsel %vm669_vm3, %v596_v55, %v742_v14  ;;  %v745_v29 = vmul.f32 0.2, %v599_v12  ;;  %vm673_vm7 = vcmp.gt.f32.partialorder %v600_v52, 0.0  ;;  %v746_v41 = vmul.f32 0.2, %v600_v52 }
 0x18e   :  { %888 = vst [vmem:[%s2305_s3 + $0xf0] sm:$0xff] %v815_v16  ;;  %v816_v57 = vsel %vm670_vm4, %v597_v50, %v743_v34  ;;  %v817_v53 = vsel %vm671_vm5, %v598_v0, %v744_v21  ;;  %v524_v59 = vmul.f32 %v1782_v48, %v447_v30  ;;  %v525_v18 = vmul.f32 %v1782_v48, %v448_v32  ;;  %v2466_v32 = vld [vmem:[#allocation16_spill] sm:$0xff] }
 0x18f   :  { %889 = vst [vmem:[%s2305_s3 + $0xf8] sm:$0xff] %v816_v57  ;;  %v818_v4 = vsel %vm672_vm6, %v599_v12, %v745_v29  ;;  %v819_v20 = vsel %vm673_vm7, %v600_v52, %v746_v41  ;;  %v449_v61 = vmul.f32 %v1784_v39, %v2460_v43  ;;  %v450_v54 = vmul.f32 %v1784_v39, %v2461_v49 }
 0x190   :  { %890 = vst [vmem:[%s2305_s3 + $0x100] sm:$0xff] %v817_v53  ;;  %v601_v1 = vadd.f32 %v1791_v27, %v524_v59  ;;  %v602_v44 = vadd.f32 %v1791_v27, %v525_v18  ;;  %v451_v6 = vmul.f32 %v1784_v39, %v2462_v8  ;;  %v452_v22 = vmul.f32 %v1784_v39, %v2463_v33  ;;  %v2467_v53 = vld [vmem:[#allocation17_spill] sm:$0xff]  ;;  %v2468_v18 = vld [vmem:[#allocation18_spill] sm:$0xff] }
 0x191   :  { %891 = vst [vmem:[%s2305_s3 + $0x108] sm:$0xff] %v818_v4  ;;  %v526_v45 = vmul.f32 %v1782_v48, %v449_v61  ;;  %v527_v46 = vmul.f32 %v1782_v48, %v450_v54  ;;  %v453_v10 = vmul.f32 %v1784_v39, %v2464_v5  ;;  %v454_v19 = vmul.f32 %v1784_v39, %v2465_v13  ;;  %v2469_v61 = vld [vmem:[#allocation19_spill] sm:$0xff]  ;;  %v2470_v54 = vld [vmem:[#allocation20_spill] sm:$0xff]  ;;  %v2471_v33 = vld [vmem:[#allocation21_spill] sm:$0xff] }
 0x192   :  { %892 = vst [vmem:[%s2305_s3 + $0x110] sm:$0xff] %v819_v20  ;;  %vm674_vm8 = vcmp.gt.f32.partialorder %v601_v1, 0.0  ;;  %v747_v25 = vmul.f32 0.2, %v601_v1  ;;  %vm675_vm9 = vcmp.gt.f32.partialorder %v602_v44, 0.0  ;;  %v528_v17 = vmul.f32 %v1782_v48, %v451_v6 }
 0x193   :  { %v748_v24 = vmul.f32 0.2, %v602_v44  ;;  %v603_v11 = vadd.f32 %v1791_v27, %v526_v45  ;;  %v604_v9 = vadd.f32 %v1791_v27, %v527_v46  ;;  %v529_v63 = vmul.f32 %v1782_v48, %v452_v22 }
 0x194   :  { %v820_v38 = vsel %vm674_vm8, %v601_v1, %v747_v25  ;;  %v605_v26 = vadd.f32 %v1791_v27, %v528_v17  ;;  %v530_v28 = vmul.f32 %v1782_v48, %v453_v10  ;;  %v531_v55 = vmul.f32 %v1782_v48, %v454_v19  ;;  %v2472_v25 = vld [vmem:[#allocation22_spill] sm:$0xff] }
 0x195   :  { %893 = vst [vmem:[%s2305_s3 + $0x118] sm:$0xff] %v820_v38  ;;  %v821_v50 = vsel %vm675_vm9, %v602_v44, %v748_v24  ;;  %vm676_vm10 = vcmp.gt.f32.partialorder %v603_v11, 0.0  ;;  %v749_v51 = vmul.f32 0.2, %v603_v11  ;;  %vm677_vm11 = vcmp.gt.f32.partialorder %v604_v9, 0.0 }
 0x196   :  { %894 = vst [vmem:[%s2305_s3 + $0x120] sm:$0xff] %v821_v50  ;;  %v750_v47 = vmul.f32 0.2, %v604_v9  ;;  %vm678_vm12 = vcmp.gt.f32.partialorder %v605_v26, 0.0  ;;  %v751_v30 = vmul.f32 0.2, %v605_v26  ;;  %v606_v40 = vadd.f32 %v1791_v27, %v529_v63 }
 0x197   :  { %v822_v0 = vsel %vm676_vm10, %v603_v11, %v749_v51  ;;  %v607_v12 = vadd.f32 %v1791_v27, %v530_v28  ;;  %v608_v2 = vadd.f32 %v1791_v27, %v531_v55  ;;  %v455_v14 = vmul.f32 %v1784_v39, %v2466_v32  ;;  %v2473_v32 = vld [vmem:[#allocation23_spill] sm:$0xff] }
 0x198   :  { %895 = vst [vmem:[%s2305_s3 + $0x128] sm:$0xff] %v822_v0  ;;  %v823_v52 = vsel %vm677_vm11, %v604_v9, %v750_v47  ;;  %v824_v34 = vsel %vm678_vm12, %v605_v26, %v751_v30  ;;  %vm679_vm13 = vcmp.gt.f32.partialorder %v606_v40, 0.0  ;;  %v752_v21 = vmul.f32 0.2, %v606_v40 }
 0x199   :  { %896 = vst [vmem:[%s2305_s3 + $0x130] sm:$0xff] %v823_v52  ;;  %vm680_vm14 = vcmp.gt.f32.partialorder %v607_v12, 0.0  ;;  %v753_v16 = vmul.f32 0.2, %v607_v12  ;;  %vm681_vm15 = vcmp.gt.f32.partialorder %v608_v2, 0.0  ;;  %v532_v29 = vmul.f32 %v1782_v48, %v455_v14  ;;  %v2474_v52 = vld [vmem:[#allocation24_spill] sm:$0xff] }
 0x19a   :  { %897 = vst [vmem:[%s2305_s3 + $0x138] sm:$0xff] %v824_v34  ;;  %v825_v41 = vsel %vm679_vm13, %v606_v40, %v752_v21  ;;  %v754_v57 = vmul.f32 0.2, %v608_v2  ;;  %v456_v59 = vmul.f32 %v1784_v39, %v2467_v53  ;;  %v457_v4 = vmul.f32 %v1784_v39, %v2468_v18 }
 0x19b   :  { %898 = vst [vmem:[%s2305_s3 + $0x140] sm:$0xff] %v825_v41  ;;  %v826_v20 = vsel %vm680_vm14, %v607_v12, %v753_v16  ;;  %v609_v43 = vadd.f32 %v1791_v27, %v532_v29  ;;  %v458_v49 = vmul.f32 %v1784_v39, %v2469_v61  ;;  %v459_v1 = vmul.f32 %v1784_v39, %v2470_v54 }
 0x19c   :  { %899 = vst [vmem:[%s2305_s3 + $0x148] sm:$0xff] %v826_v20  ;;  %v827_v44 = vsel %vm681_vm15, %v608_v2, %v754_v57  ;;  %v533_v8 = vmul.f32 %v1782_v48, %v456_v59  ;;  %v534_v6 = vmul.f32 %v1782_v48, %v457_v4  ;;  %v460_v22 = vmul.f32 %v1784_v39, %v2471_v33 }
 0x19d   :  { %900 = vst [vmem:[%s2305_s3 + $0x150] sm:$0xff] %v827_v44  ;;  %vm682_vm0 = vcmp.gt.f32.partialorder %v609_v43, 0.0  ;;  %v755_v45 = vmul.f32 0.2, %v609_v43  ;;  %v535_v46 = vmul.f32 %v1782_v48, %v458_v49  ;;  %v536_v5 = vmul.f32 %v1782_v48, %v459_v1 }
 0x19e   :  { %v610_v10 = vadd.f32 %v1791_v27, %v533_v8  ;;  %v611_v13 = vadd.f32 %v1791_v27, %v534_v6  ;;  %v537_v19 = vmul.f32 %v1782_v48, %v460_v22  ;;  %v461_v17 = vmul.f32 %v1784_v39, %v2472_v25 }
 0x19f   :  { %v828_v24 = vsel %vm682_vm0, %v609_v43, %v755_v45  ;;  %v612_v11 = vadd.f32 %v1791_v27, %v535_v46  ;;  %v613_v9 = vadd.f32 %v1791_v27, %v536_v5  ;;  %v462_v63 = vmul.f32 %v1784_v39, %v1705_v42 }
 0x1a0   :  { %901 = vst [vmem:[%s2305_s3 + $0x158] sm:$0xff] %v828_v24  ;;  %vm683_vm1 = vcmp.gt.f32.partialorder %v610_v10, 0.0  ;;  %v756_v38 = vmul.f32 0.2, %v610_v10  ;;  %vm684_vm2 = vcmp.gt.f32.partialorder %v611_v13, 0.0  ;;  %v614_v26 = vadd.f32 %v1791_v27, %v537_v19 }
 0x1a1   :  { %v757_v28 = vmul.f32 0.2, %v611_v13  ;;  %vm685_vm3 = vcmp.gt.f32.partialorder %v612_v11, 0.0  ;;  %v758_v55 = vmul.f32 0.2, %v612_v11  ;;  %vm686_vm4 = vcmp.gt.f32.partialorder %v613_v9, 0.0 }
 0x1a2   :  { %v829_v50 = vsel %vm683_vm1, %v610_v10, %v756_v38  ;;  %v759_v51 = vmul.f32 0.2, %v613_v9  ;;  %vm687_vm5 = vcmp.gt.f32.partialorder %v614_v26, 0.0  ;;  %v760_v47 = vmul.f32 0.2, %v614_v26 }
 0x1a3   :  { %902 = vst [vmem:[%s2305_s3 + $0x160] sm:$0xff] %v829_v50  ;;  %v830_v42 = vsel %vm684_vm2, %v611_v13, %v757_v28  ;;  %v831_v30 = vsel %vm685_vm3, %v612_v11, %v758_v55  ;;  %v538_v40 = vmul.f32 %v1782_v48, %v461_v17  ;;  %v539_v0 = vmul.f32 %v1782_v48, %v462_v63 }
 0x1a4   :  { %903 = vst [vmem:[%s2305_s3 + $0x168] sm:$0xff] %v830_v42  ;;  %v832_v12 = vsel %vm686_vm4, %v613_v9, %v759_v51  ;;  %v833_v2 = vsel %vm687_vm5, %v614_v26, %v760_v47  ;;  %v463_v14 = vmul.f32 %v1784_v39, %v2473_v32  ;;  %v464_v34 = vmul.f32 %v1784_v39, %v2474_v52 }
 0x1a5   :  { %904 = vst [vmem:[%s2305_s3 + $0x170] sm:$0xff] %v831_v30  ;;  %v615_v21 = vadd.f32 %v1791_v27, %v538_v40  ;;  %v616_v16 = vadd.f32 %v1791_v27, %v539_v0  ;;  %v465_v29 = vmul.f32 %v1784_v39, %v1723_v36  ;;  %v466_v41 = vmul.f32 %v1784_v39, %v1729_v37 }
 0x1a6   :  { %905 = vst [vmem:[%s2305_s3 + $0x178] sm:$0xff] %v832_v12  ;;  %v540_v57 = vmul.f32 %v1782_v48, %v463_v14  ;;  %v541_v53 = vmul.f32 %v1782_v48, %v464_v34  ;;  %v467_v59 = vmul.f32 %v1784_v39, %v1357_v31  ;;  %v468_v18 = vmul.f32 %v1784_v39, %v1360_v35 }
 0x1a7   :  { %906 = vst [vmem:[%s2305_s3 + $0x180] sm:$0xff] %v833_v2  ;;  %vm688_vm6 = vcmp.gt.f32.partialorder %v615_v21, 0.0  ;;  %v761_v36 = vmul.f32 0.2, %v615_v21  ;;  %vm689_vm7 = vcmp.gt.f32.partialorder %v616_v16, 0.0  ;;  %v542_v37 = vmul.f32 %v1782_v48, %v465_v29  ;;  %v2475_v2 = vld [vmem:[#allocation29_spill] sm:$0xff] }
 0x1a8   :  { %v762_v4 = vmul.f32 0.2, %v616_v16  ;;  %v617_v20 = vadd.f32 %v1791_v27, %v540_v57  ;;  %v618_v43 = vadd.f32 %v1791_v27, %v541_v53  ;;  %v543_v61 = vmul.f32 %v1782_v48, %v466_v41 }
 0x1a9   :  { %v834_v31 = vsel %vm688_vm6, %v615_v21, %v761_v36  ;;  %v619_v49 = vadd.f32 %v1791_v27, %v542_v37  ;;  %v544_v35 = vmul.f32 %v1782_v48, %v467_v59  ;;  %v545_v54 = vmul.f32 %v1782_v48, %v468_v18 }
 0x1aa   :  { %907 = vst [vmem:[%s2305_s3 + $0x188] sm:$0xff] %v834_v31  ;;  %v835_v1 = vsel %vm689_vm7, %v616_v16, %v762_v4  ;;  %vm690_vm8 = vcmp.gt.f32.partialorder %v617_v20, 0.0  ;;  %v763_v44 = vmul.f32 0.2, %v617_v20  ;;  %vm691_vm9 = vcmp.gt.f32.partialorder %v618_v43, 0.0  ;;  %v2476_v4 = vld [vmem:[#allocation30_spill] sm:$0xff] }
 0x1ab   :  { %908 = vst [vmem:[%s2305_s3 + $0x190] sm:$0xff] %v835_v1  ;;  %v764_v8 = vmul.f32 0.2, %v618_v43  ;;  %vm692_vm10 = vcmp.gt.f32.partialorder %v619_v49, 0.0  ;;  %v765_v6 = vmul.f32 0.2, %v619_v49  ;;  %v620_v33 = vadd.f32 %v1791_v27, %v543_v61 }
 0x1ac   :  { %v836_v22 = vsel %vm690_vm8, %v617_v20, %v763_v44  ;;  %v621_v45 = vadd.f32 %v1791_v27, %v544_v35  ;;  %v622_v46 = vadd.f32 %v1791_v27, %v545_v54  ;;  %v469_v5 = vmul.f32 %v1784_v39, %v1363_v23  ;;  %v2477_v31 = vld [vmem:[#allocation31_spill] sm:$0xff]  ;;  %v2478_v35 = vld [vmem:[#allocation32_spill] sm:$0xff]  ;;  %v2479_v44 = vld [vmem:[#allocation33_spill] sm:$0xff] }
 0x1ad   :  { %909 = vst [vmem:[%s2305_s3 + $0x198] sm:$0xff] %v836_v22  ;;  %v837_v10 = vsel %vm691_vm9, %v618_v43, %v764_v8  ;;  %v838_v13 = vsel %vm692_vm10, %v619_v49, %v765_v6  ;;  %vm693_vm11 = vcmp.gt.f32.partialorder %v620_v33, 0.0  ;;  %v766_v19 = vmul.f32 0.2, %v620_v33  ;;  %v2480_v6 = vld [vmem:[#allocation34_spill] sm:$0xff] }
 0x1ae   :  { %910 = vst [vmem:[%s2305_s3 + $0x1a0] sm:$0xff] %v837_v10  ;;  %vm694_vm12 = vcmp.gt.f32.partialorder %v621_v45, 0.0  ;;  %v767_v25 = vmul.f32 0.2, %v621_v45  ;;  %vm695_vm13 = vcmp.gt.f32.partialorder %v622_v46, 0.0  ;;  %v546_v17 = vmul.f32 %v1782_v48, %v469_v5 }
 0x1af   :  { %911 = vst [vmem:[%s2305_s3 + $0x1a8] sm:$0xff] %v838_v13  ;;  %v839_v23 = vsel %vm693_vm11, %v620_v33, %v766_v19  ;;  %v768_v24 = vmul.f32 0.2, %v622_v46  ;;  %v470_v11 = vmul.f32 %v1784_v39, %v1366_v3  ;;  %v471_v9 = vmul.f32 %v1784_v39, %v1369_v62 }
 0x1b0   :  { %912 = vst [vmem:[%s2305_s3 + $0x1b0] sm:$0xff] %v839_v23  ;;  %v840_v63 = vsel %vm694_vm12, %v621_v45, %v767_v25  ;;  %v623_v38 = vadd.f32 %v1791_v27, %v546_v17  ;;  %v472_v26 = vmul.f32 %v1784_v39, %v1372_v58  ;;  %v473_v28 = vmul.f32 %v1784_v39, %v1375_v56 }
 0x1b1   :  { %913 = vst [vmem:[%s2305_s3 + $0x1b8] sm:$0xff] %v840_v63  ;;  %v841_v3 = vsel %vm695_vm13, %v622_v46, %v768_v24  ;;  %v547_v62 = vmul.f32 %v1782_v48, %v470_v11  ;;  %v548_v55 = vmul.f32 %v1782_v48, %v471_v9  ;;  %v474_v50 = vmul.f32 %v1784_v39, %v1378_v60 }
 0x1b2   :  { %914 = vst [vmem:[%s2305_s3 + $0x1c0] sm:$0xff] %v841_v3  ;;  %vm696_vm14 = vcmp.gt.f32.partialorder %v623_v38, 0.0  ;;  %v769_v58 = vmul.f32 0.2, %v623_v38  ;;  %v549_v56 = vmul.f32 %v1782_v48, %v472_v26  ;;  %v550_v51 = vmul.f32 %v1782_v48, %v473_v28 }
 0x1b3   :  { %v624_v47 = vadd.f32 %v1791_v27, %v547_v62  ;;  %v625_v42 = vadd.f32 %v1791_v27, %v548_v55  ;;  %v551_v30 = vmul.f32 %v1782_v48, %v474_v50  ;;  %v475_v40 = vmul.f32 %v1784_v39, %v1381_v7  ;;  %v2481_v62 = vld [vmem:[#allocation35_spill] sm:$0xff] }
 0x1b4   :  { %v842_v60 = vsel %vm696_vm14, %v623_v38, %v769_v58  ;;  %v626_v0 = vadd.f32 %v1791_v27, %v549_v56  ;;  %v627_v12 = vadd.f32 %v1791_v27, %v550_v51  ;;  %v476_v32 = vmul.f32 %v1784_v39, %v2475_v2 }
 0x1b5   :  { %915 = vst [vmem:[%s2305_s3 + $0x1c8] sm:$0xff] %v842_v60  ;;  %vm697_vm15 = vcmp.gt.f32.partialorder %v624_v47, 0.0  ;;  %v770_v14 = vmul.f32 0.2, %v624_v47  ;;  %vm698_vm0 = vcmp.gt.f32.partialorder %v625_v42, 0.0  ;;  %v628_v52 = vadd.f32 %v1791_v27, %v551_v30 }
 0x1b6   :  { %v771_v34 = vmul.f32 0.2, %v625_v42  ;;  %vm699_vm1 = vcmp.gt.f32.partialorder %v626_v0, 0.0  ;;  %v772_v7 = vmul.f32 0.2, %v626_v0  ;;  %vm700_vm2 = vcmp.gt.f32.partialorder %v627_v12, 0.0 }
 0x1b7   :  { %v843_v21 = vsel %vm697_vm15, %v624_v47, %v770_v14  ;;  %v773_v16 = vmul.f32 0.2, %v627_v12  ;;  %vm701_vm3 = vcmp.gt.f32.partialorder %v628_v52, 0.0  ;;  %v774_v29 = vmul.f32 0.2, %v628_v52 }
 0x1b8   :  { %916 = vst [vmem:[%s2305_s3 + $0x1d0] sm:$0xff] %v843_v21  ;;  %v844_v41 = vsel %vm698_vm0, %v625_v42, %v771_v34  ;;  %v845_v57 = vsel %vm699_vm1, %v626_v0, %v772_v7  ;;  %v552_v53 = vmul.f32 %v1782_v48, %v475_v40  ;;  %v553_v59 = vmul.f32 %v1782_v48, %v476_v32  ;;  %v2482_v40 = vld [vmem:[#allocation25_spill] sm:$0xff] }
 0x1b9   :  { %917 = vst [vmem:[%s2305_s3 + $0x1d8] sm:$0xff] %v844_v41  ;;  %v846_v18 = vsel %vm700_vm2, %v627_v12, %v773_v16  ;;  %v847_v36 = vsel %vm701_vm3, %v628_v52, %v774_v29  ;;  %v477_v37 = vmul.f32 %v1784_v39, %v1387_v15  ;;  %v478_v20 = vmul.f32 %v1784_v39, %v2476_v4 }
 0x1ba   :  { %918 = vst [vmem:[%s2305_s3 + $0x1e0] sm:$0xff] %v845_v57  ;;  %v629_v43 = vadd.f32 %v1791_v27, %v552_v53  ;;  %v630_v61 = vadd.f32 %v1791_v27, %v553_v59  ;;  %v479_v49 = vmul.f32 %v1784_v39, %v2477_v31  ;;  %v480_v54 = vmul.f32 %v1784_v39, %v2478_v35 }
 0x1bb   :  { %919 = vst [vmem:[%s2305_s3 + $0x1e8] sm:$0xff] %v846_v18  ;;  %v554_v15 = vmul.f32 %v1782_v48, %v477_v37  ;;  %v555_v1 = vmul.f32 %v1782_v48, %v478_v20  ;;  %v481_v8 = vmul.f32 %v1784_v39, %v2479_v44  ;;  %v482_v33 = vmul.f32 %v1784_v39, %v2480_v6 }
 0x1bc   :  { %920 = vst [vmem:[%s2305_s3 + $0x1f0] sm:$0xff] %v847_v36  ;;  %vm702_vm4 = vcmp.gt.f32.partialorder %v629_v43, 0.0  ;;  %v775_v22 = vmul.f32 0.2, %v629_v43  ;;  %vm703_vm5 = vcmp.gt.f32.partialorder %v630_v61, 0.0  ;;  %v556_v45 = vmul.f32 %v1782_v48, %v479_v49 }
 0x1bd   :  { %v776_v46 = vmul.f32 0.2, %v630_v61  ;;  %v631_v5 = vadd.f32 %v1791_v27, %v554_v15  ;;  %v632_v10 = vadd.f32 %v1791_v27, %v555_v1  ;;  %v557_v13 = vmul.f32 %v1782_v48, %v480_v54 }
 0x1be   :  { %v848_v19 = vsel %vm702_vm4, %v629_v43, %v775_v22  ;;  %v633_v25 = vadd.f32 %v1791_v27, %v556_v45  ;;  %v558_v17 = vmul.f32 %v1782_v48, %v481_v8  ;;  %v559_v23 = vmul.f32 %v1782_v48, %v482_v33 }
 0x1bf   :  { %921 = vst [vmem:[%s2305_s3 + $0x1f8] sm:$0xff] %v848_v19  ;;  %v849_v24 = vsel %vm703_vm5, %v630_v61, %v776_v46  ;;  %vm704_vm6 = vcmp.gt.f32.partialorder %v631_v5, 0.0  ;;  %v777_v11 = vmul.f32 0.2, %v631_v5  ;;  %vm705_vm7 = vcmp.gt.f32.partialorder %v632_v10, 0.0 }
 0x1c0   :  { %922 = vst [vmem:[%s2305_s3 + $0x200] sm:$0xff] %v849_v24  ;;  %v778_v9 = vmul.f32 0.2, %v632_v10  ;;  %vm706_vm8 = vcmp.gt.f32.partialorder %v633_v25, 0.0  ;;  %v779_v63 = vmul.f32 0.2, %v633_v25  ;;  %v634_v38 = vadd.f32 %v1791_v27, %v557_v13 }
 0x1c1   :  { %v850_v26 = vsel %vm704_vm6, %v631_v5, %v777_v11  ;;  %v635_v28 = vadd.f32 %v1791_v27, %v558_v17  ;;  %v636_v3 = vadd.f32 %v1791_v27, %v559_v23  ;;  %v483_v55 = vmul.f32 %v1784_v39, %v2481_v62 }
 0x1c2   :  { %923 = vst [vmem:[%s2305_s3 + $0x208] sm:$0xff] %v850_v26  ;;  %v851_v50 = vsel %vm705_vm7, %v632_v10, %v778_v9  ;;  %v852_v58 = vsel %vm706_vm8, %v633_v25, %v779_v63  ;;  %vm707_vm9 = vcmp.gt.f32.partialorder %v634_v38, 0.0  ;;  %v780_v56 = vmul.f32 0.2, %v634_v38 }
 0x1c3   :  { %924 = vst [vmem:[%s2305_s3 + $0x210] sm:$0xff] %v851_v50  ;;  %vm708_vm10 = vcmp.gt.f32.partialorder %v635_v28, 0.0  ;;  %v781_v51 = vmul.f32 0.2, %v635_v28  ;;  %vm709_vm11 = vcmp.gt.f32.partialorder %v636_v3, 0.0  ;;  %v560_v47 = vmul.f32 %v1782_v48, %v483_v55 }
 0x1c4   :  { %925 = vst [vmem:[%s2305_s3 + $0x218] sm:$0xff] %v852_v58  ;;  %v853_v42 = vsel %vm707_vm9, %v634_v38, %v780_v56  ;;  %v782_v30 = vmul.f32 0.2, %v636_v3  ;;  %v484_v60 = vmul.f32 %v1784_v39, %v2482_v40 }
 0x1c5   :  { %926 = vst [vmem:[%s2305_s3 + $0x220] sm:$0xff] %v853_v42  ;;  %v854_v0 = vsel %vm708_vm10, %v635_v28, %v781_v51  ;;  %v637_v12 = vadd.f32 %v1791_v27, %v560_v47 }
 0x1c6   :  { %927 = vst [vmem:[%s2305_s3 + $0x228] sm:$0xff] %v854_v0  ;;  %v855_v2 = vsel %vm709_vm11, %v636_v3, %v782_v30  ;;  %v561_v32 = vmul.f32 %v1782_v48, %v484_v60 }
 0x1c7   :  { %928 = vst [vmem:[%s2305_s3 + $0x230] sm:$0xff] %v855_v2  ;;  %vm710_vm12 = vcmp.gt.f32.partialorder %v637_v12, 0.0  ;;  %v783_v39 = vmul.f32 0.2, %v637_v12 }
 0x1c8   :  { %v638_v14 = vadd.f32 %v1791_v27, %v561_v32 }
 0x1c9   :  { %v856_v52 = vsel %vm710_vm12, %v637_v12, %v783_v39 }
 0x1ca   :  { %929 = vst [vmem:[%s2305_s3 + $0x238] sm:$0xff] %v856_v52  ;;  %vm711_vm13 = vcmp.gt.f32.partialorder %v638_v14, 0.0  ;;  %v784_v34 = vmul.f32 0.2, %v638_v14 }
 0x1cc   :  { %v857_v7 = vsel %vm711_vm13, %v638_v14, %v784_v34 }
 0x1cd   :  { %930 = vst [vmem:[%s2305_s3 + $0x240] sm:$0x3] %v857_v7 }

// kernel: patchgan_forward.9
= control target key start
LH: loop header
LB: loop body
LE: loop exit
PB: predicated region body
PF: predicated region fallthrough
CT: control target
= control target key end

     0   :  { %s2593_s1 = inlined_call_operand.vmem [shape: bf16[256,128], index: 1, kind: input, shape index: {}]   ;;  %s2594_s0 = inlined_call_operand.vmem [shape: bf16[584,256], index: 0, kind: input, shape index: {}]   ;;  %s2595_s2 = inlined_call_operand.vmem [shape: f32[584,128], index: 2, kind: output, shape index: {}]  }
   0x1   :  { %v1845_v0 = vld [vmem:[%s2593_s1 + $0x38] sm:$0xff]  ;;  %v1844_v2 = vld [vmem:[%s2593_s1 + $0x30] sm:$0xff]  ;;  %v1843_v4 = vld [vmem:[%s2593_s1 + $0x28] sm:$0xff] }
   0x2   :  { %v1853_v1 = vld [vmem:[%s2593_s1 + $0x78] sm:$0xff]  ;;  %729 = vmatpush.bf16.msra.mxu0 %v1845_v0  ;;  %1854 = vmatpush.bf16.msra.mxu2 %v1845_v0  ;;  %v1852_v3 = vld [vmem:[%s2593_s1 + $0x70] sm:$0xff]  ;;  %v1851_v5 = vld [vmem:[%s2593_s1 + $0x68] sm:$0xff] }
   0x3   :  { %922 = vmatpush.bf16.msra.mxu1 %v1853_v1  ;;  %1862 = vmatpush.bf16.msra.mxu3 %v1853_v1  ;;  %v1842_v6 = vld [vmem:[%s2593_s1 + $0x20] sm:$0xff]  ;;  %v1841_v8 = vld [vmem:[%s2593_s1 + $0x18] sm:$0xff]  ;;  %v1840_v10 = vld [vmem:[%s2593_s1 + $0x10] sm:$0xff] }
   0x4   :  { %v1850_v7 = vld [vmem:[%s2593_s1 + $0x60] sm:$0xff]  ;;  %v1849_v9 = vld [vmem:[%s2593_s1 + $0x58] sm:$0xff]  ;;  %v1848_v11 = vld [vmem:[%s2593_s1 + $0x50] sm:$0xff] }
   0x5   :  { %v1839_v12 = vld [vmem:[%s2593_s1 + $0x8] sm:$0xff]  ;;  %v1838_v14 = vld [vmem:[%s2593_s1] sm:$0xff]  ;;  %v1804_v22 = vld [vmem:[%s2594_s0 + $0x134] sm:$0xf] }
   0x6   :  { %730 = vmatpush.bf16.msra.mxu0 %v1844_v2  ;;  %1855 = vmatpush.bf16.msra.mxu2 %v1844_v2  ;;  %v1847_v13 = vld [vmem:[%s2593_s1 + $0x48] sm:$0xff]  ;;  %v1846_v15 = vld [vmem:[%s2593_s1 + $0x40] sm:$0xff]  ;;  %v1570_v23 = vld [vmem:[%s2594_s0 + $0x138] sm:$0xf0] }
   0x7   :  { %923 = vmatpush.bf16.msra.mxu1 %v1852_v3  ;;  %1863 = vmatpush.bf16.msra.mxu3 %v1852_v3  ;;  %v1416_v16 = vld [vmem:[%s2594_s0] sm:$0xf]  ;;  %v1767_v17 = vld [vmem:[%s2594_s0 + $0x4] sm:$0xf0]  ;;  %v1766_v20 = vld [vmem:[%s2594_s0 + $0x4] sm:$0xf]  ;;  %v1573_v27 = vor.u32 %v1804_v22, %v1570_v23 }
   0x8   :  { %v1560_v18 = vld [vmem:[%s2594_s0 + $0x120] sm:$0xf]  ;;  %v1803_v19 = vld [vmem:[%s2594_s0 + $0x124] sm:$0xf0]  ;;  %v1418_v21 = vld [vmem:[%s2594_s0 + $0x8] sm:$0xf0]  ;;  %v1417_v24 = vor.u32 %v1767_v17, %v1416_v16 }
   0x9   :  { %v1561_v25 = vor.u32 %v1803_v19, %v1560_v18  ;;  %v1421_v26 = vor.u32 %v1766_v20, %v1418_v21  ;;  %v1424_v28 = vld [vmem:[%s2594_s0 + $0x10] sm:$0xf]  ;;  %v1769_v29 = vld [vmem:[%s2594_s0 + $0x14] sm:$0xf0]  ;;  %v1768_v32 = vld [vmem:[%s2594_s0 + $0x14] sm:$0xf] }
   0xa   :  { %731 = vmatpush.bf16.msra.mxu0 %v1843_v4  ;;  %1856 = vmatpush.bf16.msra.mxu2 %v1843_v4  ;;  %v1568_v30 = vld [vmem:[%s2594_s0 + $0x130] sm:$0xf]  ;;  %v1805_v31 = vld [vmem:[%s2594_s0 + $0x134] sm:$0xf0]  ;;  %v1426_v33 = vld [vmem:[%s2594_s0 + $0x18] sm:$0xf0]  ;;  %v1425_v36 = vor.u32 %v1769_v29, %v1424_v28 }
   0xb   :  { %924 = vmatpush.bf16.msra.mxu1 %v1851_v5  ;;  %1864 = vmatpush.bf16.msra.mxu3 %v1851_v5  ;;  %v1806_v34 = vld [vmem:[%s2594_s0 + $0x144] sm:$0xf]  ;;  %v1578_v35 = vld [vmem:[%s2594_s0 + $0x148] sm:$0xf0]  ;;  %v1569_v37 = vor.u32 %v1805_v31, %v1568_v30  ;;  %v1429_v38 = vor.u32 %v1768_v32, %v1426_v33  ;;  %v1432_v40 = vld [vmem:[%s2594_s0 + $0x20] sm:$0xf] }
   0xc   :  { %v1581_v39 = vor.u32 %v1806_v34, %v1578_v35  ;;  %v1771_v41 = vld [vmem:[%s2594_s0 + $0x24] sm:$0xf0]  ;;  %v1576_v42 = vld [vmem:[%s2594_s0 + $0x140] sm:$0xf]  ;;  %v1770_v44 = vld [vmem:[%s2594_s0 + $0x24] sm:$0xf] }
   0xd   :  { %v1807_v43 = vld [vmem:[%s2594_s0 + $0x144] sm:$0xf0]  ;;  %v1434_v45 = vld [vmem:[%s2594_s0 + $0x28] sm:$0xf0]  ;;  %v1808_v46 = vld [vmem:[%s2594_s0 + $0x154] sm:$0xf]  ;;  %v1433_v48 = vor.u32 %v1771_v41, %v1432_v40 }
   0xe   :  { %732 = vmatpush.bf16.msra.mxu0 %v1842_v6  ;;  %1857 = vmatpush.bf16.msra.mxu2 %v1842_v6  ;;  %v1586_v47 = vld [vmem:[%s2594_s0 + $0x158] sm:$0xf0]  ;;  %v1577_v49 = vor.u32 %v1807_v43, %v1576_v42  ;;  %v1437_v50 = vor.u32 %v1770_v44, %v1434_v45  ;;  %v1440_v52 = vld [vmem:[%s2594_s0 + $0x30] sm:$0xf]  ;;  %v1773_v53 = vld [vmem:[%s2594_s0 + $0x34] sm:$0xf0] }
   0xf   :  { %925 = vmatpush.bf16.msra.mxu1 %v1850_v7  ;;  %1865 = vmatpush.bf16.msra.mxu3 %v1850_v7  ;;  %v1589_v51 = vor.u32 %v1808_v46, %v1586_v47  ;;  %v1584_v54 = vld [vmem:[%s2594_s0 + $0x150] sm:$0xf]  ;;  %v1809_v55 = vld [vmem:[%s2594_s0 + $0x154] sm:$0xf0]  ;;  %v1772_v56 = vld [vmem:[%s2594_s0 + $0x34] sm:$0xf]  ;;  %v1441_v60 = vor.u32 %v1773_v53, %v1440_v52 }
  0x10   :  { %v1442_v57 = vld [vmem:[%s2594_s0 + $0x38] sm:$0xf0]  ;;  %v1810_v58 = vld [vmem:[%s2594_s0 + $0x164] sm:$0xf]  ;;  %v1594_v59 = vld [vmem:[%s2594_s0 + $0x168] sm:$0xf0]  ;;  %v1585_v61 = vor.u32 %v1809_v55, %v1584_v54 }
  0x11   :  { %v1445_v62 = vor.u32 %v1772_v56, %v1442_v57  ;;  %v1597_v63 = vor.u32 %v1810_v58, %v1594_v59  ;;  %v1448_v0 = vld [vmem:[%s2594_s0 + $0x40] sm:$0xf]  ;;  %v1775_v1 = vld [vmem:[%s2594_s0 + $0x44] sm:$0xf0]  ;;  %v1774_v4 = vld [vmem:[%s2594_s0 + $0x44] sm:$0xf] }
  0x12   :  { %733 = vmatpush.bf16.msra.mxu0 %v1841_v8  ;;  %1858 = vmatpush.bf16.msra.mxu2 %v1841_v8  ;;  %v1592_v2 = vld [vmem:[%s2594_s0 + $0x160] sm:$0xf]  ;;  %v1811_v3 = vld [vmem:[%s2594_s0 + $0x164] sm:$0xf0]  ;;  %v1450_v5 = vld [vmem:[%s2594_s0 + $0x48] sm:$0xf0]  ;;  %v1449_v8 = vor.u32 %v1775_v1, %v1448_v0 }
  0x13   :  { %926 = vmatpush.bf16.msra.mxu1 %v1849_v9  ;;  %1866 = vmatpush.bf16.msra.mxu3 %v1849_v9  ;;  %v1812_v6 = vld [vmem:[%s2594_s0 + $0x174] sm:$0xf]  ;;  %v1602_v7 = vld [vmem:[%s2594_s0 + $0x178] sm:$0xf0]  ;;  %v1593_v9 = vor.u32 %v1811_v3, %v1592_v2  ;;  %v1814_v18 = vld [vmem:[%s2594_s0 + $0x184] sm:$0xf] }
  0x14   :  { %v1776_v16 = vld [vmem:[%s2594_s0 + $0x54] sm:$0xf]  ;;  %v1458_v17 = vld [vmem:[%s2594_s0 + $0x58] sm:$0xf0]  ;;  %v1610_v19 = vld [vmem:[%s2594_s0 + $0x188] sm:$0xf0] }
  0x15   :  { %v1461_v22 = vor.u32 %v1776_v16, %v1458_v17  ;;  %v1613_v23 = vor.u32 %v1814_v18, %v1610_v19  ;;  %v1778_v28 = vld [vmem:[%s2594_s0 + $0x64] sm:$0xf]  ;;  %v1466_v29 = vld [vmem:[%s2594_s0 + $0x68] sm:$0xf0]  ;;  %v1816_v30 = vld [vmem:[%s2594_s0 + $0x194] sm:$0xf] }
  0x16   :  { %734 = vmatpush.bf16.msra.mxu0 %v1840_v10  ;;  %1859 = vmatpush.bf16.msra.mxu2 %v1840_v10  ;;  %v1453_v10 = vor.u32 %v1774_v4, %v1450_v5  ;;  %v1618_v31 = vld [vmem:[%s2594_s0 + $0x198] sm:$0xf0]  ;;  %v1469_v34 = vor.u32 %v1778_v28, %v1466_v29  ;;  %v1780_v40 = vld [vmem:[%s2594_s0 + $0x74] sm:$0xf]  ;;  %v1818_v42 = vld [vmem:[%s2594_s0 + $0x1a4] sm:$0xf] }
  0x17   :  { %927 = vmatpush.bf16.msra.mxu1 %v1848_v11  ;;  %1867 = vmatpush.bf16.msra.mxu3 %v1848_v11  ;;  %v1605_v11 = vor.u32 %v1812_v6, %v1602_v7  ;;  %v1621_v35 = vor.u32 %v1816_v30, %v1618_v31  ;;  %v1474_v41 = vld [vmem:[%s2594_s0 + $0x78] sm:$0xf0]  ;;  %v1626_v43 = vld [vmem:[%s2594_s0 + $0x1a8] sm:$0xf0]  ;;  %v1782_v52 = vld [vmem:[%s2594_s0 + $0x84] sm:$0xf] }
  0x18   :  { %v1477_v46 = vor.u32 %v1780_v40, %v1474_v41  ;;  %v1629_v47 = vor.u32 %v1818_v42, %v1626_v43  ;;  %v1482_v53 = vld [vmem:[%s2594_s0 + $0x88] sm:$0xf0]  ;;  %v1820_v54 = vld [vmem:[%s2594_s0 + $0x1b4] sm:$0xf]  ;;  %v1634_v55 = vld [vmem:[%s2594_s0 + $0x1b8] sm:$0xf0] }
  0x19   :  { %v1485_v59 = vor.u32 %v1782_v52, %v1482_v53  ;;  %v1488_v4 = vld [vmem:[%s2594_s0 + $0x90] sm:$0xf]  ;;  %v1785_v5 = vld [vmem:[%s2594_s0 + $0x94] sm:$0xf0]  ;;  %v1787_v28 = vld [vmem:[%s2594_s0 + $0xa4] sm:$0xf0] }
  0x1a   :  { %735 = vmatpush.bf16.msra.mxu0 %v1839_v12  ;;  %1860 = vmatpush.bf16.msra.mxu2 %v1839_v12  ;;  %v1456_v12 = vld [vmem:[%s2594_s0 + $0x50] sm:$0xf]  ;;  %v1821_v7 = vld [vmem:[%s2594_s0 + $0x1b4] sm:$0xf0]  ;;  %v1640_v29 = vld [vmem:[%s2594_s0 + $0x1c0] sm:$0xf] }
  0x1b   :  { %928 = vmatpush.bf16.msra.mxu1 %v1847_v13  ;;  %1868 = vmatpush.bf16.msra.mxu3 %v1847_v13  ;;  %v1777_v13 = vld [vmem:[%s2594_s0 + $0x54] sm:$0xf0]  ;;  %v1632_v6 = vld [vmem:[%s2594_s0 + $0x1b0] sm:$0xf]  ;;  %v1823_v30 = vld [vmem:[%s2594_s0 + $0x1c4] sm:$0xf0] }
  0x1c   :  { %v1457_v20 = vor.u32 %v1777_v13, %v1456_v12  ;;  %v1489_v13 = vor.u32 %v1785_v5, %v1488_v4  ;;  %v1786_v31 = vld [vmem:[%s2594_s0 + $0xa4] sm:$0xf]  ;;  %v1789_v52 = vld [vmem:[%s2594_s0 + $0xb4] sm:$0xf0]  ;;  %v1648_v53 = vld [vmem:[%s2594_s0 + $0x1d0] sm:$0xf] }
  0x1e   :  { %736 = vmatpush.bf16.msra.mxu0 %v1838_v14  ;;  %1861 = vmatpush.bf16.msra.mxu2 %v1838_v14  ;;  %v1600_v14 = vld [vmem:[%s2594_s0 + $0x170] sm:$0xf] }
  0x1f   :  { %929 = vmatpush.bf16.msra.mxu1 %v1846_v15  ;;  %1869 = vmatpush.bf16.msra.mxu3 %v1846_v15  ;;  %v1813_v15 = vld [vmem:[%s2594_s0 + $0x174] sm:$0xf0] }
  0x20   :  { %v1601_v21 = vor.u32 %v1813_v15, %v1600_v14  ;;  %v1633_v14 = vor.u32 %v1821_v7, %v1632_v6 }
  0x21   :  { %737 = vmatmul.bf16.vlgmr.msra.gmra.mxu0 %v1417_v24  ;;  %827 = vmatmul.bf16.vlgmr.msra.gmra.mxu2 %v1561_v25  ;;  %v1464_v24 = vld [vmem:[%s2594_s0 + $0x60] sm:$0xf]  ;;  %v1779_v25 = vld [vmem:[%s2594_s0 + $0x64] sm:$0xf0] }
  0x22   :  { %930 = vmatmul.bf16.vlgmr.msra.gmra.mxu1 %v1421_v26  ;;  %1025 = vmatmul.bf16.vlgmr.msra.gmra.mxu3 %v1573_v27  ;;  %v1608_v26 = vld [vmem:[%s2594_s0 + $0x180] sm:$0xf]  ;;  %v1815_v27 = vld [vmem:[%s2594_s0 + $0x184] sm:$0xf0]  ;;  %v1465_v32 = vor.u32 %v1779_v25, %v1464_v24 }
  0x23   :  { %v1609_v33 = vor.u32 %v1815_v27, %v1608_v26  ;;  %v1496_v27 = vld [vmem:[%s2594_s0 + $0xa0] sm:$0xf] }
  0x31   :  { %742 = vmatmul.bf16.gmra.mxu0 %v1425_v36  ;;  %832 = vmatmul.bf16.gmra.mxu2 %v1569_v37  ;;  %v1472_v36 = vld [vmem:[%s2594_s0 + $0x70] sm:$0xf]  ;;  %v1781_v37 = vld [vmem:[%s2594_s0 + $0x74] sm:$0xf0] }
  0x32   :  { %935 = vmatmul.bf16.gmra.mxu1 %v1429_v38  ;;  %1030 = vmatmul.bf16.gmra.mxu3 %v1581_v39  ;;  %v1616_v38 = vld [vmem:[%s2594_s0 + $0x190] sm:$0xf]  ;;  %v1817_v39 = vld [vmem:[%s2594_s0 + $0x194] sm:$0xf0]  ;;  %v1473_v44 = vor.u32 %v1781_v37, %v1472_v36  ;;  %v1497_v37 = vor.u32 %v1787_v28, %v1496_v27 }
  0x33   :  { %v1617_v45 = vor.u32 %v1817_v39, %v1616_v38  ;;  %v1641_v38 = vor.u32 %v1823_v30, %v1640_v29 }
  0x41   :  { %747 = vmatmul.bf16.gmra.mxu0 %v1433_v48  ;;  %837 = vmatmul.bf16.gmra.mxu2 %v1577_v49  ;;  %v1480_v48 = vld [vmem:[%s2594_s0 + $0x80] sm:$0xf]  ;;  %v1783_v49 = vld [vmem:[%s2594_s0 + $0x84] sm:$0xf0] }
  0x42   :  { %940 = vmatmul.bf16.gmra.mxu1 %v1437_v50  ;;  %1035 = vmatmul.bf16.gmra.mxu3 %v1589_v51  ;;  %v1624_v50 = vld [vmem:[%s2594_s0 + $0x1a0] sm:$0xf]  ;;  %v1819_v51 = vld [vmem:[%s2594_s0 + $0x1a4] sm:$0xf0]  ;;  %v1481_v56 = vor.u32 %v1783_v49, %v1480_v48 }
  0x43   :  { %v1625_v57 = vor.u32 %v1819_v51, %v1624_v50  ;;  %v1504_v51 = vld [vmem:[%s2594_s0 + $0xb0] sm:$0xf] }
  0x51   :  { %752 = vmatmul.bf16.gmra.mxu0 %v1441_v60  ;;  %842 = vmatmul.bf16.gmra.mxu2 %v1585_v61  ;;  %v1637_v60 = vor.u32 %v1820_v54, %v1634_v55  ;;  %v1825_v54 = vld [vmem:[%s2594_s0 + $0x1d4] sm:$0xf0]  ;;  %v1788_v55 = vld [vmem:[%s2594_s0 + $0xb4] sm:$0xf] }
  0x52   :  { %945 = vmatmul.bf16.gmra.mxu1 %v1445_v62  ;;  %1040 = vmatmul.bf16.gmra.mxu3 %v1597_v63 }
  0x61   :  { %757 = vmatmul.bf16.gmra.mxu0 %v1449_v8  ;;  %847 = vmatmul.bf16.gmra.mxu2 %v1593_v9  ;;  %v1784_v8 = vld [vmem:[%s2594_s0 + $0x94] sm:$0xf]  ;;  %v1490_v9 = vld [vmem:[%s2594_s0 + $0x98] sm:$0xf0] }
  0x62   :  { %950 = vmatmul.bf16.gmra.mxu1 %v1453_v10  ;;  %1045 = vmatmul.bf16.gmra.mxu3 %v1605_v11  ;;  %v1822_v10 = vld [vmem:[%s2594_s0 + $0x1c4] sm:$0xf]  ;;  %v1642_v11 = vld [vmem:[%s2594_s0 + $0x1c8] sm:$0xf0]  ;;  %v1493_v17 = vor.u32 %v1784_v8, %v1490_v9 }
  0x63   :  { %v1645_v18 = vor.u32 %v1822_v10, %v1642_v11 }
  0x71   :  { %762 = vmatmul.bf16.gmra.mxu0 %v1457_v20  ;;  %852 = vmatmul.bf16.gmra.mxu2 %v1601_v21 }
  0x72   :  { %955 = vmatmul.bf16.gmra.mxu1 %v1461_v22  ;;  %1050 = vmatmul.bf16.gmra.mxu3 %v1613_v23 }
  0x81   :  { %767 = vmatmul.bf16.gmra.mxu0 %v1465_v32  ;;  %857 = vmatmul.bf16.gmra.mxu2 %v1609_v33  ;;  %v1498_v32 = vld [vmem:[%s2594_s0 + $0xa8] sm:$0xf0]  ;;  %v1824_v33 = vld [vmem:[%s2594_s0 + $0x1d4] sm:$0xf] }
  0x82   :  { %960 = vmatmul.bf16.gmra.mxu1 %v1469_v34  ;;  %1055 = vmatmul.bf16.gmra.mxu3 %v1621_v35  ;;  %v1650_v34 = vld [vmem:[%s2594_s0 + $0x1d8] sm:$0xf0]  ;;  %v1501_v41 = vor.u32 %v1786_v31, %v1498_v32 }
  0x83   :  { %v1653_v42 = vor.u32 %v1824_v33, %v1650_v34 }
  0x91   :  { %772 = vmatmul.bf16.gmra.mxu0 %v1473_v44  ;;  %862 = vmatmul.bf16.gmra.mxu2 %v1617_v45 }
  0x92   :  { %965 = vmatmul.bf16.gmra.mxu1 %v1477_v46  ;;  %1060 = vmatmul.bf16.gmra.mxu3 %v1629_v47 }
  0x9e   :  { %v738_v58 = vpop.f32.mrf.mxu0 }
  0x9f   :  { %v931_v61 = vpop.f32.mrf.mxu1 }
  0xa0   :  { %v932_v62 = vadd.f32 %v931_v61, %v738_v58  ;;  %v1658_v58 = vld [vmem:[%s2594_s0 + $0x1e8] sm:$0xf0]  ;;  %v1505_v61 = vor.u32 %v1789_v52, %v1504_v51 }
  0xa1   :  { %777 = vmatmul.bf16.gmra.mxu0 %v1481_v56  ;;  %867 = vmatmul.bf16.gmra.mxu2 %v1625_v57  ;;  %v1506_v56 = vld [vmem:[%s2594_s0 + $0xb8] sm:$0xf0]  ;;  %v1826_v57 = vld [vmem:[%s2594_s0 + $0x1e4] sm:$0xf] }
  0xa2   :  { %1337 = vst [vmem:[%s2595_s2] sm:$0xff] %v932_v62  ;;  %970 = vmatmul.bf16.gmra.mxu1 %v1485_v59  ;;  %1065 = vmatmul.bf16.gmra.mxu3 %v1637_v60  ;;  %v1649_v62 = vor.u32 %v1825_v54, %v1648_v53 }
  0xa4   :  { %v2152_v63 = vpop.f32.mrf.mxu2 }
  0xa5   :  { %v1026_v0 = vpop.f32.mrf.mxu3 }
  0xa6   :  { %v740_v1 = vpop.f32.mrf.mxu0 }
  0xa7   :  { %v933_v2 = vpop.f32.mrf.mxu1 }
  0xa8   :  { %v934_v3 = vadd.f32 %v933_v2, %v740_v1  ;;  %v1509_v2 = vor.u32 %v1788_v55, %v1506_v56 }
  0xaa   :  { %1338 = vst [vmem:[%s2595_s2 + $0x8] sm:$0xff] %v934_v3  ;;  %v1661_v3 = vor.u32 %v1826_v57, %v1658_v58 }
  0xac   :  { %v2181_v12 = vpop.f32.mrf.mxu2 }
  0xad   :  { %v1028_v15 = vpop.f32.mrf.mxu3 }
  0xae   :  { %v743_v16 = vpop.f32.mrf.mxu0 }
  0xaf   :  { %v936_v19 = vpop.f32.mrf.mxu1 }
  0xb0   :  { %v937_v20 = vadd.f32 %v936_v19, %v743_v16  ;;  %v1827_v16 = vld [vmem:[%s2594_s0 + $0x1e4] sm:$0xf0]  ;;  %v1828_v19 = vld [vmem:[%s2594_s0 + $0x1f4] sm:$0xf] }
  0xb1   :  { %782 = vmatmul.bf16.gmra.mxu0 %v1489_v13  ;;  %872 = vmatmul.bf16.gmra.mxu2 %v1633_v14  ;;  %v1512_v13 = vld [vmem:[%s2594_s0 + $0xc0] sm:$0xf]  ;;  %v1791_v14 = vld [vmem:[%s2594_s0 + $0xc4] sm:$0xf0] }
  0xb2   :  { %1339 = vst [vmem:[%s2595_s2 + $0x10] sm:$0xff] %v937_v20  ;;  %975 = vmatmul.bf16.gmra.mxu1 %v1493_v17  ;;  %1070 = vmatmul.bf16.gmra.mxu3 %v1645_v18  ;;  %v1790_v17 = vld [vmem:[%s2594_s0 + $0xc4] sm:$0xf]  ;;  %v1514_v18 = vld [vmem:[%s2594_s0 + $0xc8] sm:$0xf0] }
  0xb3   :  { %v1666_v20 = vld [vmem:[%s2594_s0 + $0x1f8] sm:$0xf0]  ;;  %v1517_v27 = vor.u32 %v1790_v17, %v1514_v18 }
  0xb4   :  { %v833_v21 = vpop.f32.mrf.mxu2  ;;  %v1669_v28 = vor.u32 %v1828_v19, %v1666_v20 }
  0xb5   :  { %v1027_v22 = vadd.f32 %v1026_v0, %v833_v21  ;;  %v1031_v23 = vpop.f32.mrf.mxu3 }
  0xb6   :  { %v745_v24 = vpop.f32.mrf.mxu0 }
  0xb7   :  { %1375 = vst [vmem:[%s2595_s2 + $0x130] sm:$0xff] %v1027_v22  ;;  %v938_v25 = vpop.f32.mrf.mxu1 }
  0xb8   :  { %v939_v26 = vadd.f32 %v938_v25, %v745_v24 }
  0xba   :  { %1340 = vst [vmem:[%s2595_s2 + $0x18] sm:$0xff] %v939_v26 }
  0xbc   :  { %v835_v35 = vpop.f32.mrf.mxu2 }
  0xbd   :  { %v1029_v36 = vadd.f32 %v1028_v15, %v835_v35  ;;  %v1033_v39 = vpop.f32.mrf.mxu3  ;;  %v1656_v15 = vld [vmem:[%s2594_s0 + $0x1e0] sm:$0xf] }
  0xbe   :  { %v748_v40 = vpop.f32.mrf.mxu0  ;;  %v1657_v24 = vor.u32 %v1827_v16, %v1656_v15 }
  0xbf   :  { %1376 = vst [vmem:[%s2595_s2 + $0x138] sm:$0xff] %v1029_v36  ;;  %v941_v43 = vpop.f32.mrf.mxu1 }
  0xc0   :  { %v942_v44 = vadd.f32 %v941_v43, %v748_v40  ;;  %v1829_v40 = vld [vmem:[%s2594_s0 + $0x1f4] sm:$0xf0]  ;;  %v1830_v43 = vld [vmem:[%s2594_s0 + $0x204] sm:$0xf] }
  0xc1   :  { %787 = vmatmul.bf16.gmra.mxu0 %v1497_v37  ;;  %877 = vmatmul.bf16.gmra.mxu2 %v1641_v38  ;;  %v1520_v37 = vld [vmem:[%s2594_s0 + $0xd0] sm:$0xf]  ;;  %v1793_v38 = vld [vmem:[%s2594_s0 + $0xd4] sm:$0xf0] }
  0xc2   :  { %1341 = vst [vmem:[%s2595_s2 + $0x20] sm:$0xff] %v942_v44  ;;  %980 = vmatmul.bf16.gmra.mxu1 %v1501_v41  ;;  %1075 = vmatmul.bf16.gmra.mxu3 %v1653_v42  ;;  %v1792_v41 = vld [vmem:[%s2594_s0 + $0xd4] sm:$0xf]  ;;  %v1522_v42 = vld [vmem:[%s2594_s0 + $0xd8] sm:$0xf0] }
  0xc3   :  { %v1674_v44 = vld [vmem:[%s2594_s0 + $0x208] sm:$0xf0]  ;;  %v1525_v51 = vor.u32 %v1792_v41, %v1522_v42 }
  0xc4   :  { %v838_v45 = vpop.f32.mrf.mxu2  ;;  %v1677_v52 = vor.u32 %v1830_v43, %v1674_v44 }
  0xc5   :  { %v1032_v46 = vadd.f32 %v1031_v23, %v838_v45  ;;  %v1036_v47 = vpop.f32.mrf.mxu3  ;;  %v1513_v23 = vor.u32 %v1791_v14, %v1512_v13 }
  0xc6   :  { %v750_v48 = vpop.f32.mrf.mxu0 }
  0xc7   :  { %1377 = vst [vmem:[%s2595_s2 + $0x140] sm:$0xff] %v1032_v46  ;;  %v943_v49 = vpop.f32.mrf.mxu1 }
  0xc8   :  { %v944_v50 = vadd.f32 %v943_v49, %v750_v48 }
  0xca   :  { %1342 = vst [vmem:[%s2595_s2 + $0x28] sm:$0xff] %v944_v50 }
  0xcc   :  { %v840_v59 = vpop.f32.mrf.mxu2 }
  0xcd   :  { %v1034_v60 = vadd.f32 %v1033_v39, %v840_v59  ;;  %v1038_v0 = vpop.f32.mrf.mxu3  ;;  %v1664_v39 = vld [vmem:[%s2594_s0 + $0x1f0] sm:$0xf] }
  0xce   :  { %v753_v1 = vpop.f32.mrf.mxu0  ;;  %v1665_v48 = vor.u32 %v1829_v40, %v1664_v39 }
  0xcf   :  { %1378 = vst [vmem:[%s2595_s2 + $0x148] sm:$0xff] %v1034_v60  ;;  %v946_v4 = vpop.f32.mrf.mxu1 }
  0xd0   :  { %v947_v5 = vadd.f32 %v946_v4, %v753_v1  ;;  %v1831_v1 = vld [vmem:[%s2594_s0 + $0x204] sm:$0xf0]  ;;  %v1832_v4 = vld [vmem:[%s2594_s0 + $0x214] sm:$0xf] }
  0xd1   :  { %792 = vmatmul.bf16.gmra.mxu0 %v1505_v61  ;;  %882 = vmatmul.bf16.gmra.mxu2 %v1649_v62  ;;  %v1528_v61 = vld [vmem:[%s2594_s0 + $0xe0] sm:$0xf]  ;;  %v1795_v62 = vld [vmem:[%s2594_s0 + $0xe4] sm:$0xf0] }
  0xd2   :  { %1343 = vst [vmem:[%s2595_s2 + $0x30] sm:$0xff] %v947_v5  ;;  %985 = vmatmul.bf16.gmra.mxu1 %v1509_v2  ;;  %1080 = vmatmul.bf16.gmra.mxu3 %v1661_v3  ;;  %v1794_v2 = vld [vmem:[%s2594_s0 + $0xe4] sm:$0xf]  ;;  %v1530_v3 = vld [vmem:[%s2594_s0 + $0xe8] sm:$0xf0] }
  0xd3   :  { %v1682_v5 = vld [vmem:[%s2594_s0 + $0x218] sm:$0xf0]  ;;  %v1533_v13 = vor.u32 %v1794_v2, %v1530_v3 }
  0xd4   :  { %v843_v6 = vpop.f32.mrf.mxu2  ;;  %v1685_v14 = vor.u32 %v1832_v4, %v1682_v5 }
  0xd5   :  { %v1037_v7 = vadd.f32 %v1036_v47, %v843_v6  ;;  %v1041_v8 = vpop.f32.mrf.mxu3  ;;  %v1521_v47 = vor.u32 %v1793_v38, %v1520_v37 }
  0xd6   :  { %v755_v9 = vpop.f32.mrf.mxu0 }
  0xd7   :  { %1379 = vst [vmem:[%s2595_s2 + $0x150] sm:$0xff] %v1037_v7  ;;  %v948_v10 = vpop.f32.mrf.mxu1 }
  0xd8   :  { %v949_v11 = vadd.f32 %v948_v10, %v755_v9 }
  0xda   :  { %1344 = vst [vmem:[%s2595_s2 + $0x38] sm:$0xff] %v949_v11 }
  0xdc   :  { %v845_v21 = vpop.f32.mrf.mxu2 }
  0xdd   :  { %v1039_v22 = vadd.f32 %v1038_v0, %v845_v21  ;;  %v1043_v25 = vpop.f32.mrf.mxu3  ;;  %v1672_v0 = vld [vmem:[%s2594_s0 + $0x200] sm:$0xf] }
  0xde   :  { %v758_v26 = vpop.f32.mrf.mxu0  ;;  %v1673_v9 = vor.u32 %v1831_v1, %v1672_v0 }
  0xdf   :  { %1380 = vst [vmem:[%s2595_s2 + $0x158] sm:$0xff] %v1039_v22  ;;  %v951_v29 = vpop.f32.mrf.mxu1 }
  0xe0   :  { %v952_v30 = vadd.f32 %v951_v29, %v758_v26  ;;  %v1833_v26 = vld [vmem:[%s2594_s0 + $0x214] sm:$0xf0]  ;;  %v1834_v29 = vld [vmem:[%s2594_s0 + $0x224] sm:$0xf] }
  0xe1   :  { %797 = vmatmul.bf16.gmra.mxu0 %v1513_v23  ;;  %887 = vmatmul.bf16.gmra.mxu2 %v1657_v24  ;;  %v1536_v23 = vld [vmem:[%s2594_s0 + $0xf0] sm:$0xf]  ;;  %v1797_v24 = vld [vmem:[%s2594_s0 + $0xf4] sm:$0xf0] }
  0xe2   :  { %1345 = vst [vmem:[%s2595_s2 + $0x40] sm:$0xff] %v952_v30  ;;  %990 = vmatmul.bf16.gmra.mxu1 %v1517_v27  ;;  %1085 = vmatmul.bf16.gmra.mxu3 %v1669_v28  ;;  %v1796_v27 = vld [vmem:[%s2594_s0 + $0xf4] sm:$0xf]  ;;  %v1538_v28 = vld [vmem:[%s2594_s0 + $0xf8] sm:$0xf0] }
  0xe3   :  { %v1690_v30 = vld [vmem:[%s2594_s0 + $0x228] sm:$0xf0]  ;;  %v1541_v37 = vor.u32 %v1796_v27, %v1538_v28 }
  0xe4   :  { %v848_v31 = vpop.f32.mrf.mxu2  ;;  %v1693_v38 = vor.u32 %v1834_v29, %v1690_v30 }
  0xe5   :  { %v1042_v32 = vadd.f32 %v1041_v8, %v848_v31  ;;  %v1046_v33 = vpop.f32.mrf.mxu3  ;;  %v1529_v8 = vor.u32 %v1795_v62, %v1528_v61 }
  0xe6   :  { %v760_v34 = vpop.f32.mrf.mxu0 }
  0xe7   :  { %1381 = vst [vmem:[%s2595_s2 + $0x160] sm:$0xff] %v1042_v32  ;;  %v953_v35 = vpop.f32.mrf.mxu1 }
  0xe8   :  { %v954_v36 = vadd.f32 %v953_v35, %v760_v34 }
  0xea   :  { %1346 = vst [vmem:[%s2595_s2 + $0x48] sm:$0xff] %v954_v36 }
  0xec   :  { %v850_v45 = vpop.f32.mrf.mxu2 }
  0xed   :  { %v1044_v46 = vadd.f32 %v1043_v25, %v850_v45  ;;  %v1048_v49 = vpop.f32.mrf.mxu3  ;;  %v1680_v25 = vld [vmem:[%s2594_s0 + $0x210] sm:$0xf] }
  0xee   :  { %v763_v50 = vpop.f32.mrf.mxu0  ;;  %v1681_v34 = vor.u32 %v1833_v26, %v1680_v25 }
  0xef   :  { %1382 = vst [vmem:[%s2595_s2 + $0x168] sm:$0xff] %v1044_v46  ;;  %v956_v53 = vpop.f32.mrf.mxu1 }
  0xf0   :  { %v957_v54 = vadd.f32 %v956_v53, %v763_v50  ;;  %v1835_v50 = vld [vmem:[%s2594_s0 + $0x224] sm:$0xf0]  ;;  %v1836_v53 = vld [vmem:[%s2594_s0 + $0x234] sm:$0xf] }
  0xf1   :  { %802 = vmatmul.bf16.gmra.mxu0 %v1521_v47  ;;  %892 = vmatmul.bf16.gmra.mxu2 %v1665_v48  ;;  %v1544_v47 = vld [vmem:[%s2594_s0 + $0x100] sm:$0xf]  ;;  %v1799_v48 = vld [vmem:[%s2594_s0 + $0x104] sm:$0xf0] }
  0xf2   :  { %1347 = vst [vmem:[%s2595_s2 + $0x50] sm:$0xff] %v957_v54  ;;  %995 = vmatmul.bf16.gmra.mxu1 %v1525_v51  ;;  %1090 = vmatmul.bf16.gmra.mxu3 %v1677_v52  ;;  %v1798_v51 = vld [vmem:[%s2594_s0 + $0x104] sm:$0xf]  ;;  %v1546_v52 = vld [vmem:[%s2594_s0 + $0x108] sm:$0xf0] }
  0xf3   :  { %v1698_v54 = vld [vmem:[%s2594_s0 + $0x238] sm:$0xf0]  ;;  %v1549_v61 = vor.u32 %v1798_v51, %v1546_v52 }
  0xf4   :  { %v853_v55 = vpop.f32.mrf.mxu2  ;;  %v1701_v62 = vor.u32 %v1836_v53, %v1698_v54 }
  0xf5   :  { %v1047_v56 = vadd.f32 %v1046_v33, %v853_v55  ;;  %v1051_v57 = vpop.f32.mrf.mxu3  ;;  %v1537_v33 = vor.u32 %v1797_v24, %v1536_v23 }
  0xf6   :  { %v765_v58 = vpop.f32.mrf.mxu0 }
  0xf7   :  { %1383 = vst [vmem:[%s2595_s2 + $0x170] sm:$0xff] %v1047_v56  ;;  %v958_v59 = vpop.f32.mrf.mxu1 }
  0xf8   :  { %v959_v60 = vadd.f32 %v958_v59, %v765_v58 }
  0xfa   :  { %1348 = vst [vmem:[%s2595_s2 + $0x58] sm:$0xff] %v959_v60 }
  0xfc   :  { %v855_v6 = vpop.f32.mrf.mxu2 }
  0xfd   :  { %v1049_v7 = vadd.f32 %v1048_v49, %v855_v6  ;;  %v1053_v10 = vpop.f32.mrf.mxu3  ;;  %v1688_v49 = vld [vmem:[%s2594_s0 + $0x220] sm:$0xf] }
  0xfe   :  { %v768_v11 = vpop.f32.mrf.mxu0  ;;  %v1689_v58 = vor.u32 %v1835_v50, %v1688_v49 }
  0xff   :  { %1384 = vst [vmem:[%s2595_s2 + $0x178] sm:$0xff] %v1049_v7  ;;  %v961_v15 = vpop.f32.mrf.mxu1  ;;  %v233_v7 = vld [vmem:[%s2594_s0 + $0x240] sm:$0xff] }
 0x100   :  { %v962_v16 = vadd.f32 %v961_v15, %v768_v11  ;;  %v1696_v11 = vld [vmem:[%s2594_s0 + $0x230] sm:$0xf]  ;;  %v1800_v15 = vld [vmem:[%s2594_s0 + $0x114] sm:$0xf] }
 0x101   :  { %807 = vmatmul.bf16.gmra.mxu0 %v1529_v8  ;;  %897 = vmatmul.bf16.gmra.mxu2 %v1673_v9  ;;  %v1552_v9 = vld [vmem:[%s2594_s0 + $0x110] sm:$0xf] }
 0x102   :  { %1349 = vst [vmem:[%s2595_s2 + $0x60] sm:$0xff] %v962_v16  ;;  %1000 = vmatmul.bf16.gmra.mxu1 %v1533_v13  ;;  %1095 = vmatmul.bf16.gmra.mxu3 %v1685_v14  ;;  %v1837_v13 = vld [vmem:[%s2594_s0 + $0x234] sm:$0xf0]  ;;  %v484_v14 = vunpack.c.h.b16 %v233_v7  ;;  %v1554_v16 = vld [vmem:[%s2594_s0 + $0x118] sm:$0xf0] }
 0x103   :  { %v1557_v23 = vor.u32 %v1800_v15, %v1554_v16 }
 0x104   :  { %v858_v17 = vpop.f32.mrf.mxu2  ;;  %v558_v24 = vpack.c.b16 %v484_v14, %v484_v14 }
 0x105   :  { %v1052_v18 = vadd.f32 %v1051_v57, %v858_v17  ;;  %v1056_v19 = vpop.f32.mrf.mxu3  ;;  %v1545_v57 = vor.u32 %v1799_v48, %v1544_v47 }
 0x106   :  { %v770_v20 = vpop.f32.mrf.mxu0 }
 0x107   :  { %1385 = vst [vmem:[%s2595_s2 + $0x180] sm:$0xff] %v1052_v18  ;;  %v963_v21 = vpop.f32.mrf.mxu1 }
 0x108   :  { %v964_v22 = vadd.f32 %v963_v21, %v770_v20  ;;  %v1697_v20 = vor.u32 %v1837_v13, %v1696_v11 }
 0x10a   :  { %1350 = vst [vmem:[%s2595_s2 + $0x68] sm:$0xff] %v964_v22 }
 0x10c   :  { %v860_v31 = vpop.f32.mrf.mxu2 }
 0x10d   :  { %v1054_v32 = vadd.f32 %v1053_v10, %v860_v31  ;;  %v1058_v35 = vpop.f32.mrf.mxu3  ;;  %v1801_v10 = vld [vmem:[%s2594_s0 + $0x114] sm:$0xf0] }
 0x10e   :  { %v773_v36 = vpop.f32.mrf.mxu0 }
 0x10f   :  { %1386 = vst [vmem:[%s2595_s2 + $0x188] sm:$0xff] %v1054_v32  ;;  %v966_v39 = vpop.f32.mrf.mxu1 }
 0x110   :  { %v967_v40 = vadd.f32 %v966_v39, %v773_v36 }
 0x111   :  { %812 = vmatmul.bf16.gmra.mxu0 %v1537_v33  ;;  %902 = vmatmul.bf16.gmra.mxu2 %v1681_v34  ;;  %v483_v33 = vunpack.c.l.b16 %v233_v7  ;;  %v1802_v34 = vld [vmem:[%s2594_s0 + $0x124] sm:$0xf] }
 0x112   :  { %1351 = vst [vmem:[%s2595_s2 + $0x70] sm:$0xff] %v967_v40  ;;  %1005 = vmatmul.bf16.gmra.mxu1 %v1541_v37  ;;  %1100 = vmatmul.bf16.gmra.mxu3 %v1693_v38 }
 0x113   :  { %v557_v38 = vpack.c.b16 %v483_v33, %v483_v33 }
 0x114   :  { %v863_v41 = vpop.f32.mrf.mxu2 }
 0x115   :  { %v1057_v42 = vadd.f32 %v1056_v19, %v863_v41  ;;  %v1061_v43 = vpop.f32.mrf.mxu3  ;;  %v1553_v19 = vor.u32 %v1801_v10, %v1552_v9 }
 0x116   :  { %v775_v44 = vpop.f32.mrf.mxu0 }
 0x117   :  { %1387 = vst [vmem:[%s2595_s2 + $0x190] sm:$0xff] %v1057_v42  ;;  %v968_v45 = vpop.f32.mrf.mxu1 }
 0x118   :  { %v969_v46 = vadd.f32 %v968_v45, %v775_v44 }
 0x11a   :  { %1352 = vst [vmem:[%s2595_s2 + $0x78] sm:$0xff] %v969_v46 }
 0x11c   :  { %v865_v55 = vpop.f32.mrf.mxu2 }
 0x11d   :  { %v1059_v56 = vadd.f32 %v1058_v35, %v865_v55  ;;  %v1063_v59 = vpop.f32.mrf.mxu3  ;;  %v1562_v35 = vld [vmem:[%s2594_s0 + $0x128] sm:$0xf0] }
 0x11e   :  { %v778_v60 = vpop.f32.mrf.mxu0  ;;  %v1565_v41 = vor.u32 %v1802_v34, %v1562_v35 }
 0x11f   :  { %1388 = vst [vmem:[%s2595_s2 + $0x198] sm:$0xff] %v1059_v56  ;;  %v971_v0 = vpop.f32.mrf.mxu1 }
 0x120   :  { %v972_v1 = vadd.f32 %v971_v0, %v778_v60 }
 0x121   :  { %817 = vmatmul.bf16.gmra.mxu0 %v1545_v57  ;;  %907 = vmatmul.bf16.gmra.mxu2 %v1689_v58 }
 0x122   :  { %1353 = vst [vmem:[%s2595_s2 + $0x80] sm:$0xff] %v972_v1  ;;  %1010 = vmatmul.bf16.gmra.mxu1 %v1549_v61  ;;  %1105 = vmatmul.bf16.gmra.mxu3 %v1701_v62 }
 0x124   :  { %v868_v2 = vpop.f32.mrf.mxu2 }
 0x125   :  { %v1062_v3 = vadd.f32 %v1061_v43, %v868_v2  ;;  %v1066_v4 = vpop.f32.mrf.mxu3 }
 0x126   :  { %v780_v5 = vpop.f32.mrf.mxu0 }
 0x127   :  { %1389 = vst [vmem:[%s2595_s2 + $0x1a0] sm:$0xff] %v1062_v3  ;;  %v973_v6 = vpop.f32.mrf.mxu1 }
 0x128   :  { %v974_v8 = vadd.f32 %v973_v6, %v780_v5 }
 0x12a   :  { %1354 = vst [vmem:[%s2595_s2 + $0x88] sm:$0xff] %v974_v8 }
 0x12c   :  { %v870_v17 = vpop.f32.mrf.mxu2 }
 0x12d   :  { %v1064_v18 = vadd.f32 %v1063_v59, %v870_v17  ;;  %v1068_v21 = vpop.f32.mrf.mxu3 }
 0x12e   :  { %v783_v22 = vpop.f32.mrf.mxu0 }
 0x12f   :  { %1390 = vst [vmem:[%s2595_s2 + $0x1a8] sm:$0xff] %v1064_v18  ;;  %v976_v25 = vpop.f32.mrf.mxu1 }
 0x130   :  { %v977_v26 = vadd.f32 %v976_v25, %v783_v22 }
 0x131   :  { %822 = vmatmul.bf16.gmra.mxu0 %v1553_v19  ;;  %912 = vmatmul.bf16.gmra.mxu2 %v1697_v20 }
 0x132   :  { %1355 = vst [vmem:[%s2595_s2 + $0x90] sm:$0xff] %v977_v26  ;;  %1015 = vmatmul.bf16.gmra.mxu1 %v1557_v23  ;;  %1110 = vmatmul.bf16.gmra.mxu3 %v558_v24 }
 0x134   :  { %v873_v27 = vpop.f32.mrf.mxu2 }
 0x135   :  { %v1067_v28 = vadd.f32 %v1066_v4, %v873_v27  ;;  %v1071_v29 = vpop.f32.mrf.mxu3 }
 0x136   :  { %v785_v30 = vpop.f32.mrf.mxu0 }
 0x137   :  { %1391 = vst [vmem:[%s2595_s2 + $0x1b0] sm:$0xff] %v1067_v28  ;;  %v978_v31 = vpop.f32.mrf.mxu1 }
 0x138   :  { %v979_v32 = vadd.f32 %v978_v31, %v785_v30 }
 0x13a   :  { %1356 = vst [vmem:[%s2595_s2 + $0x98] sm:$0xff] %v979_v32 }
 0x13c   :  { %v875_v36 = vpop.f32.mrf.mxu2 }
 0x13d   :  { %v1069_v37 = vadd.f32 %v1068_v21, %v875_v36  ;;  %v1073_v39 = vpop.f32.mrf.mxu3 }
 0x13e   :  { %v788_v40 = vpop.f32.mrf.mxu0 }
 0x13f   :  { %1392 = vst [vmem:[%s2595_s2 + $0x1b8] sm:$0xff] %v1069_v37  ;;  %v981_v42 = vpop.f32.mrf.mxu1 }
 0x140   :  { %v982_v43 = vadd.f32 %v981_v42, %v788_v40 }
 0x141   :  { %917 = vmatmul.bf16.gmra.mxu2 %v557_v38 }
 0x142   :  { %1357 = vst [vmem:[%s2595_s2 + $0xa0] sm:$0xff] %v982_v43  ;;  %1020 = vmatmul.bf16.gmra.mxu1 %v1565_v41 }
 0x144   :  { %v878_v44 = vpop.f32.mrf.mxu2 }
 0x145   :  { %v1072_v45 = vadd.f32 %v1071_v29, %v878_v44  ;;  %v1076_v46 = vpop.f32.mrf.mxu3 }
 0x146   :  { %v790_v47 = vpop.f32.mrf.mxu0 }
 0x147   :  { %1393 = vst [vmem:[%s2595_s2 + $0x1c0] sm:$0xff] %v1072_v45  ;;  %v983_v48 = vpop.f32.mrf.mxu1 }
 0x148   :  { %v984_v49 = vadd.f32 %v983_v48, %v790_v47 }
 0x14a   :  { %1358 = vst [vmem:[%s2595_s2 + $0xa8] sm:$0xff] %v984_v49 }
 0x14c   :  { %v880_v50 = vpop.f32.mrf.mxu2 }
 0x14d   :  { %v1074_v51 = vadd.f32 %v1073_v39, %v880_v50  ;;  %v1078_v52 = vpop.f32.mrf.mxu3 }
 0x14e   :  { %v793_v53 = vpop.f32.mrf.mxu0 }
 0x14f   :  { %1394 = vst [vmem:[%s2595_s2 + $0x1c8] sm:$0xff] %v1074_v51  ;;  %v986_v54 = vpop.f32.mrf.mxu1 }
 0x150   :  { %v987_v55 = vadd.f32 %v986_v54, %v793_v53 }
 0x152   :  { %1359 = vst [vmem:[%s2595_s2 + $0xb0] sm:$0xff] %v987_v55 }
 0x154   :  { %v883_v56 = vpop.f32.mrf.mxu2 }
 0x155   :  { %v1077_v57 = vadd.f32 %v1076_v46, %v883_v56  ;;  %v1081_v58 = vpop.f32.mrf.mxu3 }
 0x156   :  { %v795_v59 = vpop.f32.mrf.mxu0 }
 0x157   :  { %1395 = vst [vmem:[%s2595_s2 + $0x1d0] sm:$0xff] %v1077_v57  ;;  %v988_v60 = vpop.f32.mrf.mxu1 }
 0x158   :  { %v989_v61 = vadd.f32 %v988_v60, %v795_v59 }
 0x15a   :  { %1360 = vst [vmem:[%s2595_s2 + $0xb8] sm:$0xff] %v989_v61 }
 0x15c   :  { %v885_v62 = vpop.f32.mrf.mxu2 }
 0x15d   :  { %v1079_v0 = vadd.f32 %v1078_v52, %v885_v62  ;;  %v1083_v1 = vpop.f32.mrf.mxu3 }
 0x15e   :  { %v798_v2 = vpop.f32.mrf.mxu0 }
 0x15f   :  { %1396 = vst [vmem:[%s2595_s2 + $0x1d8] sm:$0xff] %v1079_v0  ;;  %v991_v3 = vpop.f32.mrf.mxu1 }
 0x160   :  { %v992_v4 = vadd.f32 %v991_v3, %v798_v2 }
 0x162   :  { %1361 = vst [vmem:[%s2595_s2 + $0xc0] sm:$0xff] %v992_v4 }
 0x164   :  { %v888_v5 = vpop.f32.mrf.mxu2 }
 0x165   :  { %v1082_v6 = vadd.f32 %v1081_v58, %v888_v5  ;;  %v1086_v7 = vpop.f32.mrf.mxu3 }
 0x166   :  { %v800_v8 = vpop.f32.mrf.mxu0 }
 0x167   :  { %1397 = vst [vmem:[%s2595_s2 + $0x1e0] sm:$0xff] %v1082_v6  ;;  %v993_v9 = vpop.f32.mrf.mxu1 }
 0x168   :  { %v994_v10 = vadd.f32 %v993_v9, %v800_v8 }
 0x16a   :  { %1362 = vst [vmem:[%s2595_s2 + $0xc8] sm:$0xff] %v994_v10 }
 0x16c   :  { %v890_v11 = vpop.f32.mrf.mxu2 }
 0x16d   :  { %v1084_v13 = vadd.f32 %v1083_v1, %v890_v11  ;;  %v1088_v14 = vpop.f32.mrf.mxu3 }
 0x16e   :  { %v803_v15 = vpop.f32.mrf.mxu0 }
 0x16f   :  { %1398 = vst [vmem:[%s2595_s2 + $0x1e8] sm:$0xff] %v1084_v13  ;;  %v996_v16 = vpop.f32.mrf.mxu1 }
 0x170   :  { %v997_v17 = vadd.f32 %v996_v16, %v803_v15 }
 0x172   :  { %1363 = vst [vmem:[%s2595_s2 + $0xd0] sm:$0xff] %v997_v17 }
 0x174   :  { %v893_v18 = vpop.f32.mrf.mxu2 }
 0x175   :  { %v1087_v19 = vadd.f32 %v1086_v7, %v893_v18  ;;  %v1091_v20 = vpop.f32.mrf.mxu3 }
 0x176   :  { %v805_v21 = vpop.f32.mrf.mxu0 }
 0x177   :  { %1399 = vst [vmem:[%s2595_s2 + $0x1f0] sm:$0xff] %v1087_v19  ;;  %v998_v22 = vpop.f32.mrf.mxu1 }
 0x178   :  { %v999_v23 = vadd.f32 %v998_v22, %v805_v21 }
 0x17a   :  { %1364 = vst [vmem:[%s2595_s2 + $0xd8] sm:$0xff] %v999_v23 }
 0x17c   :  { %v895_v24 = vpop.f32.mrf.mxu2 }
 0x17d   :  { %v1089_v25 = vadd.f32 %v1088_v14, %v895_v24  ;;  %v1093_v26 = vpop.f32.mrf.mxu3 }
 0x17e   :  { %v808_v27 = vpop.f32.mrf.mxu0 }
 0x17f   :  { %1400 = vst [vmem:[%s2595_s2 + $0x1f8] sm:$0xff] %v1089_v25  ;;  %v1001_v28 = vpop.f32.mrf.mxu1 }
 0x180   :  { %v1002_v29 = vadd.f32 %v1001_v28, %v808_v27 }
 0x182   :  { %1365 = vst [vmem:[%s2595_s2 + $0xe0] sm:$0xff] %v1002_v29 }
 0x184   :  { %v898_v30 = vpop.f32.mrf.mxu2 }
 0x185   :  { %v1092_v31 = vadd.f32 %v1091_v20, %v898_v30  ;;  %v1096_v32 = vpop.f32.mrf.mxu3 }
 0x186   :  { %v810_v33 = vpop.f32.mrf.mxu0 }
 0x187   :  { %1401 = vst [vmem:[%s2595_s2 + $0x200] sm:$0xff] %v1092_v31  ;;  %v1003_v34 = vpop.f32.mrf.mxu1 }
 0x188   :  { %v1004_v35 = vadd.f32 %v1003_v34, %v810_v33 }
 0x18a   :  { %1366 = vst [vmem:[%s2595_s2 + $0xe8] sm:$0xff] %v1004_v35 }
 0x18c   :  { %v900_v36 = vpop.f32.mrf.mxu2 }
 0x18d   :  { %v1094_v37 = vadd.f32 %v1093_v26, %v900_v36  ;;  %v1098_v38 = vpop.f32.mrf.mxu3 }
 0x18e   :  { %v813_v39 = vpop.f32.mrf.mxu0 }
 0x18f   :  { %1402 = vst [vmem:[%s2595_s2 + $0x208] sm:$0xff] %v1094_v37  ;;  %v1006_v40 = vpop.f32.mrf.mxu1 }
 0x190   :  { %v1007_v41 = vadd.f32 %v1006_v40, %v813_v39 }
 0x192   :  { %1367 = vst [vmem:[%s2595_s2 + $0xf0] sm:$0xff] %v1007_v41 }
 0x194   :  { %v903_v42 = vpop.f32.mrf.mxu2 }
 0x195   :  { %v1097_v43 = vadd.f32 %v1096_v32, %v903_v42  ;;  %v1101_v44 = vpop.f32.mrf.mxu3 }
 0x196   :  { %v815_v45 = vpop.f32.mrf.mxu0 }
 0x197   :  { %1403 = vst [vmem:[%s2595_s2 + $0x210] sm:$0xff] %v1097_v43  ;;  %v1008_v46 = vpop.f32.mrf.mxu1 }
 0x198   :  { %v1009_v47 = vadd.f32 %v1008_v46, %v815_v45 }
 0x19a   :  { %1368 = vst [vmem:[%s2595_s2 + $0xf8] sm:$0xff] %v1009_v47 }
 0x19c   :  { %v905_v48 = vpop.f32.mrf.mxu2 }
 0x19d   :  { %v1099_v49 = vadd.f32 %v1098_v38, %v905_v48  ;;  %v1103_v50 = vpop.f32.mrf.mxu3 }
 0x19e   :  { %v818_v51 = vpop.f32.mrf.mxu0 }
 0x19f   :  { %1404 = vst [vmem:[%s2595_s2 + $0x218] sm:$0xff] %v1099_v49  ;;  %v1011_v52 = vpop.f32.mrf.mxu1 }
 0x1a0   :  { %v1012_v53 = vadd.f32 %v1011_v52, %v818_v51 }
 0x1a2   :  { %1369 = vst [vmem:[%s2595_s2 + $0x100] sm:$0xff] %v1012_v53 }
 0x1a4   :  { %v908_v54 = vpop.f32.mrf.mxu2 }
 0x1a5   :  { %v1102_v55 = vadd.f32 %v1101_v44, %v908_v54  ;;  %v1106_v56 = vpop.f32.mrf.mxu3 }
 0x1a6   :  { %v820_v57 = vpop.f32.mrf.mxu0 }
 0x1a7   :  { %1405 = vst [vmem:[%s2595_s2 + $0x220] sm:$0xff] %v1102_v55  ;;  %v1013_v58 = vpop.f32.mrf.mxu1 }
 0x1a8   :  { %v1014_v59 = vadd.f32 %v1013_v58, %v820_v57 }
 0x1aa   :  { %1370 = vst [vmem:[%s2595_s2 + $0x108] sm:$0xff] %v1014_v59 }
 0x1ac   :  { %v910_v60 = vpop.f32.mrf.mxu2 }
 0x1ad   :  { %v1104_v61 = vadd.f32 %v1103_v50, %v910_v60  ;;  %v1108_v62 = vpop.f32.mrf.mxu3 }
 0x1ae   :  { %v823_v0 = vpop.f32.mrf.mxu0 }
 0x1af   :  { %1406 = vst [vmem:[%s2595_s2 + $0x228] sm:$0xff] %v1104_v61  ;;  %v1016_v1 = vpop.f32.mrf.mxu1 }
 0x1b0   :  { %v1017_v2 = vadd.f32 %v1016_v1, %v823_v0 }
 0x1b2   :  { %1371 = vst [vmem:[%s2595_s2 + $0x110] sm:$0xff] %v1017_v2 }
 0x1b4   :  { %v913_v3 = vpop.f32.mrf.mxu2 }
 0x1b5   :  { %v1107_v4 = vadd.f32 %v1106_v56, %v913_v3  ;;  %v1111_v5 = vpop.f32.mrf.mxu3 }
 0x1b6   :  { %v825_v6 = vpop.f32.mrf.mxu0 }
 0x1b7   :  { %1407 = vst [vmem:[%s2595_s2 + $0x230] sm:$0xff] %v1107_v4  ;;  %v1018_v7 = vpop.f32.mrf.mxu1 }
 0x1b8   :  { %v1019_v8 = vadd.f32 %v1018_v7, %v825_v6 }
 0x1ba   :  { %1372 = vst [vmem:[%s2595_s2 + $0x118] sm:$0xff] %v1019_v8 }
 0x1bc   :  { %v915_v9 = vpop.f32.mrf.mxu2 }
 0x1bd   :  { %v1109_v10 = vadd.f32 %v1108_v62, %v915_v9  ;;  %v1113_v11 = vpop.f32.mrf.mxu3 }
 0x1bf   :  { %1408 = vst [vmem:[%s2595_s2 + $0x238] sm:$0xff] %v1109_v10  ;;  %v1021_v13 = vpop.f32.mrf.mxu1 }
 0x1c0   :  { %v1022_v14 = vadd.f32 %v1021_v13, %v2152_v63 }
 0x1c2   :  { %1373 = vst [vmem:[%s2595_s2 + $0x120] sm:$0xff] %v1022_v14 }
 0x1c4   :  { %v918_v15 = vpop.f32.mrf.mxu2 }
 0x1c5   :  { %v1112_v16 = vadd.f32 %v1111_v5, %v918_v15 }
 0x1c7   :  { %1409 = vst [vmem:[%s2595_s2 + $0x240] sm:$0xff] %v1112_v16  ;;  %v1023_v17 = vpop.f32.mrf.mxu1 }
 0x1c8   :  { %v1024_v18 = vadd.f32 %v1023_v17, %v2181_v12 }
 0x1ca   :  { %1374 = vst [vmem:[%s2595_s2 + $0x128] sm:$0xff] %v1024_v18 }
 0x1cc   :  { %v920_v19 = vpop.f32.mrf.mxu2 }

// kernel: patchgan_forward.11
= control target key start
LH: loop header
LB: loop body
LE: loop exit
PB: predicated region body
PF: predicated region fallthrough
CT: control target
= control target key end

     0   :  { %s1433_s1 = inlined_call_operand.vmem [shape: bf16[512,128], index: 1, kind: input, shape index: {}]   ;;  %s1434_s0 = inlined_call_operand.vmem [shape: bf16[128,512], index: 0, kind: input, shape index: {}]   ;;  %s1435_s2 = inlined_call_operand.vmem [shape: f32[128,128], index: 2, kind: output, shape index: {}]  }
   0x1   :  { %v1057_v0 = vld [vmem:[%s1433_s1 + $0x38] sm:$0xff]  ;;  %v1056_v4 = vld [vmem:[%s1433_s1 + $0x30] sm:$0xff]  ;;  %v1055_v8 = vld [vmem:[%s1433_s1 + $0x28] sm:$0xff] }
   0x2   :  { %v1065_v1 = vld [vmem:[%s1433_s1 + $0x78] sm:$0xff]  ;;  %495 = vmatpush.bf16.msra.mxu0 %v1057_v0  ;;  %v1064_v5 = vld [vmem:[%s1433_s1 + $0x70] sm:$0xff]  ;;  %v1063_v9 = vld [vmem:[%s1433_s1 + $0x68] sm:$0xff] }
   0x3   :  { %v1073_v2 = vld [vmem:[%s1433_s1 + $0xb8] sm:$0xff]  ;;  %544 = vmatpush.bf16.msra.mxu1 %v1065_v1  ;;  %v1072_v6 = vld [vmem:[%s1433_s1 + $0xb0] sm:$0xff]  ;;  %v1071_v10 = vld [vmem:[%s1433_s1 + $0xa8] sm:$0xff] }
   0x4   :  { %v1081_v3 = vld [vmem:[%s1433_s1 + $0xf8] sm:$0xff]  ;;  %593 = vmatpush.bf16.msra.mxu2 %v1073_v2  ;;  %v1080_v7 = vld [vmem:[%s1433_s1 + $0xf0] sm:$0xff]  ;;  %v1079_v11 = vld [vmem:[%s1433_s1 + $0xe8] sm:$0xff] }
   0x5   :  { %642 = vmatpush.bf16.msra.mxu3 %v1081_v3  ;;  %v1054_v12 = vld [vmem:[%s1433_s1 + $0x20] sm:$0xff]  ;;  %v1053_v16 = vld [vmem:[%s1433_s1 + $0x18] sm:$0xff]  ;;  %v1052_v20 = vld [vmem:[%s1433_s1 + $0x10] sm:$0xff] }
   0x6   :  { %496 = vmatpush.bf16.msra.mxu0 %v1056_v4  ;;  %v1062_v13 = vld [vmem:[%s1433_s1 + $0x60] sm:$0xff]  ;;  %v1061_v17 = vld [vmem:[%s1433_s1 + $0x58] sm:$0xff]  ;;  %v1060_v21 = vld [vmem:[%s1433_s1 + $0x50] sm:$0xff] }
   0x7   :  { %545 = vmatpush.bf16.msra.mxu1 %v1064_v5  ;;  %v1070_v14 = vld [vmem:[%s1433_s1 + $0xa0] sm:$0xff]  ;;  %v1069_v18 = vld [vmem:[%s1433_s1 + $0x98] sm:$0xff]  ;;  %v1068_v22 = vld [vmem:[%s1433_s1 + $0x90] sm:$0xff] }
   0x8   :  { %594 = vmatpush.bf16.msra.mxu2 %v1072_v6  ;;  %v1078_v15 = vld [vmem:[%s1433_s1 + $0xe0] sm:$0xff]  ;;  %v1077_v19 = vld [vmem:[%s1433_s1 + $0xd8] sm:$0xff]  ;;  %v1076_v23 = vld [vmem:[%s1433_s1 + $0xd0] sm:$0xff] }
   0x9   :  { %643 = vmatpush.bf16.msra.mxu3 %v1080_v7  ;;  %v1051_v24 = vld [vmem:[%s1433_s1 + $0x8] sm:$0xff]  ;;  %v1050_v28 = vld [vmem:[%s1433_s1] sm:$0xff]  ;;  %v1020_v33 = vld [vmem:[%s1434_s0 + $0xc] sm:$0xf0] }
   0xa   :  { %497 = vmatpush.bf16.msra.mxu0 %v1055_v8  ;;  %v1059_v25 = vld [vmem:[%s1433_s1 + $0x48] sm:$0xff]  ;;  %v1058_v29 = vld [vmem:[%s1433_s1 + $0x40] sm:$0xff]  ;;  %v766_v35 = vld [vmem:[%s1434_s0 + $0x10] sm:$0xf0] }
   0xb   :  { %546 = vmatpush.bf16.msra.mxu1 %v1063_v9  ;;  %v1067_v26 = vld [vmem:[%s1433_s1 + $0x88] sm:$0xff]  ;;  %v1066_v30 = vld [vmem:[%s1433_s1 + $0x80] sm:$0xff]  ;;  %v1021_v37 = vld [vmem:[%s1434_s0 + $0x14] sm:$0xf0] }
   0xc   :  { %595 = vmatpush.bf16.msra.mxu2 %v1071_v10  ;;  %v1075_v27 = vld [vmem:[%s1433_s1 + $0xc8] sm:$0xff]  ;;  %v1074_v31 = vld [vmem:[%s1433_s1 + $0xc0] sm:$0xff]  ;;  %v774_v39 = vld [vmem:[%s1434_s0 + $0x18] sm:$0xf0] }
   0xd   :  { %644 = vmatpush.bf16.msra.mxu3 %v1079_v11  ;;  %v764_v32 = vld [vmem:[%s1434_s0] sm:$0xf]  ;;  %v1018_v34 = vld [vmem:[%s1434_s0 + $0x4] sm:$0xf]  ;;  %v772_v36 = vld [vmem:[%s1434_s0 + $0x8] sm:$0xf] }
   0xe   :  { %498 = vmatpush.bf16.msra.mxu0 %v1054_v12  ;;  %v1019_v38 = vld [vmem:[%s1434_s0 + $0xc] sm:$0xf]  ;;  %v765_v40 = vor.u32 %v1020_v33, %v764_v32  ;;  %v769_v41 = vor.u32 %v1018_v34, %v766_v35  ;;  %v773_v42 = vor.u32 %v1021_v37, %v772_v36  ;;  %v780_v44 = vld [vmem:[%s1434_s0 + $0x20] sm:$0xf]  ;;  %v1024_v45 = vld [vmem:[%s1434_s0 + $0x2c] sm:$0xf0] }
   0xf   :  { %547 = vmatpush.bf16.msra.mxu1 %v1062_v13  ;;  %v777_v43 = vor.u32 %v1019_v38, %v774_v39  ;;  %v1022_v46 = vld [vmem:[%s1434_s0 + $0x24] sm:$0xf]  ;;  %v782_v47 = vld [vmem:[%s1434_s0 + $0x30] sm:$0xf0]  ;;  %v788_v48 = vld [vmem:[%s1434_s0 + $0x28] sm:$0xf]  ;;  %v781_v52 = vor.u32 %v1024_v45, %v780_v44 }
  0x10   :  { %596 = vmatpush.bf16.msra.mxu2 %v1070_v14  ;;  %v1025_v49 = vld [vmem:[%s1434_s0 + $0x34] sm:$0xf0]  ;;  %v1023_v50 = vld [vmem:[%s1434_s0 + $0x2c] sm:$0xf]  ;;  %v790_v51 = vld [vmem:[%s1434_s0 + $0x38] sm:$0xf0]  ;;  %v785_v53 = vor.u32 %v1022_v46, %v782_v47 }
  0x11   :  { %645 = vmatpush.bf16.msra.mxu3 %v1078_v15  ;;  %v789_v54 = vor.u32 %v1025_v49, %v788_v48  ;;  %v793_v55 = vor.u32 %v1023_v50, %v790_v51  ;;  %v796_v56 = vld [vmem:[%s1434_s0 + $0x40] sm:$0xf]  ;;  %v1028_v57 = vld [vmem:[%s1434_s0 + $0x4c] sm:$0xf0]  ;;  %v1026_v58 = vld [vmem:[%s1434_s0 + $0x44] sm:$0xf] }
  0x12   :  { %499 = vmatpush.bf16.msra.mxu0 %v1053_v16  ;;  %v798_v59 = vld [vmem:[%s1434_s0 + $0x50] sm:$0xf0]  ;;  %v804_v60 = vld [vmem:[%s1434_s0 + $0x48] sm:$0xf]  ;;  %v1029_v61 = vld [vmem:[%s1434_s0 + $0x54] sm:$0xf0]  ;;  %v797_v0 = vor.u32 %v1028_v57, %v796_v56 }
  0x13   :  { %548 = vmatpush.bf16.msra.mxu1 %v1061_v17  ;;  %v1027_v62 = vld [vmem:[%s1434_s0 + $0x4c] sm:$0xf]  ;;  %v806_v63 = vld [vmem:[%s1434_s0 + $0x58] sm:$0xf0]  ;;  %v801_v1 = vor.u32 %v1026_v58, %v798_v59  ;;  %v805_v2 = vor.u32 %v1029_v61, %v804_v60  ;;  %v812_v4 = vld [vmem:[%s1434_s0 + $0x60] sm:$0xf] }
  0x14   :  { %597 = vmatpush.bf16.msra.mxu2 %v1069_v18  ;;  %v809_v3 = vor.u32 %v1027_v62, %v806_v63  ;;  %v1032_v5 = vld [vmem:[%s1434_s0 + $0x6c] sm:$0xf0]  ;;  %v1030_v6 = vld [vmem:[%s1434_s0 + $0x64] sm:$0xf]  ;;  %v814_v7 = vld [vmem:[%s1434_s0 + $0x70] sm:$0xf0] }
  0x15   :  { %646 = vmatpush.bf16.msra.mxu3 %v1077_v19  ;;  %v820_v8 = vld [vmem:[%s1434_s0 + $0x68] sm:$0xf]  ;;  %v1033_v9 = vld [vmem:[%s1434_s0 + $0x74] sm:$0xf0]  ;;  %v1031_v10 = vld [vmem:[%s1434_s0 + $0x6c] sm:$0xf]  ;;  %v813_v12 = vor.u32 %v1032_v5, %v812_v4  ;;  %v817_v13 = vor.u32 %v1030_v6, %v814_v7 }
  0x16   :  { %500 = vmatpush.bf16.msra.mxu0 %v1052_v20  ;;  %v822_v11 = vld [vmem:[%s1434_s0 + $0x78] sm:$0xf0]  ;;  %v821_v14 = vor.u32 %v1033_v9, %v820_v8  ;;  %v828_v16 = vld [vmem:[%s1434_s0 + $0x80] sm:$0xf]  ;;  %v1036_v17 = vld [vmem:[%s1434_s0 + $0x8c] sm:$0xf0] }
  0x17   :  { %549 = vmatpush.bf16.msra.mxu1 %v1060_v21  ;;  %v825_v15 = vor.u32 %v1031_v10, %v822_v11  ;;  %v1034_v18 = vld [vmem:[%s1434_s0 + $0x84] sm:$0xf]  ;;  %v830_v19 = vld [vmem:[%s1434_s0 + $0x90] sm:$0xf0]  ;;  %v836_v20 = vld [vmem:[%s1434_s0 + $0x88] sm:$0xf] }
  0x18   :  { %598 = vmatpush.bf16.msra.mxu2 %v1068_v22  ;;  %v1037_v21 = vld [vmem:[%s1434_s0 + $0x94] sm:$0xf0]  ;;  %v1035_v22 = vld [vmem:[%s1434_s0 + $0x8c] sm:$0xf]  ;;  %v852_v32 = vld [vmem:[%s1434_s0 + $0xa8] sm:$0xf] }
  0x19   :  { %647 = vmatpush.bf16.msra.mxu3 %v1076_v23  ;;  %v838_v23 = vld [vmem:[%s1434_s0 + $0x98] sm:$0xf0]  ;;  %v1041_v33 = vld [vmem:[%s1434_s0 + $0xb4] sm:$0xf0]  ;;  %v1039_v34 = vld [vmem:[%s1434_s0 + $0xac] sm:$0xf] }
  0x1a   :  { %501 = vmatpush.bf16.msra.mxu0 %v1051_v24  ;;  %v829_v24 = vor.u32 %v1036_v17, %v828_v16  ;;  %v854_v35 = vld [vmem:[%s1434_s0 + $0xb8] sm:$0xf0]  ;;  %v853_v38 = vor.u32 %v1041_v33, %v852_v32  ;;  %v868_v44 = vld [vmem:[%s1434_s0 + $0xc8] sm:$0xf]  ;;  %v1045_v45 = vld [vmem:[%s1434_s0 + $0xd4] sm:$0xf0] }
  0x1b   :  { %550 = vmatpush.bf16.msra.mxu1 %v1059_v25  ;;  %v833_v25 = vor.u32 %v1034_v18, %v830_v19  ;;  %v857_v39 = vor.u32 %v1039_v34, %v854_v35  ;;  %v1043_v46 = vld [vmem:[%s1434_s0 + $0xcc] sm:$0xf]  ;;  %v870_v47 = vld [vmem:[%s1434_s0 + $0xd8] sm:$0xf0]  ;;  %v869_v50 = vor.u32 %v1045_v45, %v868_v44  ;;  %v884_v56 = vld [vmem:[%s1434_s0 + $0xe8] sm:$0xf] }
  0x1c   :  { %599 = vmatpush.bf16.msra.mxu2 %v1067_v26  ;;  %v837_v26 = vor.u32 %v1037_v21, %v836_v20  ;;  %v873_v51 = vor.u32 %v1043_v46, %v870_v47  ;;  %v1049_v57 = vld [vmem:[%s1434_s0 + $0xf4] sm:$0xf0]  ;;  %v1047_v58 = vld [vmem:[%s1434_s0 + $0xec] sm:$0xf]  ;;  %v886_v59 = vld [vmem:[%s1434_s0 + $0xf8] sm:$0xf0] }
  0x1d   :  { %648 = vmatpush.bf16.msra.mxu3 %v1075_v27  ;;  %v841_v27 = vor.u32 %v1035_v22, %v838_v23  ;;  %v885_v62 = vor.u32 %v1049_v57, %v884_v56  ;;  %v889_v63 = vor.u32 %v1047_v58, %v886_v59 }
  0x1e   :  { %502 = vmatpush.bf16.msra.mxu0 %v1050_v28  ;;  %v844_v28 = vld [vmem:[%s1434_s0 + $0xa0] sm:$0xf] }
  0x1f   :  { %551 = vmatpush.bf16.msra.mxu1 %v1058_v29  ;;  %v1040_v29 = vld [vmem:[%s1434_s0 + $0xac] sm:$0xf0] }
  0x20   :  { %600 = vmatpush.bf16.msra.mxu2 %v1066_v30  ;;  %v1038_v30 = vld [vmem:[%s1434_s0 + $0xa4] sm:$0xf]  ;;  %v845_v36 = vor.u32 %v1040_v29, %v844_v28 }
  0x21   :  { %649 = vmatpush.bf16.msra.mxu3 %v1074_v31  ;;  %503 = vmatmul.bf16.vlgmr.msra.gmra.mxu0 %v765_v40  ;;  %v846_v31 = vld [vmem:[%s1434_s0 + $0xb0] sm:$0xf0]  ;;  %v860_v40 = vld [vmem:[%s1434_s0 + $0xc0] sm:$0xf] }
  0x22   :  { %552 = vmatmul.bf16.vlgmr.msra.gmra.mxu1 %v769_v41  ;;  %v849_v37 = vor.u32 %v1038_v30, %v846_v31  ;;  %v1044_v41 = vld [vmem:[%s1434_s0 + $0xcc] sm:$0xf0] }
  0x23   :  { %601 = vmatmul.bf16.vlgmr.msra.gmra.mxu2 %v773_v42  ;;  %v1042_v42 = vld [vmem:[%s1434_s0 + $0xc4] sm:$0xf]  ;;  %v861_v48 = vor.u32 %v1044_v41, %v860_v40 }
  0x24   :  { %650 = vmatmul.bf16.vlgmr.msra.gmra.mxu3 %v777_v43  ;;  %v862_v43 = vld [vmem:[%s1434_s0 + $0xd0] sm:$0xf0] }
  0x25   :  { %v865_v49 = vor.u32 %v1042_v42, %v862_v43 }
  0x31   :  { %508 = vmatmul.bf16.gmra.mxu0 %v781_v52  ;;  %v876_v52 = vld [vmem:[%s1434_s0 + $0xe0] sm:$0xf] }
  0x32   :  { %557 = vmatmul.bf16.gmra.mxu1 %v785_v53  ;;  %v1048_v53 = vld [vmem:[%s1434_s0 + $0xec] sm:$0xf0] }
  0x33   :  { %606 = vmatmul.bf16.gmra.mxu2 %v789_v54  ;;  %v1046_v54 = vld [vmem:[%s1434_s0 + $0xe4] sm:$0xf]  ;;  %v877_v60 = vor.u32 %v1048_v53, %v876_v52 }
  0x34   :  { %655 = vmatmul.bf16.gmra.mxu3 %v793_v55  ;;  %v878_v55 = vld [vmem:[%s1434_s0 + $0xf0] sm:$0xf0] }
  0x35   :  { %v881_v61 = vor.u32 %v1046_v54, %v878_v55 }
  0x41   :  { %513 = vmatmul.bf16.gmra.mxu0 %v797_v0 }
  0x42   :  { %562 = vmatmul.bf16.gmra.mxu1 %v801_v1 }
  0x43   :  { %611 = vmatmul.bf16.gmra.mxu2 %v805_v2 }
  0x44   :  { %660 = vmatmul.bf16.gmra.mxu3 %v809_v3 }
  0x51   :  { %518 = vmatmul.bf16.gmra.mxu0 %v813_v12 }
  0x52   :  { %567 = vmatmul.bf16.gmra.mxu1 %v817_v13 }
  0x53   :  { %616 = vmatmul.bf16.gmra.mxu2 %v821_v14 }
  0x54   :  { %665 = vmatmul.bf16.gmra.mxu3 %v825_v15 }
  0x61   :  { %523 = vmatmul.bf16.gmra.mxu0 %v829_v24 }
  0x62   :  { %572 = vmatmul.bf16.gmra.mxu1 %v833_v25 }
  0x63   :  { %621 = vmatmul.bf16.gmra.mxu2 %v837_v26 }
  0x64   :  { %670 = vmatmul.bf16.gmra.mxu3 %v841_v27 }
  0x71   :  { %528 = vmatmul.bf16.gmra.mxu0 %v845_v36 }
  0x72   :  { %577 = vmatmul.bf16.gmra.mxu1 %v849_v37 }
  0x73   :  { %626 = vmatmul.bf16.gmra.mxu2 %v853_v38 }
  0x74   :  { %675 = vmatmul.bf16.gmra.mxu3 %v857_v39 }
  0x81   :  { %533 = vmatmul.bf16.gmra.mxu0 %v861_v48 }
  0x82   :  { %582 = vmatmul.bf16.gmra.mxu1 %v865_v49 }
  0x83   :  { %631 = vmatmul.bf16.gmra.mxu2 %v869_v50 }
  0x84   :  { %680 = vmatmul.bf16.gmra.mxu3 %v873_v51 }
  0x91   :  { %538 = vmatmul.bf16.gmra.mxu0 %v877_v60 }
  0x92   :  { %587 = vmatmul.bf16.gmra.mxu1 %v881_v61 }
  0x93   :  { %636 = vmatmul.bf16.gmra.mxu2 %v885_v62 }
  0x94   :  { %685 = vmatmul.bf16.gmra.mxu3 %v889_v63 }
  0x9e   :  { %v504_v0 = vpop.f32.mrf.mxu0 }
  0x9f   :  { %v553_v1 = vpop.f32.mrf.mxu1 }
  0xa0   :  { %v554_v2 = vadd.f32 %v553_v1, %v504_v0 }
  0xa6   :  { %v602_v3 = vpop.f32.mrf.mxu2  ;;  %v506_v6 = vpop.f32.mrf.mxu0 }
  0xa7   :  { %v651_v4 = vpop.f32.mrf.mxu3  ;;  %v603_v5 = vadd.f32 %v602_v3, %v554_v2  ;;  %v555_v7 = vpop.f32.mrf.mxu1 }
  0xa8   :  { %v556_v9 = vadd.f32 %v555_v7, %v506_v6 }
  0xa9   :  { %v652_v8 = vadd.f32 %v651_v4, %v603_v5 }
  0xab   :  { %742 = vst [vmem:[%s1435_s2] sm:$0xff] %v652_v8 }
  0xae   :  { %v604_v10 = vpop.f32.mrf.mxu2  ;;  %v509_v13 = vpop.f32.mrf.mxu0 }
  0xaf   :  { %v653_v11 = vpop.f32.mrf.mxu3  ;;  %v605_v12 = vadd.f32 %v604_v10, %v556_v9  ;;  %v558_v14 = vpop.f32.mrf.mxu1 }
  0xb0   :  { %v559_v16 = vadd.f32 %v558_v14, %v509_v13 }
  0xb1   :  { %v654_v15 = vadd.f32 %v653_v11, %v605_v12 }
  0xb3   :  { %743 = vst [vmem:[%s1435_s2 + $0x8] sm:$0xff] %v654_v15 }
  0xb6   :  { %v607_v17 = vpop.f32.mrf.mxu2  ;;  %v511_v20 = vpop.f32.mrf.mxu0 }
  0xb7   :  { %v656_v18 = vpop.f32.mrf.mxu3  ;;  %v608_v19 = vadd.f32 %v607_v17, %v559_v16  ;;  %v560_v21 = vpop.f32.mrf.mxu1 }
  0xb8   :  { %v561_v23 = vadd.f32 %v560_v21, %v511_v20 }
  0xb9   :  { %v657_v22 = vadd.f32 %v656_v18, %v608_v19 }
  0xbb   :  { %744 = vst [vmem:[%s1435_s2 + $0x10] sm:$0xff] %v657_v22 }
  0xbe   :  { %v609_v24 = vpop.f32.mrf.mxu2  ;;  %v514_v27 = vpop.f32.mrf.mxu0 }
  0xbf   :  { %v658_v25 = vpop.f32.mrf.mxu3  ;;  %v610_v26 = vadd.f32 %v609_v24, %v561_v23  ;;  %v563_v28 = vpop.f32.mrf.mxu1 }
  0xc0   :  { %v564_v30 = vadd.f32 %v563_v28, %v514_v27 }
  0xc1   :  { %v659_v29 = vadd.f32 %v658_v25, %v610_v26 }
  0xc3   :  { %745 = vst [vmem:[%s1435_s2 + $0x18] sm:$0xff] %v659_v29 }
  0xc6   :  { %v612_v31 = vpop.f32.mrf.mxu2  ;;  %v516_v34 = vpop.f32.mrf.mxu0 }
  0xc7   :  { %v661_v32 = vpop.f32.mrf.mxu3  ;;  %v613_v33 = vadd.f32 %v612_v31, %v564_v30  ;;  %v565_v35 = vpop.f32.mrf.mxu1 }
  0xc8   :  { %v566_v37 = vadd.f32 %v565_v35, %v516_v34 }
  0xc9   :  { %v662_v36 = vadd.f32 %v661_v32, %v613_v33 }
  0xcb   :  { %746 = vst [vmem:[%s1435_s2 + $0x20] sm:$0xff] %v662_v36 }
  0xce   :  { %v614_v38 = vpop.f32.mrf.mxu2  ;;  %v519_v41 = vpop.f32.mrf.mxu0 }
  0xcf   :  { %v663_v39 = vpop.f32.mrf.mxu3  ;;  %v615_v40 = vadd.f32 %v614_v38, %v566_v37  ;;  %v568_v42 = vpop.f32.mrf.mxu1 }
  0xd0   :  { %v569_v44 = vadd.f32 %v568_v42, %v519_v41 }
  0xd1   :  { %v664_v43 = vadd.f32 %v663_v39, %v615_v40 }
  0xd3   :  { %747 = vst [vmem:[%s1435_s2 + $0x28] sm:$0xff] %v664_v43 }
  0xd6   :  { %v617_v45 = vpop.f32.mrf.mxu2  ;;  %v521_v48 = vpop.f32.mrf.mxu0 }
  0xd7   :  { %v666_v46 = vpop.f32.mrf.mxu3  ;;  %v618_v47 = vadd.f32 %v617_v45, %v569_v44  ;;  %v570_v49 = vpop.f32.mrf.mxu1 }
  0xd8   :  { %v571_v51 = vadd.f32 %v570_v49, %v521_v48 }
  0xd9   :  { %v667_v50 = vadd.f32 %v666_v46, %v618_v47 }
  0xdb   :  { %748 = vst [vmem:[%s1435_s2 + $0x30] sm:$0xff] %v667_v50 }
  0xde   :  { %v619_v52 = vpop.f32.mrf.mxu2  ;;  %v524_v55 = vpop.f32.mrf.mxu0 }
  0xdf   :  { %v668_v53 = vpop.f32.mrf.mxu3  ;;  %v620_v54 = vadd.f32 %v619_v52, %v571_v51  ;;  %v573_v56 = vpop.f32.mrf.mxu1 }
  0xe0   :  { %v574_v58 = vadd.f32 %v573_v56, %v524_v55 }
  0xe1   :  { %v669_v57 = vadd.f32 %v668_v53, %v620_v54 }
  0xe3   :  { %749 = vst [vmem:[%s1435_s2 + $0x38] sm:$0xff] %v669_v57 }
  0xe6   :  { %v622_v59 = vpop.f32.mrf.mxu2  ;;  %v526_v62 = vpop.f32.mrf.mxu0 }
  0xe7   :  { %v671_v60 = vpop.f32.mrf.mxu3  ;;  %v623_v61 = vadd.f32 %v622_v59, %v574_v58  ;;  %v575_v63 = vpop.f32.mrf.mxu1 }
  0xe8   :  { %v576_v1 = vadd.f32 %v575_v63, %v526_v62 }
  0xe9   :  { %v672_v0 = vadd.f32 %v671_v60, %v623_v61 }
  0xeb   :  { %750 = vst [vmem:[%s1435_s2 + $0x40] sm:$0xff] %v672_v0 }
  0xee   :  { %v624_v2 = vpop.f32.mrf.mxu2  ;;  %v529_v5 = vpop.f32.mrf.mxu0 }
  0xef   :  { %v673_v3 = vpop.f32.mrf.mxu3  ;;  %v625_v4 = vadd.f32 %v624_v2, %v576_v1  ;;  %v578_v6 = vpop.f32.mrf.mxu1 }
  0xf0   :  { %v579_v8 = vadd.f32 %v578_v6, %v529_v5 }
  0xf1   :  { %v674_v7 = vadd.f32 %v673_v3, %v625_v4 }
  0xf3   :  { %751 = vst [vmem:[%s1435_s2 + $0x48] sm:$0xff] %v674_v7 }
  0xf6   :  { %v627_v9 = vpop.f32.mrf.mxu2  ;;  %v531_v12 = vpop.f32.mrf.mxu0 }
  0xf7   :  { %v676_v10 = vpop.f32.mrf.mxu3  ;;  %v628_v11 = vadd.f32 %v627_v9, %v579_v8  ;;  %v580_v13 = vpop.f32.mrf.mxu1 }
  0xf8   :  { %v581_v15 = vadd.f32 %v580_v13, %v531_v12 }
  0xf9   :  { %v677_v14 = vadd.f32 %v676_v10, %v628_v11 }
  0xfb   :  { %752 = vst [vmem:[%s1435_s2 + $0x50] sm:$0xff] %v677_v14 }
  0xfe   :  { %v629_v16 = vpop.f32.mrf.mxu2  ;;  %v534_v19 = vpop.f32.mrf.mxu0 }
  0xff   :  { %v678_v17 = vpop.f32.mrf.mxu3  ;;  %v630_v18 = vadd.f32 %v629_v16, %v581_v15  ;;  %v583_v20 = vpop.f32.mrf.mxu1 }
 0x100   :  { %v584_v22 = vadd.f32 %v583_v20, %v534_v19 }
 0x101   :  { %v679_v21 = vadd.f32 %v678_v17, %v630_v18 }
 0x103   :  { %753 = vst [vmem:[%s1435_s2 + $0x58] sm:$0xff] %v679_v21 }
 0x106   :  { %v632_v23 = vpop.f32.mrf.mxu2  ;;  %v536_v26 = vpop.f32.mrf.mxu0 }
 0x107   :  { %v681_v24 = vpop.f32.mrf.mxu3  ;;  %v633_v25 = vadd.f32 %v632_v23, %v584_v22  ;;  %v585_v27 = vpop.f32.mrf.mxu1 }
 0x108   :  { %v586_v29 = vadd.f32 %v585_v27, %v536_v26 }
 0x109   :  { %v682_v28 = vadd.f32 %v681_v24, %v633_v25 }
 0x10b   :  { %754 = vst [vmem:[%s1435_s2 + $0x60] sm:$0xff] %v682_v28 }
 0x10e   :  { %v634_v30 = vpop.f32.mrf.mxu2  ;;  %v539_v33 = vpop.f32.mrf.mxu0 }
 0x10f   :  { %v683_v31 = vpop.f32.mrf.mxu3  ;;  %v635_v32 = vadd.f32 %v634_v30, %v586_v29  ;;  %v588_v34 = vpop.f32.mrf.mxu1 }
 0x110   :  { %v589_v36 = vadd.f32 %v588_v34, %v539_v33 }
 0x111   :  { %v684_v35 = vadd.f32 %v683_v31, %v635_v32 }
 0x113   :  { %755 = vst [vmem:[%s1435_s2 + $0x68] sm:$0xff] %v684_v35 }
 0x116   :  { %v637_v37 = vpop.f32.mrf.mxu2  ;;  %v541_v41 = vpop.f32.mrf.mxu0 }
 0x117   :  { %v686_v38 = vpop.f32.mrf.mxu3  ;;  %v638_v39 = vadd.f32 %v637_v37, %v589_v36  ;;  %v590_v42 = vpop.f32.mrf.mxu1 }
 0x118   :  { %v591_v43 = vadd.f32 %v590_v42, %v541_v41 }
 0x119   :  { %v687_v40 = vadd.f32 %v686_v38, %v638_v39 }
 0x11b   :  { %756 = vst [vmem:[%s1435_s2 + $0x70] sm:$0xff] %v687_v40 }
 0x11e   :  { %v639_v44 = vpop.f32.mrf.mxu2 }
 0x11f   :  { %v640_v45 = vadd.f32 %v639_v44, %v591_v43  ;;  %v688_v46 = vpop.f32.mrf.mxu3 }
 0x121   :  { %v689_v47 = vadd.f32 %v688_v46, %v640_v45 }
 0x123   :  { %757 = vst [vmem:[%s1435_s2 + $0x78] sm:$0xff] %v689_v47 }

// kernel: patchgan_forward.12
= control target key start
LH: loop header
LB: loop body
LE: loop exit
PB: predicated region body
PF: predicated region fallthrough
CT: control target
= control target key end

     0   :  { %v255_v18 = vmov 128.0   ;;  %s507_s0 = inlined_call_operand.vmem [shape: f32[128,128], index: 0, kind: input, shape index: {}]   ;;  %s508_s1 = inlined_call_operand.vmem [shape: f32[1,128], index: 1, kind: input, shape index: {}]   ;;  %s509_s2 = inlined_call_operand.vmem [shape: f32[1,128], index: 2, kind: input, shape index: {}]   ;;  %s510_s3 = inlined_call_operand.vmem [shape: f32[128,128], index: 3, kind: output, shape index: {}]  }
   0x1   :  { %v14_v0 = vld [vmem:[%s507_s0] sm:$0xff]  ;;  %v15_v1 = vld [vmem:[%s507_s0 + $0x8] sm:$0xff]  ;;  %v16_v2 = vld [vmem:[%s507_s0 + $0x10] sm:$0xff]  ;;  %251 = vrcp.f32 %v255_v18 }
   0x2   :  { %v30_v3 = vadd.f32 %v15_v1, %v14_v0  ;;  %v17_v4 = vld [vmem:[%s507_s0 + $0x18] sm:$0xff]  ;;  %v18_v6 = vld [vmem:[%s507_s0 + $0x20] sm:$0xff]  ;;  %v19_v8 = vld [vmem:[%s507_s0 + $0x28] sm:$0xff] }
   0x3   :  { %v20_v10 = vld [vmem:[%s507_s0 + $0x30] sm:$0xff]  ;;  %v21_v12 = vld [vmem:[%s507_s0 + $0x38] sm:$0xff]  ;;  %v22_v14 = vld [vmem:[%s507_s0 + $0x40] sm:$0xff] }
   0x4   :  { %v31_v5 = vadd.f32 %v30_v3, %v16_v2  ;;  %v23_v16 = vld [vmem:[%s507_s0 + $0x48] sm:$0xff]  ;;  %v24_v19 = vld [vmem:[%s507_s0 + $0x50] sm:$0xff]  ;;  %v25_v21 = vld [vmem:[%s507_s0 + $0x58] sm:$0xff] }
   0x5   :  { %v26_v23 = vld [vmem:[%s507_s0 + $0x60] sm:$0xff]  ;;  %v27_v26 = vld [vmem:[%s507_s0 + $0x68] sm:$0xff]  ;;  %v28_v28 = vld [vmem:[%s507_s0 + $0x70] sm:$0xff] }
   0x6   :  { %v32_v7 = vadd.f32 %v31_v5, %v17_v4  ;;  %v29_v31 = vld [vmem:[%s507_s0 + $0x78] sm:$0xff] }
   0x7   :  { %v252_v24 = vpop.eup %251 }
   0x8   :  { %v33_v9 = vadd.f32 %v32_v7, %v18_v6  ;;  %v52_v29 = vmul.f32 128.0, %v252_v24  ;;  %vm56_vm0 = vweird.f32 %v252_v24 }
   0xa   :  { %v34_v11 = vadd.f32 %v33_v9, %v19_v8  ;;  %v53_v33 = vsub.f32 1.0, %v52_v29 }
   0xc   :  { %v35_v13 = vadd.f32 %v34_v11, %v20_v10  ;;  %v54_v36 = vmul.f32 %v252_v24, %v53_v33 }
   0xe   :  { %v36_v15 = vadd.f32 %v35_v13, %v21_v12  ;;  %v55_v39 = vadd.f32 %v252_v24, %v54_v36 }
  0x10   :  { %v37_v17 = vadd.f32 %v36_v15, %v22_v14  ;;  %v57_v42 = vsel %vm56_vm0, %v252_v24, %v55_v39 }
  0x12   :  { %v38_v20 = vadd.f32 %v37_v17, %v23_v16 }
  0x14   :  { %v39_v22 = vadd.f32 %v38_v20, %v24_v19 }
  0x16   :  { %v40_v25 = vadd.f32 %v39_v22, %v25_v21 }
  0x18   :  { %v41_v27 = vadd.f32 %v40_v25, %v26_v23 }
  0x1a   :  { %v42_v30 = vadd.f32 %v41_v27, %v27_v26 }
  0x1c   :  { %v43_v32 = vadd.f32 %v42_v30, %v28_v28 }
  0x1e   :  { %v44_v34 = vadd.f32 %v43_v32, %v29_v31 }
  0x20   :  { %v45_v35 = vrot.slane %v44_v34, 4 }
  0x22   :  { %v46_v37 = vadd.f32 %v45_v35, %v44_v34 }
  0x24   :  { %v47_v38 = vrot.slane %v46_v37, 2 }
  0x26   :  { %v48_v40 = vadd.f32 %v47_v38, %v46_v37 }
  0x28   :  { %v49_v41 = vrot.slane %v48_v40, 1 }
  0x2a   :  { %v50_v43 = vadd.f32 %v49_v41, %v48_v40 }
  0x2c   :  { %v58_v44 = vmul.f32 %v57_v42, %v50_v43  ;;  %v387_v43 = vld [vmem:[%s508_s1] ss:$0 sm:$0xff] }
  0x2e   :  { %v324_v45 = vsub.f32 %v14_v0, %v58_v44  ;;  %v326_v46 = vsub.f32 %v15_v1, %v58_v44  ;;  %v328_v47 = vsub.f32 %v16_v2, %v58_v44  ;;  %v330_v48 = vsub.f32 %v17_v4, %v58_v44 }
  0x2f   :  { %v336_v51 = vsub.f32 %v18_v6, %v58_v44  ;;  %v340_v53 = vsub.f32 %v19_v8, %v58_v44  ;;  %v344_v56 = vsub.f32 %v20_v10, %v58_v44  ;;  %v66_v59 = vsub.f32 %v21_v12, %v58_v44 }
  0x30   :  { %v75_v49 = vmul.f32 %v324_v45, %v324_v45  ;;  %v76_v50 = vmul.f32 %v326_v46, %v326_v46  ;;  %v77_v52 = vmul.f32 %v328_v47, %v328_v47  ;;  %v78_v54 = vmul.f32 %v330_v48, %v330_v48 }
  0x31   :  { %v79_v57 = vmul.f32 %v336_v51, %v336_v51  ;;  %v80_v60 = vmul.f32 %v340_v53, %v340_v53  ;;  %v350_v62 = vsub.f32 %v22_v14, %v58_v44  ;;  %v81_v63 = vmul.f32 %v344_v56, %v344_v56 }
  0x32   :  { %v91_v55 = vadd.f32 %v76_v50, %v75_v49  ;;  %v354_v1 = vsub.f32 %v23_v16, %v58_v44  ;;  %v82_v2 = vmul.f32 %v66_v59, %v66_v59  ;;  %v356_v4 = vsub.f32 %v24_v19, %v58_v44  ;;  %v396_v49 = vld [vmem:[%s509_s2] ss:$0 sm:$0xff] }
  0x33   :  { %v83_v5 = vmul.f32 %v350_v62, %v350_v62  ;;  %v360_v7 = vsub.f32 %v25_v21, %v58_v44  ;;  %v364_v10 = vsub.f32 %v26_v23, %v58_v44  ;;  %v368_v13 = vsub.f32 %v27_v26, %v58_v44 }
  0x34   :  { %v92_v58 = vadd.f32 %v91_v55, %v77_v52  ;;  %v84_v8 = vmul.f32 %v354_v1, %v354_v1  ;;  %v85_v11 = vmul.f32 %v356_v4, %v356_v4  ;;  %v372_v16 = vsub.f32 %v28_v28, %v58_v44 }
  0x35   :  { %v86_v14 = vmul.f32 %v360_v7, %v360_v7  ;;  %v87_v17 = vmul.f32 %v364_v10, %v364_v10  ;;  %v376_v19 = vsub.f32 %v29_v31, %v58_v44  ;;  %v88_v20 = vmul.f32 %v368_v13, %v368_v13 }
  0x36   :  { %v93_v61 = vadd.f32 %v92_v58, %v78_v54  ;;  %v89_v22 = vmul.f32 %v372_v16, %v372_v16 }
  0x37   :  { %v90_v24 = vmul.f32 %v376_v19, %v376_v19 }
  0x38   :  { %v94_v0 = vadd.f32 %v93_v61, %v79_v57 }
  0x3a   :  { %v95_v3 = vadd.f32 %v94_v0, %v80_v60 }
  0x3c   :  { %v96_v6 = vadd.f32 %v95_v3, %v81_v63 }
  0x3e   :  { %v97_v9 = vadd.f32 %v96_v6, %v82_v2 }
  0x40   :  { %v98_v12 = vadd.f32 %v97_v9, %v83_v5 }
  0x42   :  { %v99_v15 = vadd.f32 %v98_v12, %v84_v8 }
  0x44   :  { %v100_v18 = vadd.f32 %v99_v15, %v85_v11 }
  0x46   :  { %v101_v21 = vadd.f32 %v100_v18, %v86_v14 }
  0x48   :  { %v102_v23 = vadd.f32 %v101_v21, %v87_v17 }
  0x4a   :  { %v103_v25 = vadd.f32 %v102_v23, %v88_v20 }
  0x4c   :  { %v104_v26 = vadd.f32 %v103_v25, %v89_v22 }
  0x4e   :  { %v105_v27 = vadd.f32 %v104_v26, %v90_v24 }
  0x50   :  { %v106_v28 = vrot.slane %v105_v27, 4 }
  0x52   :  { %v107_v29 = vadd.f32 %v106_v28, %v105_v27 }
  0x54   :  { %v108_v30 = vrot.slane %v107_v29, 2 }
  0x56   :  { %v109_v32 = vadd.f32 %v108_v30, %v107_v29 }
  0x58   :  { %v110_v31 = vrot.slane %v109_v32, 1 }
  0x5a   :  { %v111_v33 = vadd.f32 %v110_v31, %v109_v32 }
  0x5c   :  { %v112_v34 = vmul.f32 %v111_v33, %v57_v42 }
  0x5e   :  { %v113_v35 = vadd.f32 1e-05, %v112_v34 }
  0x60   :  { %253 = vrsqrt.f32 %v113_v35  ;;  %vm120_vm1 = vweird.f32 %v113_v35 }
  0x66   :  { %v254_v36 = vpop.eup %253 }
  0x67   :  { %v115_v37 = vmul.f32 %v254_v36, %v113_v35  ;;  %vm121_vm2 = vweird.f32 %v254_v36 }
  0x68   :  { %vm122_vm3 = vmor %vm120_vm1, %vm121_vm2 }
  0x69   :  { %v116_v38 = vmul.f32 %v254_v36, %v115_v37 }
  0x6b   :  { %v117_v39 = vmul.f32 0.5, %v116_v38 }
  0x6d   :  { %v118_v40 = vsub.f32 1.5, %v117_v39 }
  0x6f   :  { %v119_v41 = vmul.f32 %v254_v36, %v118_v40 }
  0x71   :  { %v389_v44 = vsel %vm122_vm3, %v254_v36, %v119_v41 }
  0x72   :  { %v124_v42 = vmul.f32 %v389_v44, %v324_v45  ;;  %v125_v50 = vmul.f32 %v389_v44, %v326_v46  ;;  %v126_v52 = vmul.f32 %v389_v44, %v328_v47  ;;  %v127_v54 = vmul.f32 %v389_v44, %v330_v48 }
  0x73   :  { %v128_v55 = vmul.f32 %v389_v44, %v336_v51  ;;  %v129_v45 = vmul.f32 %v389_v44, %v340_v53  ;;  %v130_v57 = vmul.f32 %v389_v44, %v344_v56  ;;  %v131_v58 = vmul.f32 %v389_v44, %v66_v59 }
  0x74   :  { %v144_v60 = vmul.f32 %v387_v43, %v124_v42  ;;  %v145_v46 = vmul.f32 %v387_v43, %v125_v50  ;;  %v146_v47 = vmul.f32 %v387_v43, %v126_v52  ;;  %v147_v61 = vmul.f32 %v387_v43, %v127_v54 }
  0x75   :  { %v148_v48 = vmul.f32 %v387_v43, %v128_v55  ;;  %v149_v51 = vmul.f32 %v387_v43, %v129_v45  ;;  %v150_v63 = vmul.f32 %v387_v43, %v130_v57  ;;  %v151_v53 = vmul.f32 %v387_v43, %v131_v58 }
  0x76   :  { %v164_v56 = vadd.f32 %v396_v49, %v144_v60  ;;  %v165_v59 = vadd.f32 %v396_v49, %v145_v46  ;;  %v166_v0 = vadd.f32 %v396_v49, %v146_v47  ;;  %v167_v2 = vadd.f32 %v396_v49, %v147_v61 }
  0x77   :  { %v168_v3 = vadd.f32 %v396_v49, %v148_v48  ;;  %v169_v5 = vadd.f32 %v396_v49, %v149_v51  ;;  %v170_v6 = vadd.f32 %v396_v49, %v150_v63  ;;  %v171_v8 = vadd.f32 %v396_v49, %v151_v53 }
  0x78   :  { %vm180_vm4 = vcmp.gt.f32.partialorder %v164_v56, 0.0  ;;  %v196_v9 = vmul.f32 0.2, %v164_v56  ;;  %vm181_vm5 = vcmp.gt.f32.partialorder %v165_v59, 0.0  ;;  %v197_v11 = vmul.f32 0.2, %v165_v59 }
  0x79   :  { %vm182_vm6 = vcmp.gt.f32.partialorder %v166_v0, 0.0  ;;  %v198_v12 = vmul.f32 0.2, %v166_v0  ;;  %vm183_vm7 = vcmp.gt.f32.partialorder %v167_v2, 0.0  ;;  %v199_v14 = vmul.f32 0.2, %v167_v2 }
  0x7a   :  { %v212_v15 = vsel %vm180_vm4, %v164_v56, %v196_v9  ;;  %v213_v17 = vsel %vm181_vm5, %v165_v59, %v197_v11  ;;  %vm184_vm8 = vcmp.gt.f32.partialorder %v168_v3, 0.0  ;;  %v200_v18 = vmul.f32 0.2, %v168_v3 }
  0x7b   :  { %228 = vst [vmem:[%s510_s3] sm:$0xff] %v212_v15  ;;  %v214_v20 = vsel %vm182_vm6, %v166_v0, %v198_v12  ;;  %v215_v21 = vsel %vm183_vm7, %v167_v2, %v199_v14  ;;  %vm185_vm9 = vcmp.gt.f32.partialorder %v169_v5, 0.0  ;;  %v201_v22 = vmul.f32 0.2, %v169_v5 }
  0x7c   :  { %229 = vst [vmem:[%s510_s3 + $0x8] sm:$0xff] %v213_v17  ;;  %v216_v23 = vsel %vm184_vm8, %v168_v3, %v200_v18  ;;  %vm186_vm10 = vcmp.gt.f32.partialorder %v170_v6, 0.0  ;;  %v202_v24 = vmul.f32 0.2, %v170_v6  ;;  %vm187_vm11 = vcmp.gt.f32.partialorder %v171_v8, 0.0 }
  0x7d   :  { %230 = vst [vmem:[%s510_s3 + $0x10] sm:$0xff] %v214_v20  ;;  %v217_v25 = vsel %vm185_vm9, %v169_v5, %v201_v22  ;;  %v203_v26 = vmul.f32 0.2, %v171_v8  ;;  %v132_v27 = vmul.f32 %v389_v44, %v350_v62  ;;  %v133_v28 = vmul.f32 %v389_v44, %v354_v1 }
  0x7e   :  { %231 = vst [vmem:[%s510_s3 + $0x18] sm:$0xff] %v215_v21  ;;  %v218_v29 = vsel %vm186_vm10, %v170_v6, %v202_v24  ;;  %v134_v30 = vmul.f32 %v389_v44, %v356_v4  ;;  %v135_v32 = vmul.f32 %v389_v44, %v360_v7  ;;  %v136_v31 = vmul.f32 %v389_v44, %v364_v10 }
  0x7f   :  { %232 = vst [vmem:[%s510_s3 + $0x20] sm:$0xff] %v216_v23  ;;  %v219_v62 = vsel %vm187_vm11, %v171_v8, %v203_v26  ;;  %v152_v1 = vmul.f32 %v387_v43, %v132_v27  ;;  %v153_v33 = vmul.f32 %v387_v43, %v133_v28  ;;  %v137_v34 = vmul.f32 %v389_v44, %v368_v13 }
  0x80   :  { %233 = vst [vmem:[%s510_s3 + $0x28] sm:$0xff] %v217_v25  ;;  %v154_v4 = vmul.f32 %v387_v43, %v134_v30  ;;  %v155_v7 = vmul.f32 %v387_v43, %v135_v32  ;;  %v156_v10 = vmul.f32 %v387_v43, %v136_v31  ;;  %v138_v35 = vmul.f32 %v389_v44, %v372_v16 }
  0x81   :  { %234 = vst [vmem:[%s510_s3 + $0x30] sm:$0xff] %v218_v29  ;;  %v172_v36 = vadd.f32 %v396_v49, %v152_v1  ;;  %v173_v13 = vadd.f32 %v396_v49, %v153_v33  ;;  %v157_v37 = vmul.f32 %v387_v43, %v137_v34  ;;  %v139_v38 = vmul.f32 %v389_v44, %v376_v19 }
  0x82   :  { %235 = vst [vmem:[%s510_s3 + $0x38] sm:$0xff] %v219_v62  ;;  %v174_v39 = vadd.f32 %v396_v49, %v154_v4  ;;  %v175_v16 = vadd.f32 %v396_v49, %v155_v7  ;;  %v176_v40 = vadd.f32 %v396_v49, %v156_v10  ;;  %v158_v41 = vmul.f32 %v387_v43, %v138_v35 }
  0x83   :  { %vm188_vm12 = vcmp.gt.f32.partialorder %v172_v36, 0.0  ;;  %v204_v42 = vmul.f32 0.2, %v172_v36  ;;  %vm189_vm13 = vcmp.gt.f32.partialorder %v173_v13, 0.0  ;;  %v205_v50 = vmul.f32 0.2, %v173_v13 }
  0x84   :  { %vm190_vm14 = vcmp.gt.f32.partialorder %v174_v39, 0.0  ;;  %v206_v52 = vmul.f32 0.2, %v174_v39  ;;  %vm191_vm15 = vcmp.gt.f32.partialorder %v175_v16, 0.0  ;;  %v207_v19 = vmul.f32 0.2, %v175_v16 }
  0x85   :  { %v220_v44 = vsel %vm188_vm12, %v172_v36, %v204_v42  ;;  %v221_v54 = vsel %vm189_vm13, %v173_v13, %v205_v50  ;;  %vm192_vm0 = vcmp.gt.f32.partialorder %v176_v40, 0.0  ;;  %v208_v55 = vmul.f32 0.2, %v176_v40 }
  0x86   :  { %236 = vst [vmem:[%s510_s3 + $0x40] sm:$0xff] %v220_v44  ;;  %v222_v45 = vsel %vm190_vm14, %v174_v39, %v206_v52  ;;  %v223_v57 = vsel %vm191_vm15, %v175_v16, %v207_v19  ;;  %v177_v58 = vadd.f32 %v396_v49, %v157_v37  ;;  %v178_v60 = vadd.f32 %v396_v49, %v158_v41 }
  0x87   :  { %237 = vst [vmem:[%s510_s3 + $0x48] sm:$0xff] %v221_v54  ;;  %v224_v46 = vsel %vm192_vm0, %v176_v40, %v208_v55  ;;  %v159_v47 = vmul.f32 %v387_v43, %v139_v38 }
  0x88   :  { %238 = vst [vmem:[%s510_s3 + $0x50] sm:$0xff] %v222_v45  ;;  %vm193_vm1 = vcmp.gt.f32.partialorder %v177_v58, 0.0  ;;  %v209_v61 = vmul.f32 0.2, %v177_v58  ;;  %vm194_vm2 = vcmp.gt.f32.partialorder %v178_v60, 0.0 }
  0x89   :  { %239 = vst [vmem:[%s510_s3 + $0x58] sm:$0xff] %v223_v57  ;;  %v210_v48 = vmul.f32 0.2, %v178_v60  ;;  %v179_v51 = vadd.f32 %v396_v49, %v159_v47 }
  0x8a   :  { %240 = vst [vmem:[%s510_s3 + $0x60] sm:$0xff] %v224_v46  ;;  %v225_v63 = vsel %vm193_vm1, %v177_v58, %v209_v61 }
  0x8b   :  { %241 = vst [vmem:[%s510_s3 + $0x68] sm:$0xff] %v225_v63  ;;  %v226_v43 = vsel %vm194_vm2, %v178_v60, %v210_v48  ;;  %vm195_vm3 = vcmp.gt.f32.partialorder %v179_v51, 0.0  ;;  %v211_v53 = vmul.f32 0.2, %v179_v51 }
  0x8c   :  { %242 = vst [vmem:[%s510_s3 + $0x70] sm:$0xff] %v226_v43 }
  0x8d   :  { %v227_v56 = vsel %vm195_vm3, %v179_v51, %v211_v53 }
  0x8e   :  { %243 = vst [vmem:[%s510_s3 + $0x78] sm:$0xff] %v227_v56 }

// kernel: patchgan_forward.14
= control target key start
LH: loop header
LB: loop body
LE: loop exit
PB: predicated region body
PF: predicated region fallthrough
CT: control target
= control target key end

     0   :  { %v111_v3 = vmov 32.0   ;;  %s162_s0 = inlined_call_operand.vmem [shape: f32[32,128], index: 0, kind: input, shape index: {}]   ;;  %s163_s1 = inlined_call_operand.vmem [shape: f32[1,128], index: 1, kind: input, shape index: {}]   ;;  %s164_s2 = inlined_call_operand.vmem [shape: f32[1,128], index: 2, kind: input, shape index: {}]   ;;  %s165_s3 = inlined_call_operand.vmem [shape: f32[32,128], index: 3, kind: output, shape index: {}]  }
   0x1   :  { %v14_v0 = vld [vmem:[%s162_s0] sm:$0xff]  ;;  %v15_v1 = vld [vmem:[%s162_s0 + $0x8] sm:$0xff]  ;;  %v16_v2 = vld [vmem:[%s162_s0 + $0x10] sm:$0xff]  ;;  %107 = vrcp.f32 %v111_v3 }
   0x2   :  { %v18_v4 = vadd.f32 %v15_v1, %v14_v0  ;;  %v17_v5 = vld [vmem:[%s162_s0 + $0x18] sm:$0xff]  ;;  %v105_v46 = vld [vmem:[%s163_s1] ss:$0 sm:$0xff] }
   0x3   :  { %v106_v49 = vld [vmem:[%s164_s2] ss:$0 sm:$0xff] }
   0x4   :  { %v19_v6 = vadd.f32 %v18_v4, %v16_v2 }
   0x6   :  { %v20_v7 = vadd.f32 %v19_v6, %v17_v5 }
   0x7   :  { %v108_v8 = vpop.eup %107 }
   0x8   :  { %v21_v9 = vrot.slane %v20_v7, 4  ;;  %v28_v10 = vmul.f32 32.0, %v108_v8  ;;  %vm32_vm0 = vweird.f32 %v108_v8 }
   0xa   :  { %v22_v11 = vadd.f32 %v21_v9, %v20_v7  ;;  %v29_v12 = vsub.f32 1.0, %v28_v10 }
   0xc   :  { %v23_v13 = vrot.slane %v22_v11, 2  ;;  %v30_v14 = vmul.f32 %v108_v8, %v29_v12 }
   0xe   :  { %v24_v15 = vadd.f32 %v23_v13, %v22_v11  ;;  %v31_v16 = vadd.f32 %v108_v8, %v30_v14 }
  0x10   :  { %v25_v17 = vrot.slane %v24_v15, 1  ;;  %v33_v18 = vsel %vm32_vm0, %v108_v8, %v31_v16 }
  0x12   :  { %v26_v19 = vadd.f32 %v25_v17, %v24_v15 }
  0x14   :  { %v34_v20 = vmul.f32 %v33_v18, %v26_v19 }
  0x16   :  { %v35_v21 = vsub.f32 %v14_v0, %v34_v20  ;;  %v36_v22 = vsub.f32 %v15_v1, %v34_v20  ;;  %v37_v23 = vsub.f32 %v16_v2, %v34_v20  ;;  %v38_v24 = vsub.f32 %v17_v5, %v34_v20 }
  0x18   :  { %v39_v25 = vmul.f32 %v35_v21, %v35_v21  ;;  %v40_v26 = vmul.f32 %v36_v22, %v36_v22  ;;  %v41_v27 = vmul.f32 %v37_v23, %v37_v23  ;;  %v42_v28 = vmul.f32 %v38_v24, %v38_v24 }
  0x1a   :  { %v43_v29 = vadd.f32 %v40_v26, %v39_v25 }
  0x1c   :  { %v44_v30 = vadd.f32 %v43_v29, %v41_v27 }
  0x1e   :  { %v45_v31 = vadd.f32 %v44_v30, %v42_v28 }
  0x20   :  { %v46_v32 = vrot.slane %v45_v31, 4 }
  0x22   :  { %v47_v33 = vadd.f32 %v46_v32, %v45_v31 }
  0x24   :  { %v48_v34 = vrot.slane %v47_v33, 2 }
  0x26   :  { %v49_v35 = vadd.f32 %v48_v34, %v47_v33 }
  0x28   :  { %v50_v36 = vrot.slane %v49_v35, 1 }
  0x2a   :  { %v51_v37 = vadd.f32 %v50_v36, %v49_v35 }
  0x2c   :  { %v52_v38 = vmul.f32 %v51_v37, %v33_v18 }
  0x2e   :  { %v53_v39 = vadd.f32 1e-05, %v52_v38 }
  0x30   :  { %109 = vrsqrt.f32 %v53_v39  ;;  %vm60_vm1 = vweird.f32 %v53_v39 }
  0x36   :  { %v110_v40 = vpop.eup %109 }
  0x37   :  { %v55_v41 = vmul.f32 %v110_v40, %v53_v39  ;;  %vm61_vm2 = vweird.f32 %v110_v40 }
  0x38   :  { %vm62_vm3 = vmor %vm60_vm1, %vm61_vm2 }
  0x39   :  { %v56_v42 = vmul.f32 %v110_v40, %v55_v41 }
  0x3b   :  { %v57_v43 = vmul.f32 0.5, %v56_v42 }
  0x3d   :  { %v58_v44 = vsub.f32 1.5, %v57_v43 }
  0x3f   :  { %v59_v45 = vmul.f32 %v110_v40, %v58_v44 }
  0x41   :  { %v63_v47 = vsel %vm62_vm3, %v110_v40, %v59_v45 }
  0x42   :  { %v64_v48 = vmul.f32 %v63_v47, %v35_v21  ;;  %v65_v50 = vmul.f32 %v63_v47, %v36_v22  ;;  %v66_v51 = vmul.f32 %v63_v47, %v37_v23  ;;  %v67_v52 = vmul.f32 %v63_v47, %v38_v24 }
  0x44   :  { %v72_v53 = vmul.f32 %v105_v46, %v64_v48  ;;  %v73_v54 = vmul.f32 %v105_v46, %v65_v50  ;;  %v74_v55 = vmul.f32 %v105_v46, %v66_v51  ;;  %v75_v56 = vmul.f32 %v105_v46, %v67_v52 }
  0x46   :  { %v80_v57 = vadd.f32 %v106_v49, %v72_v53  ;;  %v81_v58 = vadd.f32 %v106_v49, %v73_v54  ;;  %v82_v59 = vadd.f32 %v106_v49, %v74_v55  ;;  %v83_v60 = vadd.f32 %v106_v49, %v75_v56 }
  0x48   :  { %vm84_vm4 = vcmp.gt.f32.partialorder %v80_v57, 0.0  ;;  %v88_v61 = vmul.f32 0.2, %v80_v57  ;;  %vm85_vm5 = vcmp.gt.f32.partialorder %v81_v58, 0.0  ;;  %v89_v62 = vmul.f32 0.2, %v81_v58 }
  0x49   :  { %vm86_vm6 = vcmp.gt.f32.partialorder %v82_v59, 0.0  ;;  %v90_v63 = vmul.f32 0.2, %v82_v59  ;;  %vm87_vm7 = vcmp.gt.f32.partialorder %v83_v60, 0.0  ;;  %v91_v0 = vmul.f32 0.2, %v83_v60 }
  0x4a   :  { %v92_v1 = vsel %vm84_vm4, %v80_v57, %v88_v61  ;;  %v93_v2 = vsel %vm85_vm5, %v81_v58, %v89_v62 }
  0x4b   :  { %96 = vst [vmem:[%s165_s3] sm:$0xff] %v92_v1  ;;  %v94_v3 = vsel %vm86_vm6, %v82_v59, %v90_v63  ;;  %v95_v4 = vsel %vm87_vm7, %v83_v60, %v91_v0 }
  0x4c   :  { %97 = vst [vmem:[%s165_s3 + $0x8] sm:$0xff] %v93_v2 }
  0x4d   :  { %98 = vst [vmem:[%s165_s3 + $0x10] sm:$0xff] %v94_v3 }
  0x4e   :  { %99 = vst [vmem:[%s165_s3 + $0x18] sm:$0xff] %v95_v4 }

// kernel: patchgan_forward.13
= control target key start
LH: loop header
LB: loop body
LE: loop exit
PB: predicated region body
PF: predicated region fallthrough
CT: control target
= control target key end

     0   :  { %s1071_s9 = smov 0   ;;  %s1073_s10 = smov 0   ;;  %s1202_s0 = inlined_call_operand.vmem [shape: bf16[32,1024], index: 0, kind: input, shape index: {}]   ;;  %s1203_s1 = inlined_call_operand.vmem [shape: bf16[1024,128], index: 1, kind: input, shape index: {}]   ;;  %s1204_s2 = inlined_call_operand.vmem [shape: f32[32,128], index: 2, kind: output, shape index: {}]  }
   0x1   :  { %s1075_s11 = smov 0   ;;  %s1077_s12 = smov 0  }
   0x2   :  { %s1079_s13 = smov 0  }
   0x3 LB: > { %s24_s14 = sadd.s32 1, %s1049_s12  ;;  %p47_p1 = scmp.ne.s32.totalorder %s1041_s10, %s1037_s9  ;;  %s1053_s13 = sphi %s1079_s13, %s12_s13   ;;  %s1049_s12 = sphi %s1077_s12, %s1208_s12   ;;  %s1045_s11 = sphi %s1075_s11, %s1207_s11   ;;  %s1041_s10 = sphi %s1073_s10, %s1206_s10   ;;  %s1037_s9 = sphi %s1071_s9, %s1205_s9  }
   0x4   : > { %p25_p0 = scmp.ge.s32.totalorder %s24_s14, 2  ;;  %p48_p2 = scmp.eq.s32.totalorder %s1053_s13, 0 }
   0x5   : > { %s40_s16 = sadd.s32 1, %s1041_s10  ;;  %p759_p5 = scmp.ge.s32.totalorder %s1053_s13, 2 }
   0x6   : > { %s1210_s14 = smov (%p25_p0, %s24_s14), 0  ;;  %p49_p3 = por %p48_p2, %p47_p1 }
   0x7   : > { %s36_s15 = ssub.s32 %s1049_s12, %s1210_s14  ;;  %129 = sbr.rel (%p759_p5) target bundleno = 24 (0x18), region = 16 }
   0x8   : > { %p38_p4 = scmp.eq.s32.totalorder %s36_s15, 0 }
   0xa   : > { %s1106_s17 = scalar_select %p38_p4, %s1041_s10, %s40_s16  }
   0xc   : > { %132 = sbr.rel (!%p49_p3) target bundleno = 24 (0x18), region = 20  ;;  %s134_s18 = sand.u32 (%p49_p3), 1, %s1041_s10  }
   0xd   : > { %s933_s19 = sshll.u32 (%p49_p3), %s1049_s12, 4  ;;  %s760_s20 = sshll.u32 (%p49_p3), %s134_s18, 6 }
   0xe   : > { %s142_s23 = scalar_lea.vmem (%p49_p3), %s1202_s0, %s933_s19  ;;  %s136_s24 = scalar_lea.vmem (%p49_p3), [#allocation3], %s760_s20 }
   0xf   : > { %v155_v0 = vld [vmem:[%s142_s23] sm:$0xff] (%p49_p3)  ;;  %v157_v1 = vld [vmem:[%s142_s23 + $0x8] sm:$0xff] (%p49_p3) }
  0x10   : > { %v159_v2 = vld [vmem:[%s142_s23 + $0x20] sm:$0xff] (%p49_p3)  ;;  %156 = vst [vmem:[%s136_s24] sm:$0xff] (%p49_p3), %v155_v0  ;;  %v161_v3 = vld [vmem:[%s142_s23 + $0x28] sm:$0xff] (%p49_p3) }
  0x11   : > { %158 = vst [vmem:[%s136_s24 + $0x8] sm:$0xff] %v157_v1  ;;  %v163_v4 = vld [vmem:[%s142_s23 + $0x40] sm:$0xff]  ;;  %v165_v5 = vld [vmem:[%s142_s23 + $0x48] sm:$0xff] }
  0x12   : > { %160 = vst [vmem:[%s136_s24 + $0x10] sm:$0xff] %v159_v2  ;;  %v167_v6 = vld [vmem:[%s142_s23 + $0x60] sm:$0xff]  ;;  %v169_v7 = vld [vmem:[%s142_s23 + $0x68] sm:$0xff] }
  0x13   : > { %162 = vst [vmem:[%s136_s24 + $0x18] sm:$0xff] %v161_v3 }
  0x14   : > { %164 = vst [vmem:[%s136_s24 + $0x20] sm:$0xff] %v163_v4 }
  0x15   : > { %166 = vst [vmem:[%s136_s24 + $0x28] sm:$0xff] %v165_v5 }
  0x16   : > { %168 = vst [vmem:[%s136_s24 + $0x30] sm:$0xff] %v167_v6 }
  0x17   : > { %170 = vst [vmem:[%s136_s24 + $0x38] sm:$0xff] %v169_v7 }
  0x18 PF: > { %p763_p6 = scmp.ge.s32.totalorder %s1053_s13, 1  ;;  %p187_p7 = scmp.lt.s32.totalorder %s1053_s13, 3 }
  0x1a   : > { %p188_p8 = pnand %p763_p6, %p187_p7 }
  0x1b   : > { %s194_s25 = sand.u32 (!%p188_p8), 1, %s1037_s9   ;;  %s765_s26 = sshll.u32 (!%p188_p8), %s1045_s11, 6 }
  0x1c   : > { %191 = sbr.rel (%p188_p8) target bundleno = 248 (0xf8), region = 47  ;;  %s764_s27 = sshll.u32 (!%p188_p8), %s194_s25, 6 }
  0x1d   : > { %p229_p9 = scmp.lt.s32.totalorder (!%p188_p8), %s765_s26, 127  ;;  %s1123_s4 = scalar_lea.vmem (!%p188_p8), [#allocation3], %s764_s27 }
  0x1e   : > { %p767_p10 = scmp.ne.s32.totalorder (!%p188_p8), %s1045_s11, 0 }
  0x21   : > { %s1212_s26 = smov (!%p229_p9, %s765_s26), 127  ;;  %249 = sbr.rel (%p767_p10) target bundleno = 43 (0x2b), region = 55 }
  0x22   : > { %s766_s28 = sshll.u32 %s1212_s26, 2 }
  0x23   : > { %s1121_s3 = scalar_lea.vmem %s1203_s1, %s766_s28 }
  0x26   : > { %v1055_v8 = vmov 0.0  }
  0x27   : > { %250 = vst [vmem:[#allocation2 + $0x10] sm:$0xff] %v1055_v8 }
  0x28   : > { %251 = vst [vmem:[#allocation2] sm:$0xff] %v1055_v8 }
  0x29   : > { %252 = vst [vmem:[#allocation2 + $0x18] sm:$0xff] %v1055_v8 }
  0x2a   : > { %253 = vst [vmem:[#allocation2 + $0x8] sm:$0xff] %v1055_v8 }
  0x2b PF: > { %v949_v9 = vld [vmem:[%s1121_s3 + $0x38] sm:$0xff]  ;;  %v948_v13 = vld [vmem:[%s1121_s3 + $0x30] sm:$0xff]  ;;  %v947_v17 = vld [vmem:[%s1121_s3 + $0x28] sm:$0xff]  ;;  %p928_p11 = scmp.ne.s32.totalorder %s1045_s11, 1 }
  0x2c   : > { %v957_v10 = vld [vmem:[%s1121_s3 + $0x78] sm:$0xff]  ;;  %562 = vmatpush.bf16.msra.mxu0 %v949_v9  ;;  %v956_v14 = vld [vmem:[%s1121_s3 + $0x70] sm:$0xff]  ;;  %v955_v18 = vld [vmem:[%s1121_s3 + $0x68] sm:$0xff] }
  0x2d   : > { %v965_v11 = vld [vmem:[%s1121_s3 + $0xb8] sm:$0xff]  ;;  %581 = vmatpush.bf16.msra.mxu1 %v957_v10  ;;  %v964_v15 = vld [vmem:[%s1121_s3 + $0xb0] sm:$0xff]  ;;  %v963_v19 = vld [vmem:[%s1121_s3 + $0xa8] sm:$0xff] }
  0x2e   : > { %v973_v12 = vld [vmem:[%s1121_s3 + $0xf8] sm:$0xff]  ;;  %600 = vmatpush.bf16.msra.mxu2 %v965_v11  ;;  %v972_v16 = vld [vmem:[%s1121_s3 + $0xf0] sm:$0xff]  ;;  %v971_v20 = vld [vmem:[%s1121_s3 + $0xe8] sm:$0xff] }
  0x2f   : > { %619 = vmatpush.bf16.msra.mxu3 %v973_v12  ;;  %v946_v21 = vld [vmem:[%s1121_s3 + $0x20] sm:$0xff]  ;;  %v945_v25 = vld [vmem:[%s1121_s3 + $0x18] sm:$0xff]  ;;  %v944_v29 = vld [vmem:[%s1121_s3 + $0x10] sm:$0xff] }
  0x30   : > { %563 = vmatpush.bf16.msra.mxu0 %v948_v13  ;;  %v954_v22 = vld [vmem:[%s1121_s3 + $0x60] sm:$0xff]  ;;  %v953_v26 = vld [vmem:[%s1121_s3 + $0x58] sm:$0xff]  ;;  %v952_v30 = vld [vmem:[%s1121_s3 + $0x50] sm:$0xff] }
  0x31   : > { %582 = vmatpush.bf16.msra.mxu1 %v956_v14  ;;  %v962_v23 = vld [vmem:[%s1121_s3 + $0xa0] sm:$0xff]  ;;  %v961_v27 = vld [vmem:[%s1121_s3 + $0x98] sm:$0xff]  ;;  %v960_v31 = vld [vmem:[%s1121_s3 + $0x90] sm:$0xff] }
  0x32   : > { %601 = vmatpush.bf16.msra.mxu2 %v964_v15  ;;  %v970_v24 = vld [vmem:[%s1121_s3 + $0xe0] sm:$0xff]  ;;  %v969_v28 = vld [vmem:[%s1121_s3 + $0xd8] sm:$0xff]  ;;  %v968_v32 = vld [vmem:[%s1121_s3 + $0xd0] sm:$0xff] }
  0x33   : > { %620 = vmatpush.bf16.msra.mxu3 %v972_v16  ;;  %v943_v33 = vld [vmem:[%s1121_s3 + $0x8] sm:$0xff]  ;;  %v942_v37 = vld [vmem:[%s1121_s3] sm:$0xff]  ;;  %v936_v42 = vld [vmem:[%s1123_s4 + $0xc] sm:$0xf0] }
  0x34   : > { %564 = vmatpush.bf16.msra.mxu0 %v947_v17  ;;  %v951_v34 = vld [vmem:[%s1121_s3 + $0x48] sm:$0xff]  ;;  %v950_v38 = vld [vmem:[%s1121_s3 + $0x40] sm:$0xff]  ;;  %v772_v44 = vld [vmem:[%s1123_s4 + $0x10] sm:$0xf0] }
  0x35   : > { %583 = vmatpush.bf16.msra.mxu1 %v955_v18  ;;  %v959_v35 = vld [vmem:[%s1121_s3 + $0x88] sm:$0xff]  ;;  %v958_v39 = vld [vmem:[%s1121_s3 + $0x80] sm:$0xff]  ;;  %v937_v46 = vld [vmem:[%s1123_s4 + $0x14] sm:$0xf0] }
  0x36   : > { %602 = vmatpush.bf16.msra.mxu2 %v963_v19  ;;  %v967_v36 = vld [vmem:[%s1121_s3 + $0xc8] sm:$0xff]  ;;  %v966_v40 = vld [vmem:[%s1121_s3 + $0xc0] sm:$0xff]  ;;  %v780_v48 = vld [vmem:[%s1123_s4 + $0x18] sm:$0xf0] }
  0x37   : > { %621 = vmatpush.bf16.msra.mxu3 %v971_v20  ;;  %v770_v41 = vld [vmem:[%s1123_s4] sm:$0xf]  ;;  %v934_v43 = vld [vmem:[%s1123_s4 + $0x4] sm:$0xf]  ;;  %v778_v45 = vld [vmem:[%s1123_s4 + $0x8] sm:$0xf] }
  0x38   : > { %565 = vmatpush.bf16.msra.mxu0 %v946_v21  ;;  %v935_v47 = vld [vmem:[%s1123_s4 + $0xc] sm:$0xf]  ;;  %v771_v49 = vor.u32 %v936_v42, %v770_v41  ;;  %v775_v50 = vor.u32 %v934_v43, %v772_v44  ;;  %v779_v51 = vor.u32 %v937_v46, %v778_v45  ;;  %v786_v53 = vld [vmem:[%s1123_s4 + $0x20] sm:$0xf]  ;;  %v940_v54 = vld [vmem:[%s1123_s4 + $0x2c] sm:$0xf0] }
  0x39   : > { %584 = vmatpush.bf16.msra.mxu1 %v954_v22  ;;  %v783_v52 = vor.u32 %v935_v47, %v780_v48  ;;  %v938_v55 = vld [vmem:[%s1123_s4 + $0x24] sm:$0xf]  ;;  %v788_v56 = vld [vmem:[%s1123_s4 + $0x30] sm:$0xf0]  ;;  %v794_v57 = vld [vmem:[%s1123_s4 + $0x28] sm:$0xf]  ;;  %v787_v61 = vor.u32 %v940_v54, %v786_v53 }
  0x3a   : > { %603 = vmatpush.bf16.msra.mxu2 %v962_v23  ;;  %v941_v58 = vld [vmem:[%s1123_s4 + $0x34] sm:$0xf0]  ;;  %v939_v59 = vld [vmem:[%s1123_s4 + $0x2c] sm:$0xf]  ;;  %v796_v60 = vld [vmem:[%s1123_s4 + $0x38] sm:$0xf0]  ;;  %v791_v62 = vor.u32 %v938_v55, %v788_v56 }
  0x3b   : > { %622 = vmatpush.bf16.msra.mxu3 %v970_v24  ;;  %v795_v63 = vor.u32 %v941_v58, %v794_v57  ;;  %v799_v0 = vor.u32 %v939_v59, %v796_v60  ;;  %v254_v9 = vld [vmem:[#allocation2 + $0x10] sm:$0xff]  ;;  %v255_v16 = vld [vmem:[#allocation2] sm:$0xff] }
  0x3c   : > { %566 = vmatpush.bf16.msra.mxu0 %v945_v25  ;;  %v256_v25 = vld [vmem:[#allocation2 + $0x18] sm:$0xff] }
  0x3d   : > { %585 = vmatpush.bf16.msra.mxu1 %v953_v26 }
  0x3e   : > { %604 = vmatpush.bf16.msra.mxu2 %v961_v27 }
  0x3f   : > { %623 = vmatpush.bf16.msra.mxu3 %v969_v28 }
  0x40   : > { %567 = vmatpush.bf16.msra.mxu0 %v944_v29 }
  0x41   : > { %586 = vmatpush.bf16.msra.mxu1 %v952_v30 }
  0x42   : > { %605 = vmatpush.bf16.msra.mxu2 %v960_v31 }
  0x43   : > { %624 = vmatpush.bf16.msra.mxu3 %v968_v32 }
  0x44   : > { %568 = vmatpush.bf16.msra.mxu0 %v943_v33  ;;  %v257_v33 = vld [vmem:[#allocation2 + $0x8] sm:$0xff] }
  0x45   : > { %587 = vmatpush.bf16.msra.mxu1 %v951_v34 }
  0x46   : > { %606 = vmatpush.bf16.msra.mxu2 %v959_v35 }
  0x47   : > { %625 = vmatpush.bf16.msra.mxu3 %v967_v36 }
  0x48   : > { %569 = vmatpush.bf16.msra.mxu0 %v942_v37 }
  0x49   : > { %588 = vmatpush.bf16.msra.mxu1 %v950_v38 }
  0x4a   : > { %607 = vmatpush.bf16.msra.mxu2 %v958_v39 }
  0x4b   : > { %626 = vmatpush.bf16.msra.mxu3 %v966_v40  ;;  %570 = vmatmul.bf16.vlgmr.msra.gmra.mxu0 %v771_v49 }
  0x4c   : > { %589 = vmatmul.bf16.vlgmr.msra.gmra.mxu1 %v775_v50 }
  0x4d   : > { %608 = vmatmul.bf16.vlgmr.msra.gmra.mxu2 %v779_v51 }
  0x4e   : > { %627 = vmatmul.bf16.vlgmr.msra.gmra.mxu3 %v783_v52 }
  0x5b   : > { %575 = vmatmul.bf16.gmra.mxu0 %v787_v61 }
  0x5c   : > { %594 = vmatmul.bf16.gmra.mxu1 %v791_v62 }
  0x5d   : > { %613 = vmatmul.bf16.gmra.mxu2 %v795_v63 }
  0x5e   : > { %632 = vmatmul.bf16.gmra.mxu3 %v799_v0 }
  0xc8   : > { %v571_v1 = vpop.f32.mrf.mxu0 }
  0xc9   : > { %v590_v2 = vpop.f32.mrf.mxu1 }
  0xca   : > { %v591_v3 = vadd.f32 %v590_v2, %v571_v1 }
  0xd0   : > { %v609_v4 = vpop.f32.mrf.mxu2  ;;  %v573_v7 = vpop.f32.mrf.mxu0 }
  0xd1   : > { %v628_v5 = vpop.f32.mrf.mxu3  ;;  %v610_v6 = vadd.f32 %v609_v4, %v591_v3  ;;  %v592_v8 = vpop.f32.mrf.mxu1 }
  0xd2   : > { %v593_v12 = vadd.f32 %v592_v8, %v573_v7 }
  0xd3   : > { %v629_v10 = vadd.f32 %v628_v5, %v610_v6 }
  0xd5   : > { %v638_v11 = vadd.f32 %v629_v10, %v254_v9 }
  0xd7   : > { %642 = vst [vmem:[#allocation2 + $0x10] sm:$0xff] %v638_v11 }
  0xd8   : > { %v611_v13 = vpop.f32.mrf.mxu2  ;;  %v576_v17 = vpop.f32.mrf.mxu0 }
  0xd9   : > { %v630_v14 = vpop.f32.mrf.mxu3  ;;  %v612_v15 = vadd.f32 %v611_v13, %v593_v12  ;;  %v595_v18 = vpop.f32.mrf.mxu1 }
  0xda   : > { %v596_v21 = vadd.f32 %v595_v18, %v576_v17 }
  0xdb   : > { %v631_v19 = vadd.f32 %v630_v14, %v612_v15 }
  0xdd   : > { %v639_v20 = vadd.f32 %v631_v19, %v255_v16 }
  0xdf   : > { %643 = vst [vmem:[#allocation2] sm:$0xff] %v639_v20 }
  0xe0   : > { %v614_v22 = vpop.f32.mrf.mxu2  ;;  %v578_v27 = vpop.f32.mrf.mxu0 }
  0xe1   : > { %v633_v23 = vpop.f32.mrf.mxu3  ;;  %v615_v24 = vadd.f32 %v614_v22, %v596_v21  ;;  %v597_v28 = vpop.f32.mrf.mxu1 }
  0xe2   : > { %v598_v30 = vadd.f32 %v597_v28, %v578_v27 }
  0xe3   : > { %v634_v26 = vadd.f32 %v633_v23, %v615_v24 }
  0xe5   : > { %v640_v29 = vadd.f32 %v634_v26, %v256_v25 }
  0xe7   : > { %644 = vst [vmem:[#allocation2 + $0x18] sm:$0xff] %v640_v29 }
  0xe8   : > { %v616_v31 = vpop.f32.mrf.mxu2 }
  0xe9   : > { %v617_v32 = vadd.f32 %v616_v31, %v598_v30  ;;  %v635_v34 = vpop.f32.mrf.mxu3 }
  0xeb   : > { %v636_v35 = vadd.f32 %v635_v34, %v617_v32  ;;  %649 = sbr.rel (%p928_p11) target bundleno = 248 (0xf8), region = 59 }
  0xed   : > { %v641_v36 = vadd.f32 %v636_v35, %v257_v33 }
  0xef   : > { %645 = vst [vmem:[#allocation2 + $0x8] sm:$0xff] %v641_v36 }
  0xf0   : > { %v650_v37 = vld [vmem:[#allocation2 + $0x10] sm:$0xff]  ;;  %v651_v38 = vld [vmem:[#allocation2] sm:$0xff]  ;;  %v652_v39 = vld [vmem:[#allocation2 + $0x18] sm:$0xff] }
  0xf1   : > { %654 = vst [vmem:[%s1204_s2] sm:$0xff] %v650_v37 }
  0xf2   : > { %655 = vst [vmem:[%s1204_s2 + $0x8] sm:$0xff] %v651_v38 }
  0xf3   : > { %656 = vst [vmem:[%s1204_s2 + $0x10] sm:$0xff] %v652_v39 }
  0xf6   : > { %v653_v40 = vld [vmem:[#allocation2 + $0x8] sm:$0xff] }
  0xf7   : > { %657 = vst [vmem:[%s1204_s2 + $0x18] sm:$0xff] %v653_v40 }
  0xf8 PF: > { %s12_s13 = sadd.s32 1, %s1053_s13   ;;  %s1205_s9 = smov %s1041_s10 }
  0xf9   : > { %p9_p12 = scmp.ge.s32.totalorder %s12_s13, 4   ;;  %s1206_s10 = smov %s1106_s17 }
  0xfa   : > { %s1207_s11 = smov %s1049_s12  ;;  %s1208_s12 = smov %s1210_s14 }
  0xfb   :  { %11 = sbr.rel (!%p9_p12) target bundleno = 3 (0x3), region = 97 }

// kernel: patchgan_forward.15
= control target key start
LH: loop header
LB: loop body
LE: loop exit
PB: predicated region body
PF: predicated region fallthrough
CT: control target
= control target key end

     0   :  { %s911_s9 = smov 0   ;;  %s913_s10 = smov 0   ;;  %s991_s0 = inlined_call_operand.vmem [shape: bf16[8,2048], index: 0, kind: input, shape index: {}]   ;;  %s992_s1 = inlined_call_operand.vmem [shape: bf16[2048,128], index: 1, kind: input, shape index: {}]   ;;  %s993_s2 = inlined_call_operand.vmem [shape: f32[8,128], index: 2, kind: output, shape index: {}]  }
   0x1   :  { %s915_s11 = smov 0  }
   0x2 LB: > { %s24_s12 = sadd.s32 1, %s889_s10  ;;  %p671_p0 = scmp.ge.s32.totalorder %s893_s11, 1  ;;  %s893_s11 = sphi %s915_s11, %s12_s11   ;;  %s889_s10 = sphi %s913_s10, %s995_s10   ;;  %s885_s9 = sphi %s911_s9, %s994_s9  }
   0x3   : > { %p25_p1 = scmp.ge.s32.totalorder %s24_s12, 4  ;;  %p156_p2 = scmp.lt.s32.totalorder %s893_s11, 5 }
   0x5   : > { %s997_s12 = smov (%p25_p1, %s24_s12), 0  ;;  %p157_p3 = pnand %p671_p0, %p156_p2 }
   0x6   : > { %s672_s13 = sshll.u32 (!%p157_p3), %s885_s9, 2  ;;  %s674_s14 = sshll.u32 (!%p157_p3), %s885_s9, 6 }
   0x7   : > { %160 = sbr.rel (%p157_p3) target bundleno = 231 (0xe7), region = 28  ;;  %p195_p4 = scmp.lt.s32.totalorder (!%p157_p3), %s672_s13, 15 }
   0x8   : > { %p203_p5 = scmp.lt.s32.totalorder (!%p157_p3), %s674_s14, 255  ;;  %p676_p6 = scmp.ne.s32.totalorder (!%p157_p3), %s885_s9, 0 }
   0xc   : > { %s999_s13 = smov (!%p195_p4, %s672_s13), 15  ;;  %s1001_s14 = smov (!%p203_p5, %s674_s14), 255 }
   0xd   : > { %s673_s15 = sshll.u32 %s999_s13, 2  ;;  %s675_s19 = sshll.u32 %s1001_s14, 2 }
   0xe   : > { %s936_s18 = scalar_lea.vmem %s991_s0, %s673_s15  ;;  %s941_s22 = scalar_lea.vmem %s992_s1, %s675_s19 }
   0xf   : > { %221 = sbr.rel (%p676_p6) target bundleno = 22 (0x16), region = 32 }
  0x14   : > { %v895_v0 = vmov 0.0  }
  0x15   : > { %222 = vst [vmem:[#allocation2] sm:$0xff] %v895_v0 }
  0x16 PF: > { %v817_v1 = vld [vmem:[%s941_s22 + $0x38] sm:$0xff]  ;;  %v816_v5 = vld [vmem:[%s941_s22 + $0x30] sm:$0xff]  ;;  %v815_v9 = vld [vmem:[%s941_s22 + $0x28] sm:$0xff]  ;;  %p805_p7 = scmp.ne.s32.totalorder %s885_s9, 3 }
  0x17   : > { %v825_v2 = vld [vmem:[%s941_s22 + $0x78] sm:$0xff]  ;;  %496 = vmatpush.bf16.msra.mxu0 %v817_v1  ;;  %v824_v6 = vld [vmem:[%s941_s22 + $0x70] sm:$0xff]  ;;  %v823_v10 = vld [vmem:[%s941_s22 + $0x68] sm:$0xff] }
  0x18   : > { %v833_v3 = vld [vmem:[%s941_s22 + $0xb8] sm:$0xff]  ;;  %509 = vmatpush.bf16.msra.mxu1 %v825_v2  ;;  %v832_v7 = vld [vmem:[%s941_s22 + $0xb0] sm:$0xff]  ;;  %v831_v11 = vld [vmem:[%s941_s22 + $0xa8] sm:$0xff] }
  0x19   : > { %v841_v4 = vld [vmem:[%s941_s22 + $0xf8] sm:$0xff]  ;;  %522 = vmatpush.bf16.msra.mxu2 %v833_v3  ;;  %v840_v8 = vld [vmem:[%s941_s22 + $0xf0] sm:$0xff]  ;;  %v839_v12 = vld [vmem:[%s941_s22 + $0xe8] sm:$0xff] }
  0x1a   : > { %535 = vmatpush.bf16.msra.mxu3 %v841_v4  ;;  %v814_v13 = vld [vmem:[%s941_s22 + $0x20] sm:$0xff]  ;;  %v813_v17 = vld [vmem:[%s941_s22 + $0x18] sm:$0xff]  ;;  %v812_v21 = vld [vmem:[%s941_s22 + $0x10] sm:$0xff] }
  0x1b   : > { %497 = vmatpush.bf16.msra.mxu0 %v816_v5  ;;  %v822_v14 = vld [vmem:[%s941_s22 + $0x60] sm:$0xff]  ;;  %v821_v18 = vld [vmem:[%s941_s22 + $0x58] sm:$0xff]  ;;  %v820_v22 = vld [vmem:[%s941_s22 + $0x50] sm:$0xff] }
  0x1c   : > { %510 = vmatpush.bf16.msra.mxu1 %v824_v6  ;;  %v830_v15 = vld [vmem:[%s941_s22 + $0xa0] sm:$0xff]  ;;  %v829_v19 = vld [vmem:[%s941_s22 + $0x98] sm:$0xff]  ;;  %v828_v23 = vld [vmem:[%s941_s22 + $0x90] sm:$0xff] }
  0x1d   : > { %523 = vmatpush.bf16.msra.mxu2 %v832_v7  ;;  %v838_v16 = vld [vmem:[%s941_s22 + $0xe0] sm:$0xff]  ;;  %v837_v20 = vld [vmem:[%s941_s22 + $0xd8] sm:$0xff]  ;;  %v836_v24 = vld [vmem:[%s941_s22 + $0xd0] sm:$0xff] }
  0x1e   : > { %536 = vmatpush.bf16.msra.mxu3 %v840_v8  ;;  %v811_v25 = vld [vmem:[%s941_s22 + $0x8] sm:$0xff]  ;;  %v224_v27 = vld [vmem:[%s936_s18] sm:$0xff] }
  0x1f   : > { %498 = vmatpush.bf16.msra.mxu0 %v815_v9  ;;  %v819_v26 = vld [vmem:[%s941_s22 + $0x48] sm:$0xff]  ;;  %v292_v31 = vunpack.c.l.b16 %v224_v27  ;;  %v293_v32 = vunpack.c.h.b16 %v224_v27  ;;  %v810_v33 = vld [vmem:[%s941_s22] sm:$0xff] }
  0x20   : > { %511 = vmatpush.bf16.msra.mxu1 %v823_v10  ;;  %v827_v28 = vld [vmem:[%s941_s22 + $0x88] sm:$0xff]  ;;  %v818_v34 = vld [vmem:[%s941_s22 + $0x40] sm:$0xff] }
  0x21   : > { %524 = vmatpush.bf16.msra.mxu2 %v831_v11  ;;  %v835_v29 = vld [vmem:[%s941_s22 + $0xc8] sm:$0xff]  ;;  %v826_v37 = vld [vmem:[%s941_s22 + $0x80] sm:$0xff]  ;;  %v296_v39 = vpack.c.b16 %v292_v31, %v292_v31  ;;  %v297_v40 = vpack.c.b16 %v293_v32, %v293_v32 }
  0x22   : > { %537 = vmatpush.bf16.msra.mxu3 %v839_v12  ;;  %v225_v30 = vld [vmem:[%s936_s18 + $0x8] sm:$0xff]  ;;  %v834_v38 = vld [vmem:[%s941_s22 + $0xc0] sm:$0xff] }
  0x23   : > { %499 = vmatpush.bf16.msra.mxu0 %v814_v13  ;;  %v294_v35 = vunpack.c.l.b16 %v225_v30  ;;  %v295_v36 = vunpack.c.h.b16 %v225_v30  ;;  %v223_v51 = vld [vmem:[#allocation2] sm:$0xff] }
  0x24   : > { %512 = vmatpush.bf16.msra.mxu1 %v822_v14 }
  0x25   : > { %525 = vmatpush.bf16.msra.mxu2 %v830_v15  ;;  %v298_v41 = vpack.c.b16 %v294_v35, %v294_v35  ;;  %v299_v42 = vpack.c.b16 %v295_v36, %v295_v36 }
  0x26   : > { %538 = vmatpush.bf16.msra.mxu3 %v838_v16 }
  0x27   : > { %500 = vmatpush.bf16.msra.mxu0 %v813_v17 }
  0x28   : > { %513 = vmatpush.bf16.msra.mxu1 %v821_v18 }
  0x29   : > { %526 = vmatpush.bf16.msra.mxu2 %v829_v19 }
  0x2a   : > { %539 = vmatpush.bf16.msra.mxu3 %v837_v20 }
  0x2b   : > { %501 = vmatpush.bf16.msra.mxu0 %v812_v21 }
  0x2c   : > { %514 = vmatpush.bf16.msra.mxu1 %v820_v22 }
  0x2d   : > { %527 = vmatpush.bf16.msra.mxu2 %v828_v23 }
  0x2e   : > { %540 = vmatpush.bf16.msra.mxu3 %v836_v24 }
  0x2f   : > { %502 = vmatpush.bf16.msra.mxu0 %v811_v25 }
  0x30   : > { %515 = vmatpush.bf16.msra.mxu1 %v819_v26 }
  0x31   : > { %528 = vmatpush.bf16.msra.mxu2 %v827_v28 }
  0x32   : > { %541 = vmatpush.bf16.msra.mxu3 %v835_v29 }
  0x33   : > { %503 = vmatpush.bf16.msra.mxu0 %v810_v33 }
  0x34   : > { %516 = vmatpush.bf16.msra.mxu1 %v818_v34 }
  0x35   : > { %529 = vmatpush.bf16.msra.mxu2 %v826_v37 }
  0x36   : > { %542 = vmatpush.bf16.msra.mxu3 %v834_v38  ;;  %504 = vmatmul.bf16.vlgmr.msra.gmra.mxu0 %v296_v39 }
  0x37   : > { %517 = vmatmul.bf16.vlgmr.msra.gmra.mxu1 %v297_v40 }
  0x38   : > { %530 = vmatmul.bf16.vlgmr.msra.gmra.mxu2 %v298_v41 }
  0x39   : > { %543 = vmatmul.bf16.vlgmr.msra.gmra.mxu3 %v299_v42 }
  0xb3   : > { %v505_v43 = vpop.f32.mrf.mxu0 }
  0xb4   : > { %v518_v44 = vpop.f32.mrf.mxu1 }
  0xb5   : > { %v519_v45 = vadd.f32 %v518_v44, %v505_v43 }
  0xbb   : > { %v531_v46 = vpop.f32.mrf.mxu2  ;;  %v507_v49 = vpop.f32.mrf.mxu0 }
  0xbc   : > { %v544_v47 = vpop.f32.mrf.mxu3  ;;  %v532_v48 = vadd.f32 %v531_v46, %v519_v45  ;;  %v520_v50 = vpop.f32.mrf.mxu1 }
  0xbe   : > { %v545_v52 = vadd.f32 %v544_v47, %v532_v48 }
  0xc0   : > { %v548_v53 = vadd.f32 %v545_v52, %v223_v51  ;;  %553 = sbr.rel (%p805_p7) target bundleno = 231 (0xe7), region = 36 }
  0xc2   : > { %549 = vst [vmem:[#allocation2] sm:$0xff] %v548_v53 }
  0xc3   : > { %v533_v54 = vpop.f32.mrf.mxu2 }
  0xc4   : > { %v546_v55 = vpop.f32.mrf.mxu3 }
  0xc9   : > { %v554_v56 = vld [vmem:[#allocation2] sm:$0xff] }
  0xca   : > { %v806_v57 = vmul.f32 -1.442695, %v554_v56 }
  0xcc   : > { %867 = vpow2.f32 %v806_v57 }
  0xd2   : > { %v868_v58 = vpop.eup %867 }
  0xd3   : > { %v558_v59 = vadd.f32 1.0, %v868_v58 }
  0xd5   : > { %869 = vrcp.f32 %v558_v59  ;;  %v570_v62 = vand.u32 2147483648, %v558_v59  ;;  %vm564_vm0 = vweird.f32 %v558_v59  ;;  %v568_v0 = vand.u32 2147483647, %v558_v59 }
  0xd7   : > { %v571_v2 = vor.u32 1.1754944e-38, %v570_v62  ;;  %vm569_vm3 = vcmp.eq.f32.partialorder %v568_v0, 8.507059e+37 }
  0xdb   : > { %v870_v60 = vpop.eup %869 }
  0xdc   : > { %v560_v61 = vmul.f32 %v870_v60, %v558_v59  ;;  %vm565_vm1 = vweird.f32 %v870_v60 }
  0xdd   : > { %vm566_vm2 = vmor %vm564_vm0, %vm565_vm1 }
  0xde   : > { %v561_v63 = vsub.f32 1.0, %v560_v61 }
  0xe0   : > { %v562_v1 = vmul.f32 %v870_v60, %v561_v63 }
  0xe2   : > { %v563_v3 = vadd.f32 %v870_v60, %v562_v1 }
  0xe4   : > { %v567_v4 = vsel %vm566_vm2, %v870_v60, %v563_v3 }
  0xe5   : > { %v572_v5 = vsel %vm569_vm3, %v571_v2, %v567_v4 }
  0xe6   : > { %574 = vst [vmem:[%s993_s2] sm:$0xff] %v572_v5 }
  0xe7 PF: > { %s12_s11 = sadd.s32 1, %s893_s11   ;;  %s994_s9 = smov %s889_s10 }
  0xe8   : > { %p9_p8 = scmp.ge.s32.totalorder %s12_s11, 6   ;;  %s995_s10 = smov %s997_s12 }
  0xea   :  { %11 = sbr.rel (!%p9_p8) target bundleno = 2 (0x2), region = 69 }

</bundles_post_ra>
